<compile_context>
chip_gen: v7x
topology: tpu7x:2x2x1
jax: 0.10.0
libtpu: 0.0.40
codegen_flags: <defaults>
</compile_context>

<pallas_src>
import functools

import jax
import jax.numpy as jnp
from jax import lax
from jax.experimental import pallas as pl
from jax.experimental.pallas import tpu as pltpu

NEG_SLOPE = 0.01          # nn.LeakyReLU default negative_slope
LANE = 128
SUBLANE = 8
UNROLL_MAX_LAYERS = 4     # static unroll for tiny L, fori_loop beyond that


def _round_up(x, m):
    return ((x + m - 1) // m) * m


def _leaky_relu(x):
    # f32 on the VPU; co-issues with the MXU, effectively free.
    return jnp.where(x > 0, x, NEG_SLOPE * x)


def _asmr_kernel(n_layers, w_dtype,
                 x_ref, w_in_ref, b_in_ref, res_w_ref, res_b_ref,
                 w_head_ref, b_head_ref, out_ref):
    """One batch tile: input Linear -> n_layers residual blocks -> fused heads."""
    # input_layer: bf16 matmul (short K is fine for the MXU), f32 accumulate.
    h = jnp.dot(x_ref[...], w_in_ref[...],
                preferred_element_type=jnp.float32) + b_in_ref[...]

    def res_block(h, w1, b1, w2, b2):
        t = jnp.dot(h.astype(w_dtype), w1, preferred_element_type=jnp.float32) + b1
        t = _leaky_relu(t)
        t = jnp.dot(t.astype(w_dtype), w2, preferred_element_type=jnp.float32) + b2
        return h + t

    if n_layers <= UNROLL_MAX_LAYERS:
        # Tiny L: fully unrolled, maximal scheduler freedom.
        for l in range(n_layers):
            h = res_block(h, res_w_ref[2 * l], res_b_ref[2 * l],
                          res_w_ref[2 * l + 1], res_b_ref[2 * l + 1])
    else:
        # Large L: visible loop keeps code size / live ranges bounded.
        def body(l, h):
            return res_block(h, res_w_ref[2 * l], res_b_ref[2 * l],
                             res_w_ref[2 * l + 1], res_b_ref[2 * l + 1])
        h = lax.fori_loop(0, n_layers, body, h)

    # fused policy+value head -> one lane-dense bf16 (TM, HEAD_PAD) store.
    out_ref[...] = (
        jnp.dot(h.astype(w_dtype), w_head_ref[...],
                preferred_element_type=jnp.float32) + b_head_ref[...]
    ).astype(out_ref.dtype)


def _pad2(a, rows, cols):
    out = jnp.zeros((rows, cols), a.dtype)
    return out.at[: a.shape[0], : a.shape[1]].set(a)


def _pack_params(params, n_layers, f_pad, head_pad, w_dtype):
    """Pad feature dims to lane multiples and stack per-layer tensors."""
    input_features = params["w_in"].shape[0]
    w_in = _pad2(params["w_in"], input_features, f_pad).astype(w_dtype)   # K not padded
    b_in = _pad2(params["b_in"], 1, f_pad).astype(jnp.float32)

    res_w = jnp.stack(
        [_pad2(params[f"w{j + 1}_{i}"], f_pad, f_pad)
         for i in range(n_layers) for j in range(2)]
    ).astype(w_dtype)                                  # (2L, F_PAD, F_PAD)
    res_b = jnp.stack(
        [_pad2(params[f"b{j + 1}_{i}"], 1, f_pad)
         for i in range(n_layers) for j in range(2)]
    ).astype(jnp.float32)                              # (2L, 1, F_PAD)

    # Fused head: policy columns first, then the single value column.
    w_head_full = jnp.concatenate([params["w_pol"], params["w_val"]], axis=1)
    b_head_full = jnp.concatenate([params["b_pol"], params["b_val"]], axis=1)
    w_head = _pad2(w_head_full, f_pad, head_pad).astype(w_dtype)
    b_head = _pad2(b_head_full, 1, head_pad).astype(jnp.float32)
    return w_in, b_in, res_w, res_b, w_head, b_head


def _dimension_semantics():
    # Only core_parallel actually shards grid steps across v7x's two TCs;
    # plain "parallel" is the right (and harmless) choice on v5e/v6e.
    try:
        kind = jax.devices()[0].device_kind.lower()
    except Exception:
        kind = ""
    if "v7" in kind:
        return (pltpu.CORE_PARALLEL,)
    return ("parallel",)


def _vmem_budget_bytes(weight_arrays, tm, input_features, f_pad, head_pad, out_itemsize):
    """weights (single-buffered) + double-buffered x/out tiles + f32 intermediates."""
    wbytes = sum(int(a.size) * a.dtype.itemsize for a in weight_arrays)
    act = 2 * tm * input_features * 2 + 2 * tm * head_pad * out_itemsize
    interm = 4 * tm * f_pad * 4          # h, t and matmul staging headroom
    return min(int(1.5 * (wbytes + act + interm)) + (8 << 20), 100 << 20)


def _build_call(kernel_fn, *, batch_pad, tm, input_features, f_pad, head_pad,
                n_layers, out_dtype, single_buffer_weights, dim_semantics,
                vmem_limit_bytes):
    if single_buffer_weights:
        def wspec(shape, imap):
            return pl.BlockSpec(shape, imap, pipeline_mode=pl.Buffered(1))
    else:
        def wspec(shape, imap):
            return pl.BlockSpec(shape, imap)

    in_specs = [
        pl.BlockSpec((tm, input_features), lambda i: (i, 0)),            # x tile (K un-padded)
        wspec((input_features, f_pad), lambda i: (0, 0)),                # w_in
        wspec((1, f_pad), lambda i: (0, 0)),                             # b_in
        wspec((2 * n_layers, f_pad, f_pad), lambda i: (0, 0, 0)),        # res_w stack
        wspec((2 * n_layers, 1, f_pad), lambda i: (0, 0, 0)),            # res_b stack
        wspec((f_pad, head_pad), lambda i: (0, 0)),                      # w_head
        wspec((1, head_pad), lambda i: (0, 0)),                          # b_head
    ]
    cp_kwargs = dict(dimension_semantics=dim_semantics)
    if vmem_limit_bytes is not None:
        cp_kwargs["vmem_limit_bytes"] = int(vmem_limit_bytes)

    return pl.pallas_call(
        kernel_fn,
        out_shape=jax.ShapeDtypeStruct((batch_pad, head_pad), out_dtype),
        grid=(batch_pad // tm,),
        in_specs=in_specs,
        out_specs=pl.BlockSpec((tm, head_pad), lambda i: (i, 0)),
        compiler_params=pltpu.CompilerParams(**cp_kwargs),
    )


def asmr_net_forward(x, params, n_layers, policy_dim, *, tm=256,
                     w_dtype=jnp.bfloat16):
    """Returns (policy, value) matching ASMRNet.forward."""
    batch, input_features = x.shape
    feature_maps = params["w_in"].shape[1]

    f_pad = _round_up(feature_maps, LANE)
    head_pad = _round_up(policy_dim + 1, LANE)

    # Batch tiling: big tiles (fill the 256x256 MXU on v6e/v7x), but keep at
    # least two grid steps when the batch allows so both v7x TCs get work.
    tm = min(tm, _round_up(batch, SUBLANE))
    if pl.cdiv(batch, tm) < 2 and batch > SUBLANE:
        tm = _round_up(pl.cdiv(batch, 2), SUBLANE)
    batch_pad = _round_up(batch, tm)

    w_in, b_in, res_w, res_b, w_head, b_head = _pack_params(
        params, n_layers, f_pad, head_pad, w_dtype)
    weights = (w_in, b_in, res_w, res_b, w_head, b_head)

    # Only the batch dim is padded (zeros); the feature (K) dim stays at its
    # real size -- no 8x inflation of the x DMA from host-side zero padding.
    x_b = x.astype(w_dtype)
    if batch_pad != batch:
        x_b = jnp.pad(x_b, ((0, batch_pad - batch), (0, 0)))

    out_dtype = jnp.bfloat16   # halves HBM writeback of the padded head slab
    kernel_fn = functools.partial(_asmr_kernel, n_layers, w_dtype)
    common = dict(batch_pad=batch_pad, tm=tm, input_features=input_features,
                  f_pad=f_pad, head_pad=head_pad, n_layers=n_layers,
                  out_dtype=out_dtype)

    try:
        call = _build_call(
            kernel_fn, **common,
            single_buffer_weights=True,
            dim_semantics=_dimension_semantics(),
            vmem_limit_bytes=_vmem_budget_bytes(
                weights, tm, input_features, f_pad, head_pad,
                jnp.dtype(out_dtype).itemsize))
        out = call(x_b, *weights)
    except Exception:
        # Conservative fallback (default double-buffering / semantics / VMEM
        # limit) so the kernel still runs if Buffered(1)/CORE_PARALLEL is
        # unavailable on this jax/libtpu combination.
        call = _build_call(kernel_fn, **common, single_buffer_weights=False,
                           dim_semantics=("parallel",), vmem_limit_bytes=None)
        out = call(x_b, *weights)

    policy = out[:batch, :policy_dim].astype(jnp.float32)
    value = out[:batch, policy_dim:policy_dim + 1].astype(jnp.float32)
    return policy, value


def _init_params(key, input_features, feature_maps, n_layers, policy_dim):
    """Deterministic synthetic init (shapes mirror the PyTorch module's __init__)."""
    params = {}

    def linear(key, fan_in, fan_out):
        kw, kb = jax.random.split(key)
        scale = 1.0 / jnp.sqrt(fan_in)
        w = jax.random.uniform(kw, (fan_in, fan_out), jnp.float32, -scale, scale)
        b = jax.random.uniform(kb, (1, fan_out), jnp.float32, -scale, scale)
        return w, b

    keys = jax.random.split(key, 2 * n_layers + 3)
    params["w_in"], params["b_in"] = linear(keys[0], input_features, feature_maps)
    for i in range(n_layers):
        params[f"w1_{i}"], params[f"b1_{i}"] = linear(keys[1 + 2 * i], feature_maps, feature_maps)
        params[f"w2_{i}"], params[f"b2_{i}"] = linear(keys[2 + 2 * i], feature_maps, feature_maps)
    params["w_pol"], params["b_pol"] = linear(keys[2 * n_layers + 1], feature_maps, policy_dim)
    params["w_val"], params["b_val"] = linear(keys[2 * n_layers + 2], feature_maps, 1)
    return params


def _reference_forward(x, params, n_layers, w_dtype=jnp.bfloat16):
    """Pure-JAX reference with the same bf16-matmul / f32-elementwise semantics."""
    def mm(a, w):
        return jnp.dot(a.astype(w_dtype), w.astype(w_dtype),
                       preferred_element_type=jnp.float32)

    h = mm(x, params["w_in"]) + params["b_in"]
    for i in range(n_layers):
        t = mm(h, params[f"w1_{i}"]) + params[f"b1_{i}"]
        t = jnp.where(t > 0, t, NEG_SLOPE * t)
        t = mm(t, params[f"w2_{i}"]) + params[f"b2_{i}"]
        h = h + t
    policy = mm(h, params["w_pol"]) + params["b_pol"]
    value = mm(h, params["w_val"]) + params["b_val"]
    return policy, value


if __name__ == "__main__":
    # ASMRNetConfig(feature_maps=32, layers=2), input_shape=(16,), output_shape=(4,)
    batch = 512          # 2 grid tiles of TM=256
    input_features = 16
    feature_maps = 32
    n_layers = 2
    policy_dim = 4

    key = jax.random.PRNGKey(0)
    k_x, k_p = jax.random.split(key)
    x = jax.random.normal(k_x, (batch, input_features), jnp.float32)
    params = _init_params(k_p, input_features, feature_maps, n_layers, policy_dim)

    policy, value = asmr_net_forward(x, params, n_layers, policy_dim)
    jax.block_until_ready((policy, value))

    ref_policy, ref_value = _reference_forward(x, params, n_layers)
    assert policy.shape == (batch, policy_dim) and value.shape == (batch, 1)
    assert jnp.allclose(policy, ref_policy, atol=1e-2, rtol=1e-2)
    assert jnp.allclose(value, ref_value, atol=1e-2, rtol=1e-2)

    print("KERNEL_OK")
</pallas_src>

<mosaic_0001>
module attributes {stable_mosaic.version = 11 : i64} {
  func.func @_asmr_kernel(%arg0: i32, %arg1: memref<256x16xbf16, #tpu.memory_space<vmem>>, %arg2: memref<16x128xbf16, #tpu.memory_space<vmem>>, %arg3: memref<1x128xf32, #tpu.memory_space<vmem>>, %arg4: memref<4x128x128xbf16, #tpu.memory_space<vmem>>, %arg5: memref<4x1x128xf32, #tpu.memory_space<vmem>>, %arg6: memref<128x128xbf16, #tpu.memory_space<vmem>>, %arg7: memref<1x128xf32, #tpu.memory_space<vmem>>, %arg8: memref<256x128xbf16, #tpu.memory_space<vmem>>) attributes {dimension_semantics = [#tpu.dimension_semantics<parallel>], iteration_bounds = array<i64: 2>, scalar_prefetch = 0 : i64, scratch_operands = 0 : i64, tpu.core_type = #tpu.core_type<tc>, window_params = [{transform_indices = @transform_0, window_bounds = array<i64: 256, 16>}, {pipeline_mode = #tpu.pipeline_mode<synchronous>, transform_indices = @transform_1, window_bounds = array<i64: 16, 128>}, {pipeline_mode = #tpu.pipeline_mode<synchronous>, transform_indices = @transform_2, window_bounds = array<i64: 1, 128>}, {pipeline_mode = #tpu.pipeline_mode<synchronous>, transform_indices = @transform_3, window_bounds = array<i64: 4, 128, 128>}, {pipeline_mode = #tpu.pipeline_mode<synchronous>, transform_indices = @transform_4, window_bounds = array<i64: 4, 1, 128>}, {pipeline_mode = #tpu.pipeline_mode<synchronous>, transform_indices = @transform_5, window_bounds = array<i64: 128, 128>}, {pipeline_mode = #tpu.pipeline_mode<synchronous>, transform_indices = @transform_6, window_bounds = array<i64: 1, 128>}, {transform_indices = @transform_7, window_bounds = array<i64: 256, 128>}]} {
    %c0 = arith.constant 0 : index
    %c0_0 = arith.constant 0 : index
    %0 = vector.load %arg1[%c0, %c0_0] : memref<256x16xbf16, #tpu.memory_space<vmem>>, vector<256x16xbf16>
    %c0_1 = arith.constant 0 : index
    %c0_2 = arith.constant 0 : index
    %1 = vector.load %arg2[%c0_1, %c0_2] : memref<16x128xbf16, #tpu.memory_space<vmem>>, vector<16x128xbf16>
    %cst = arith.constant dense<0.000000e+00> : vector<256x128xf32>
    %2 = tpu.matmul %0, %1, %cst {dimension_numbers = #tpu.dot_dimension_numbers<[1], [0], [0], [1], [0, 0, 1, 1], [], []>} : vector<256x16xbf16>, vector<16x128xbf16>, vector<256x128xf32> -> vector<256x128xf32>
    %c0_3 = arith.constant 0 : index
    %c0_4 = arith.constant 0 : index
    %3 = vector.load %arg3[%c0_3, %c0_4] : memref<1x128xf32, #tpu.memory_space<vmem>>, vector<1x128xf32>
    %4 = vector.broadcast %3 : vector<1x128xf32> to vector<256x128xf32>
    %5 = arith.addf %2, %4 : vector<256x128xf32>
    %c0_5 = arith.constant 0 : index
    %c0_6 = arith.constant 0 : index
    %c0_7 = arith.constant 0 : index
    %6 = vector.load %arg4[%c0_5, %c0_6, %c0_7] : memref<4x128x128xbf16, #tpu.memory_space<vmem>>, vector<1x128x128xbf16>
    %7 = vector.shape_cast %6 : vector<1x128x128xbf16> to vector<128x128xbf16>
    %c0_8 = arith.constant 0 : index
    %c0_9 = arith.constant 0 : index
    %c0_10 = arith.constant 0 : index
    %8 = vector.load %arg5[%c0_8, %c0_9, %c0_10] : memref<4x1x128xf32, #tpu.memory_space<vmem>>, vector<1x1x128xf32>
    %9 = vector.shape_cast %8 : vector<1x1x128xf32> to vector<1x128xf32>
    %c1 = arith.constant 1 : index
    %c0_11 = arith.constant 0 : index
    %c0_12 = arith.constant 0 : index
    %10 = vector.load %arg4[%c1, %c0_11, %c0_12] : memref<4x128x128xbf16, #tpu.memory_space<vmem>>, vector<1x128x128xbf16>
    %11 = vector.shape_cast %10 : vector<1x128x128xbf16> to vector<128x128xbf16>
    %c1_13 = arith.constant 1 : index
    %c0_14 = arith.constant 0 : index
    %c0_15 = arith.constant 0 : index
    %12 = vector.load %arg5[%c1_13, %c0_14, %c0_15] : memref<4x1x128xf32, #tpu.memory_space<vmem>>, vector<1x1x128xf32>
    %13 = vector.shape_cast %12 : vector<1x1x128xf32> to vector<1x128xf32>
    %14 = arith.truncf %5 : vector<256x128xf32> to vector<256x128xbf16>
    %cst_16 = arith.constant dense<0.000000e+00> : vector<256x128xf32>
    %15 = tpu.matmul %14, %7, %cst_16 {dimension_numbers = #tpu.dot_dimension_numbers<[1], [0], [0], [1], [0, 0, 1, 1], [], []>} : vector<256x128xbf16>, vector<128x128xbf16>, vector<256x128xf32> -> vector<256x128xf32>
    %16 = vector.broadcast %9 : vector<1x128xf32> to vector<256x128xf32>
    %17 = arith.addf %15, %16 : vector<256x128xf32>
    %cst_17 = arith.constant 0.000000e+00 : f32
    %18 = vector.broadcast %cst_17 : f32 to vector<256x128xf32>
    %19 = arith.cmpf ogt, %17, %18 : vector<256x128xf32>
    %cst_18 = arith.constant 0.00999999977 : f32
    %20 = vector.broadcast %cst_18 : f32 to vector<256x128xf32>
    %21 = arith.mulf %20, %17 : vector<256x128xf32>
    %22 = arith.select %19, %17, %21 : vector<256x128xi1>, vector<256x128xf32>
    %23 = arith.truncf %22 : vector<256x128xf32> to vector<256x128xbf16>
    %cst_19 = arith.constant dense<0.000000e+00> : vector<256x128xf32>
    %24 = tpu.matmul %23, %11, %cst_19 {dimension_numbers = #tpu.dot_dimension_numbers<[1], [0], [0], [1], [0, 0, 1, 1], [], []>} : vector<256x128xbf16>, vector<128x128xbf16>, vector<256x128xf32> -> vector<256x128xf32>
    %25 = vector.broadcast %13 : vector<1x128xf32> to vector<256x128xf32>
    %26 = arith.addf %24, %25 : vector<256x128xf32>
    %27 = arith.addf %5, %26 : vector<256x128xf32>
    %c2 = arith.constant 2 : index
    %c0_20 = arith.constant 0 : index
    %c0_21 = arith.constant 0 : index
    %28 = vector.load %arg4[%c2, %c0_20, %c0_21] : memref<4x128x128xbf16, #tpu.memory_space<vmem>>, vector<1x128x128xbf16>
    %29 = vector.shape_cast %28 : vector<1x128x128xbf16> to vector<128x128xbf16>
    %c2_22 = arith.constant 2 : index
    %c0_23 = arith.constant 0 : index
    %c0_24 = arith.constant 0 : index
    %30 = vector.load %arg5[%c2_22, %c0_23, %c0_24] : memref<4x1x128xf32, #tpu.memory_space<vmem>>, vector<1x1x128xf32>
    %31 = vector.shape_cast %30 : vector<1x1x128xf32> to vector<1x128xf32>
    %c3 = arith.constant 3 : index
    %c0_25 = arith.constant 0 : index
    %c0_26 = arith.constant 0 : index
    %32 = vector.load %arg4[%c3, %c0_25, %c0_26] : memref<4x128x128xbf16, #tpu.memory_space<vmem>>, vector<1x128x128xbf16>
    %33 = vector.shape_cast %32 : vector<1x128x128xbf16> to vector<128x128xbf16>
    %c3_27 = arith.constant 3 : index
    %c0_28 = arith.constant 0 : index
    %c0_29 = arith.constant 0 : index
    %34 = vector.load %arg5[%c3_27, %c0_28, %c0_29] : memref<4x1x128xf32, #tpu.memory_space<vmem>>, vector<1x1x128xf32>
    %35 = vector.shape_cast %34 : vector<1x1x128xf32> to vector<1x128xf32>
    %36 = arith.truncf %27 : vector<256x128xf32> to vector<256x128xbf16>
    %cst_30 = arith.constant dense<0.000000e+00> : vector<256x128xf32>
    %37 = tpu.matmul %36, %29, %cst_30 {dimension_numbers = #tpu.dot_dimension_numbers<[1], [0], [0], [1], [0, 0, 1, 1], [], []>} : vector<256x128xbf16>, vector<128x128xbf16>, vector<256x128xf32> -> vector<256x128xf32>
    %38 = vector.broadcast %31 : vector<1x128xf32> to vector<256x128xf32>
    %39 = arith.addf %37, %38 : vector<256x128xf32>
    %cst_31 = arith.constant 0.000000e+00 : f32
    %40 = vector.broadcast %cst_31 : f32 to vector<256x128xf32>
    %41 = arith.cmpf ogt, %39, %40 : vector<256x128xf32>
    %cst_32 = arith.constant 0.00999999977 : f32
    %42 = vector.broadcast %cst_32 : f32 to vector<256x128xf32>
    %43 = arith.mulf %42, %39 : vector<256x128xf32>
    %44 = arith.select %41, %39, %43 : vector<256x128xi1>, vector<256x128xf32>
    %45 = arith.truncf %44 : vector<256x128xf32> to vector<256x128xbf16>
    %cst_33 = arith.constant dense<0.000000e+00> : vector<256x128xf32>
    %46 = tpu.matmul %45, %33, %cst_33 {dimension_numbers = #tpu.dot_dimension_numbers<[1], [0], [0], [1], [0, 0, 1, 1], [], []>} : vector<256x128xbf16>, vector<128x128xbf16>, vector<256x128xf32> -> vector<256x128xf32>
    %47 = vector.broadcast %35 : vector<1x128xf32> to vector<256x128xf32>
    %48 = arith.addf %46, %47 : vector<256x128xf32>
    %49 = arith.addf %27, %48 : vector<256x128xf32>
    %50 = arith.truncf %49 : vector<256x128xf32> to vector<256x128xbf16>
    %c0_34 = arith.constant 0 : index
    %c0_35 = arith.constant 0 : index
    %51 = vector.load %arg6[%c0_34, %c0_35] : memref<128x128xbf16, #tpu.memory_space<vmem>>, vector<128x128xbf16>
    %cst_36 = arith.constant dense<0.000000e+00> : vector<256x128xf32>
    %52 = tpu.matmul %50, %51, %cst_36 {dimension_numbers = #tpu.dot_dimension_numbers<[1], [0], [0], [1], [0, 0, 1, 1], [], []>} : vector<256x128xbf16>, vector<128x128xbf16>, vector<256x128xf32> -> vector<256x128xf32>
    %c0_37 = arith.constant 0 : index
    %c0_38 = arith.constant 0 : index
    %53 = vector.load %arg7[%c0_37, %c0_38] : memref<1x128xf32, #tpu.memory_space<vmem>>, vector<1x128xf32>
    %54 = vector.broadcast %53 : vector<1x128xf32> to vector<256x128xf32>
    %55 = arith.addf %52, %54 : vector<256x128xf32>
    %56 = arith.truncf %55 : vector<256x128xf32> to vector<256x128xbf16>
    %c0_39 = arith.constant 0 : index
    %c0_40 = arith.constant 0 : index
    %57 = vector.load %arg8[%c0_39, %c0_40] : memref<256x128xbf16, #tpu.memory_space<vmem>>, vector<256x128xbf16>
    tpu.vector_store %arg8[%c0_39, %c0_40], %56 {strides = array<i32>} : memref<256x128xbf16, #tpu.memory_space<vmem>>, vector<256x128xbf16>,
    return
  }
  func.func @transform_0(%arg0: i32) -> (i32, i32) {
    %c0_i32 = arith.constant 0 : i32
    %c0_i32_0 = arith.constant 0 : i32
    return %arg0, %c0_i32 : i32, i32
  }
  func.func @transform_1(%arg0: i32) -> (i32, i32) {
    %c0_i32 = arith.constant 0 : i32
    %c0_i32_0 = arith.constant 0 : i32
    %c0_i32_1 = arith.constant 0 : i32
    return %c0_i32, %c0_i32_0 : i32, i32
  }
  func.func @transform_2(%arg0: i32) -> (i32, i32) {
    %c0_i32 = arith.constant 0 : i32
    %c0_i32_0 = arith.constant 0 : i32
    %c0_i32_1 = arith.constant 0 : i32
    return %c0_i32, %c0_i32_0 : i32, i32
  }
  func.func @transform_3(%arg0: i32) -> (i32, i32, i32) {
    %c0_i32 = arith.constant 0 : i32
    %c0_i32_0 = arith.constant 0 : i32
    %c0_i32_1 = arith.constant 0 : i32
    %c0_i32_2 = arith.constant 0 : i32
    return %c0_i32, %c0_i32_0, %c0_i32_1 : i32, i32, i32
  }
  func.func @transform_4(%arg0: i32) -> (i32, i32, i32) {
    %c0_i32 = arith.constant 0 : i32
    %c0_i32_0 = arith.constant 0 : i32
    %c0_i32_1 = arith.constant 0 : i32
    %c0_i32_2 = arith.constant 0 : i32
    return %c0_i32, %c0_i32_0, %c0_i32_1 : i32, i32, i32
  }
  func.func @transform_5(%arg0: i32) -> (i32, i32) {
    %c0_i32 = arith.constant 0 : i32
    %c0_i32_0 = arith.constant 0 : i32
    %c0_i32_1 = arith.constant 0 : i32
    return %c0_i32, %c0_i32_0 : i32, i32
  }
  func.func @transform_6(%arg0: i32) -> (i32, i32) {
    %c0_i32 = arith.constant 0 : i32
    %c0_i32_0 = arith.constant 0 : i32
    %c0_i32_1 = arith.constant 0 : i32
    return %c0_i32, %c0_i32_0 : i32, i32
  }
  func.func @transform_7(%arg0: i32) -> (i32, i32) {
    %c0_i32 = arith.constant 0 : i32
    %c0_i32_0 = arith.constant 0 : i32
    return %arg0, %c0_i32 : i32, i32
  }
}

module attributes {stable_mosaic.version = 11 : i64} {
  func.func @_asmr_kernel(%arg0: i32, %arg1: memref<256x16xbf16, #tpu.memory_space<vmem>>, %arg2: memref<16x128xbf16, #tpu.memory_space<vmem>>, %arg3: memref<1x128xf32, #tpu.memory_space<vmem>>, %arg4: memref<4x128x128xbf16, #tpu.memory_space<vmem>>, %arg5: memref<4x1x128xf32, #tpu.memory_space<vmem>>, %arg6: memref<128x128xbf16, #tpu.memory_space<vmem>>, %arg7: memref<1x128xf32, #tpu.memory_space<vmem>>, %arg8: memref<256x128xbf16, #tpu.memory_space<vmem>>) attributes {dimension_semantics = [#tpu.dimension_semantics<parallel>], iteration_bounds = array<i64: 2>, scalar_prefetch = 0 : i64, scratch_operands = 0 : i64, tpu.core_type = #tpu.core_type<tc>, window_params = [{transform_indices = @transform_0, window_bounds = array<i64: 256, 16>}, {pipeline_mode = #tpu.pipeline_mode<synchronous>, transform_indices = @transform_1, window_bounds = array<i64: 16, 128>}, {pipeline_mode = #tpu.pipeline_mode<synchronous>, transform_indices = @transform_2, window_bounds = array<i64: 1, 128>}, {pipeline_mode = #tpu.pipeline_mode<synchronous>, transform_indices = @transform_3, window_bounds = array<i64: 4, 128, 128>}, {pipeline_mode = #tpu.pipeline_mode<synchronous>, transform_indices = @transform_4, window_bounds = array<i64: 4, 1, 128>}, {pipeline_mode = #tpu.pipeline_mode<synchronous>, transform_indices = @transform_5, window_bounds = array<i64: 128, 128>}, {pipeline_mode = #tpu.pipeline_mode<synchronous>, transform_indices = @transform_6, window_bounds = array<i64: 1, 128>}, {transform_indices = @transform_7, window_bounds = array<i64: 256, 128>}]} {
    %c0 = arith.constant 0 : index
    %c0_0 = arith.constant 0 : index
    %0 = vector.load %arg1[%c0, %c0_0] : memref<256x16xbf16, #tpu.memory_space<vmem>>, vector<256x16xbf16>
    %c0_1 = arith.constant 0 : index
    %c0_2 = arith.constant 0 : index
    %1 = vector.load %arg2[%c0_1, %c0_2] : memref<16x128xbf16, #tpu.memory_space<vmem>>, vector<16x128xbf16>
    %cst = arith.constant dense<0.000000e+00> : vector<256x128xf32>
    %2 = tpu.matmul %0, %1, %cst {dimension_numbers = #tpu.dot_dimension_numbers<[1], [0], [0], [1], [0, 0, 1, 1], [], []>} : vector<256x16xbf16>, vector<16x128xbf16>, vector<256x128xf32> -> vector<256x128xf32>
    %c0_3 = arith.constant 0 : index
    %c0_4 = arith.constant 0 : index
    %3 = vector.load %arg3[%c0_3, %c0_4] : memref<1x128xf32, #tpu.memory_space<vmem>>, vector<1x128xf32>
    %4 = vector.broadcast %3 : vector<1x128xf32> to vector<256x128xf32>
    %5 = arith.addf %2, %4 : vector<256x128xf32>
    %c0_5 = arith.constant 0 : index
    %c0_6 = arith.constant 0 : index
    %c0_7 = arith.constant 0 : index
    %6 = vector.load %arg4[%c0_5, %c0_6, %c0_7] : memref<4x128x128xbf16, #tpu.memory_space<vmem>>, vector<1x128x128xbf16>
    %7 = vector.shape_cast %6 : vector<1x128x128xbf16> to vector<128x128xbf16>
    %c0_8 = arith.constant 0 : index
    %c0_9 = arith.constant 0 : index
    %c0_10 = arith.constant 0 : index
    %8 = vector.load %arg5[%c0_8, %c0_9, %c0_10] : memref<4x1x128xf32, #tpu.memory_space<vmem>>, vector<1x1x128xf32>
    %9 = vector.shape_cast %8 : vector<1x1x128xf32> to vector<1x128xf32>
    %c1 = arith.constant 1 : index
    %c0_11 = arith.constant 0 : index
    %c0_12 = arith.constant 0 : index
    %10 = vector.load %arg4[%c1, %c0_11, %c0_12] : memref<4x128x128xbf16, #tpu.memory_space<vmem>>, vector<1x128x128xbf16>
    %11 = vector.shape_cast %10 : vector<1x128x128xbf16> to vector<128x128xbf16>
    %c1_13 = arith.constant 1 : index
    %c0_14 = arith.constant 0 : index
    %c0_15 = arith.constant 0 : index
    %12 = vector.load %arg5[%c1_13, %c0_14, %c0_15] : memref<4x1x128xf32, #tpu.memory_space<vmem>>, vector<1x1x128xf32>
    %13 = vector.shape_cast %12 : vector<1x1x128xf32> to vector<1x128xf32>
    %14 = arith.truncf %5 : vector<256x128xf32> to vector<256x128xbf16>
    %cst_16 = arith.constant dense<0.000000e+00> : vector<256x128xf32>
    %15 = tpu.matmul %14, %7, %cst_16 {dimension_numbers = #tpu.dot_dimension_numbers<[1], [0], [0], [1], [0, 0, 1, 1], [], []>} : vector<256x128xbf16>, vector<128x128xbf16>, vector<256x128xf32> -> vector<256x128xf32>
    %16 = vector.broadcast %9 : vector<1x128xf32> to vector<256x128xf32>
    %17 = arith.addf %15, %16 : vector<256x128xf32>
    %cst_17 = arith.constant 0.000000e+00 : f32
    %18 = vector.broadcast %cst_17 : f32 to vector<256x128xf32>
    %19 = arith.cmpf ogt, %17, %18 : vector<256x128xf32>
    %cst_18 = arith.constant 0.00999999977 : f32
    %20 = vector.broadcast %cst_18 : f32 to vector<256x128xf32>
    %21 = arith.mulf %20, %17 : vector<256x128xf32>
    %22 = arith.select %19, %17, %21 : vector<256x128xi1>, vector<256x128xf32>
    %23 = arith.truncf %22 : vector<256x128xf32> to vector<256x128xbf16>
    %cst_19 = arith.constant dense<0.000000e+00> : vector<256x128xf32>
    %24 = tpu.matmul %23, %11, %cst_19 {dimension_numbers = #tpu.dot_dimension_numbers<[1], [0], [0], [1], [0, 0, 1, 1], [], []>} : vector<256x128xbf16>, vector<128x128xbf16>, vector<256x128xf32> -> vector<256x128xf32>
    %25 = vector.broadcast %13 : vector<1x128xf32> to vector<256x128xf32>
    %26 = arith.addf %24, %25 : vector<256x128xf32>
    %27 = arith.addf %5, %26 : vector<256x128xf32>
    %c2 = arith.constant 2 : index
    %c0_20 = arith.constant 0 : index
    %c0_21 = arith.constant 0 : index
    %28 = vector.load %arg4[%c2, %c0_20, %c0_21] : memref<4x128x128xbf16, #tpu.memory_space<vmem>>, vector<1x128x128xbf16>
    %29 = vector.shape_cast %28 : vector<1x128x128xbf16> to vector<128x128xbf16>
    %c2_22 = arith.constant 2 : index
    %c0_23 = arith.constant 0 : index
    %c0_24 = arith.constant 0 : index
    %30 = vector.load %arg5[%c2_22, %c0_23, %c0_24] : memref<4x1x128xf32, #tpu.memory_space<vmem>>, vector<1x1x128xf32>
    %31 = vector.shape_cast %30 : vector<1x1x128xf32> to vector<1x128xf32>
    %c3 = arith.constant 3 : index
    %c0_25 = arith.constant 0 : index
    %c0_26 = arith.constant 0 : index
    %32 = vector.load %arg4[%c3, %c0_25, %c0_26] : memref<4x128x128xbf16, #tpu.memory_space<vmem>>, vector<1x128x128xbf16>
    %33 = vector.shape_cast %32 : vector<1x128x128xbf16> to vector<128x128xbf16>
    %c3_27 = arith.constant 3 : index
    %c0_28 = arith.constant 0 : index
    %c0_29 = arith.constant 0 : index
    %34 = vector.load %arg5[%c3_27, %c0_28, %c0_29] : memref<4x1x128xf32, #tpu.memory_space<vmem>>, vector<1x1x128xf32>
    %35 = vector.shape_cast %34 : vector<1x1x128xf32> to vector<1x128xf32>
    %36 = arith.truncf %27 : vector<256x128xf32> to vector<256x128xbf16>
    %cst_30 = arith.constant dense<0.000000e+00> : vector<256x128xf32>
    %37 = tpu.matmul %36, %29, %cst_30 {dimension_numbers = #tpu.dot_dimension_numbers<[1], [0], [0], [1], [0, 0, 1, 1], [], []>} : vector<256x128xbf16>, vector<128x128xbf16>, vector<256x128xf32> -> vector<256x128xf32>
    %38 = vector.broadcast %31 : vector<1x128xf32> to vector<256x128xf32>
    %39 = arith.addf %37, %38 : vector<256x128xf32>
    %cst_31 = arith.constant 0.000000e+00 : f32
    %40 = vector.broadcast %cst_31 : f32 to vector<256x128xf32>
    %41 = arith.cmpf ogt, %39, %40 : vector<256x128xf32>
    %cst_32 = arith.constant 0.00999999977 : f32
    %42 = vector.broadcast %cst_32 : f32 to vector<256x128xf32>
    %43 = arith.mulf %42, %39 : vector<256x128xf32>
    %44 = arith.select %41, %39, %43 : vector<256x128xi1>, vector<256x128xf32>
    %45 = arith.truncf %44 : vector<256x128xf32> to vector<256x128xbf16>
    %cst_33 = arith.constant dense<0.000000e+00> : vector<256x128xf32>
    %46 = tpu.matmul %45, %33, %cst_33 {dimension_numbers = #tpu.dot_dimension_numbers<[1], [0], [0], [1], [0, 0, 1, 1], [], []>} : vector<256x128xbf16>, vector<128x128xbf16>, vector<256x128xf32> -> vector<256x128xf32>
    %47 = vector.broadcast %35 : vector<1x128xf32> to vector<256x128xf32>
    %48 = arith.addf %46, %47 : vector<256x128xf32>
    %49 = arith.addf %27, %48 : vector<256x128xf32>
    %50 = arith.truncf %49 : vector<256x128xf32> to vector<256x128xbf16>
    %c0_34 = arith.constant 0 : index
    %c0_35 = arith.constant 0 : index
    %51 = vector.load %arg6[%c0_34, %c0_35] : memref<128x128xbf16, #tpu.memory_space<vmem>>, vector<128x128xbf16>
    %cst_36 = arith.constant dense<0.000000e+00> : vector<256x128xf32>
    %52 = tpu.matmul %50, %51, %cst_36 {dimension_numbers = #tpu.dot_dimension_numbers<[1], [0], [0], [1], [0, 0, 1, 1], [], []>} : vector<256x128xbf16>, vector<128x128xbf16>, vector<256x128xf32> -> vector<256x128xf32>
    %c0_37 = arith.constant 0 : index
    %c0_38 = arith.constant 0 : index
    %53 = vector.load %arg7[%c0_37, %c0_38] : memref<1x128xf32, #tpu.memory_space<vmem>>, vector<1x128xf32>
    %54 = vector.broadcast %53 : vector<1x128xf32> to vector<256x128xf32>
    %55 = arith.addf %52, %54 : vector<256x128xf32>
    %56 = arith.truncf %55 : vector<256x128xf32> to vector<256x128xbf16>
    %c0_39 = arith.constant 0 : index
    %c0_40 = arith.constant 0 : index
    %57 = vector.load %arg8[%c0_39, %c0_40] : memref<256x128xbf16, #tpu.memory_space<vmem>>, vector<256x128xbf16>
    tpu.vector_store %arg8[%c0_39, %c0_40], %56 {strides = array<i32>} : memref<256x128xbf16, #tpu.memory_space<vmem>>, vector<256x128xbf16>,
    return
  }
  func.func @transform_0(%arg0: i32) -> (i32, i32) {
    %c0_i32 = arith.constant 0 : i32
    %c0_i32_0 = arith.constant 0 : i32
    return %arg0, %c0_i32 : i32, i32
  }
  func.func @transform_1(%arg0: i32) -> (i32, i32) {
    %c0_i32 = arith.constant 0 : i32
    %c0_i32_0 = arith.constant 0 : i32
    %c0_i32_1 = arith.constant 0 : i32
    return %c0_i32, %c0_i32_0 : i32, i32
  }
  func.func @transform_2(%arg0: i32) -> (i32, i32) {
    %c0_i32 = arith.constant 0 : i32
    %c0_i32_0 = arith.constant 0 : i32
    %c0_i32_1 = arith.constant 0 : i32
    return %c0_i32, %c0_i32_0 : i32, i32
  }
  func.func @transform_3(%arg0: i32) -> (i32, i32, i32) {
    %c0_i32 = arith.constant 0 : i32
    %c0_i32_0 = arith.constant 0 : i32
    %c0_i32_1 = arith.constant 0 : i32
    %c0_i32_2 = arith.constant 0 : i32
    return %c0_i32, %c0_i32_0, %c0_i32_1 : i32, i32, i32
  }
  func.func @transform_4(%arg0: i32) -> (i32, i32, i32) {
    %c0_i32 = arith.constant 0 : i32
    %c0_i32_0 = arith.constant 0 : i32
    %c0_i32_1 = arith.constant 0 : i32
    %c0_i32_2 = arith.constant 0 : i32
    return %c0_i32, %c0_i32_0, %c0_i32_1 : i32, i32, i32
  }
  func.func @transform_5(%arg0: i32) -> (i32, i32) {
    %c0_i32 = arith.constant 0 : i32
    %c0_i32_0 = arith.constant 0 : i32
    %c0_i32_1 = arith.constant 0 : i32
    return %c0_i32, %c0_i32_0 : i32, i32
  }
  func.func @transform_6(%arg0: i32) -> (i32, i32) {
    %c0_i32 = arith.constant 0 : i32
    %c0_i32_0 = arith.constant 0 : i32
    %c0_i32_1 = arith.constant 0 : i32
    return %c0_i32, %c0_i32_0 : i32, i32
  }
  func.func @transform_7(%arg0: i32) -> (i32, i32) {
    %c0_i32 = arith.constant 0 : i32
    %c0_i32_0 = arith.constant 0 : i32
    return %arg0, %c0_i32 : i32, i32
  }
}

</mosaic_0001>

<bundles_post_ra>
// kernel: tpu_custom_call.1
= control target key start
LH: loop header
LB: loop body
LE: loop exit
PB: predicated region body
PF: predicated region fallthrough
CT: control target
= control target key end

     0   :  { %12 = vsyncpa [#allocation3], 0  ;;  %s4168_s0 = inlined_call_operand.vmem [shape: bf16[512,16], index: 0, kind: input, shape index: {}]   ;;  %s4169_s1 = inlined_call_operand.vmem [shape: bf16[16,128], index: 1, kind: input, shape index: {}]   ;;  %s4170_s2 = inlined_call_operand.vmem [shape: f32[1,128], index: 2, kind: input, shape index: {}]   ;;  %s4171_s3 = inlined_call_operand.vmem [shape: bf16[4,128,128], index: 3, kind: input, shape index: {}]   ;;  %s4172_s4 = inlined_call_operand.vmem [shape: f32[4,1,128], index: 4, kind: input, shape index: {}]   ;;  %s4173_s5 = inlined_call_operand.hbm [shape: bf16[128,128], index: 5, kind: input, shape index: {}]   ;;  %s4174_s6 = inlined_call_operand.vmem [shape: f32[1,128], index: 6, kind: input, shape index: {}]   ;;  %s4175_s7 = inlined_call_operand.hbm [shape: bf16[512,128], index: 7, kind: output, shape index: {}]  }
   0x1   :  { %13 = vsyncpa [#allocation4], 0 }
   0x2   :  { %15 = vsyncpa [#allocation4 + $0x1], 0  ;;  %s3367_s24 = smov 0   ;;  %s3369_s25 = smov 0  }
   0x3   :  { %s3371_s26 = smov 0   ;;  %s3373_s27 = smov 0  }
   0x4 LB: > { %s3388_s28 = sadd.s32 4294967295, %s3319_s27   ;;  %s2383_s29 = sadd.s32 4294967294, %s3319_s27   ;;  %s3319_s27 = sphi %s3373_s27, %s4191_s27   ;;  %s3315_s26 = sphi %s3371_s26, %s4190_s26   ;;  %s3311_s25 = sphi %s3369_s25, %s4189_s25   ;;  %s3307_s24 = sphi %s3367_s24, %s4188_s24  }
   0x5   : > { %s3392_s30 = sadd.s32 1, %s3319_s27   ;;  %s180_s8 = sadd.s32 1, %s3315_s26 }
   0x6   : > { %s177_s9 = ssub.s32 %s3319_s27, %s3392_s30  ;;  %p190_p0 = scmp.ne.s32.totalorder %s3315_s26, %s3311_s25 }
   0x7   : > { %p178_p1 = scmp.eq.s32.totalorder %s177_s9, 0  ;;  %p191_p2 = scmp.eq.s32.totalorder %s3388_s28, 1 }
   0x8   : > { %p196_p3 = scmp.ne.s32.totalorder %s3311_s25, %s3307_s24  ;;  %p197_p4 = scmp.eq.s32.totalorder %s2383_s29, 1 }
   0x9   : > { %s3403_s10 = scalar_select %p178_p1, %s3315_s26, %s180_s8  }
   0xa   : > { %p3405_p5 = por %p191_p2, %p190_p0  ;;  %p3409_p6 = por %p197_p4, %p196_p3 }
   0xb   : > { %p2384_p7 = scmp.ge.s32.totalorder %s3319_s27, 1  ;;  %p204_p8 = scmp.lt.s32.totalorder %s3319_s27, 3 }
   0xc   : > { %s4179_s11 = scalar_select %p3405_p5, 1, 0 }
   0xd   : > { %s4180_s12 = scalar_select %p3409_p6, 1, 0 }
   0xe   : > { %p4176_p9 = scmp.eq.s32.totalorder %s3388_s28, 0  ;;  %p3416_p10 = pnand %p2384_p7, %p204_p8 }
   0xf   : > { %s3321_s14 = smov [#allocation2]   ;;  %s3225_s19 = scalar_lea.hbm %s4173_s5, 1024 }
  0x10   : > { %s4181_s13 = scalar_select %p3416_p10, 1, 0 }
  0x11   : > { %s228_s15 = sshll.u32 %s3321_s14, 4  ;;  %p3120_p11 = pneg %p3416_p10  ;;  %s229_s15 = int_to_ptr.vmem [resolvable:$true] %s228_s15 }
  0x12   : > { %p3226_p13 = scmp.ne.s32.totalorder %s4173_s5, %s3225_s19  ;;  %p3232_p3 = scmp.lt.u32.totalorder %s3225_s19, %s4173_s5 }
  0x13   : > { %p3424_p12 = pnand %p4176_p9, %p3120_p11 }
  0x15   : > { %p3227_p0 = pneg %p3424_p12 }
  0x17   : > { %p3228_p1 = pnand %p3227_p0, %p3226_p13 }
  0x19   : > { %p3229_p2 = pneg %p3228_p1 }
  0x1b   : > { %p3234_p4 = pnand %p3232_p3, %p3229_p2 }
  0x1d   : > { %3237 = shalt.err (!%p3234_p4)
}
  0x1e   : > { %s3238_s29 = scalar_lea.vmem %s229_s15, 1024  ;;  %p3246_p9 = scmp.lt.s32.totalorder %s229_s15, %s229_s15 }
  0x1f   : > { %p3239_p7 = scmp.ne.s32.totalorder %s229_s15, %s3238_s29  ;;  %p3247_p6 = scmp.lt.s32.totalorder %s3238_s29, %s3238_s29 }
  0x21   : > { %p3241_p8 = pnand %p3239_p7, %p3227_p0  ;;  %p3248_p5 = por %p3247_p6, %p3246_p9 }
  0x23   : > { %p3242_p11 = pneg %p3241_p8 }
  0x25   : > { %p3249_p10 = pnand %p3248_p5, %p3242_p11 }
  0x27   : > { %3252 = shalt.err (!%p3249_p10)
}
  0x28   : > { %s3322_s8 = smov 64   ;;  %s3323_s9 = smov 4  }
  0x29   : > { %3123 = dma.hbm_to_vmem [thread:$0]  (!%p3424_p12), %s4173_s5, 1024, %s229_s15, [#allocation3], %s3322_s8, %s3322_s8, %s3323_s9  }
  0x2a   : > { %p4183_p13 = scmp.ne.s32.totalorder %s4181_s13, 0 }
  0x2b   : > { %p4184_p1 = scmp.eq.s32.totalorder (!%p4183_p13), %s3388_s28, 0 }
  0x2c   : > { %256 = sbr.rel (%p4183_p13) target bundleno = 1460 (0x5b4), region = 48 }
  0x33   : > { %3298 = dma.done.wait (%p4184_p1), [#allocation3], 1024   ;;  %p4185_p0 = pmov %p4184_p1 }
  0x34   : > { %s2390_s18 = sshll.u32 %s3388_s28, 5  ;;  %v3168_v0 = vld [vmem:[%s4169_s1] sm:$0xff]   ;;  %vm423_vm0 = vcmask 130048   ;;  %v3186_v8 = vld [vmem:[%s4171_s3 + $0x8] sm:$0xff]   ;;  %v3187_v10 = vld [vmem:[%s4171_s3 + $0x10] sm:$0xff]   ;;  %s285_s14 = sand.u32 1, %s3311_s25  }
  0x35   : > { %3300 = vsyncadd (%p4185_p0), [#allocation3], 4294966272  ;;  %p289_p5 = scmp.lt.s32.totalorder %s2390_s18, 63  ;;  %2824 = vmatprep.subr.bf16.mxu0 %v3168_v0  ;;  %v3185_v7 = vld [vmem:[%s4171_s3] sm:$0xff]   ;;  %v3188_v11 = vld [vmem:[%s4171_s3 + $0x18] sm:$0xff]   ;;  %s2591_s20 = sshll.u32 %s3388_s28, 11 }
  0x36   : > { %2825 = vmatpush3.bf16.msra.mxu0 %v3168_v0  ;;  %2858 = vmatprep.subr.bf16.mxu1 %v3185_v7  ;;  %v3189_v14 = vld [vmem:[%s4171_s3 + $0x20] sm:$0xff]   ;;  %v3190_v15 = vld [vmem:[%s4171_s3 + $0x28] sm:$0xff]   ;;  %v3191_v23 = vld [vmem:[%s4171_s3 + $0x30] sm:$0xff]   ;;  %s4119_s13 = scalar_lea.hbm %s4175_s7, %s2591_s20  ;;  %s4127_s28 = scalar_lea.sflag [#allocation4], %s285_s14 }
  0x37   : > { %s4193_s18 = smov (!%p289_p5, %s2390_s18), 63  ;;  %2859 = vmatpush3.bf16.msra.mxu1 %v3185_v7  ;;  %v3192_v24 = vld [vmem:[%s4171_s3 + $0x38] sm:$0xff]   ;;  %v3193_v25 = vld [vmem:[%s4171_s3 + $0x40] sm:$0xff]   ;;  %v3194_v26 = vld [vmem:[%s4171_s3 + $0x48] sm:$0xff]   ;;  %p4186_p9 = scmp.ne.s32.totalorder %s4179_s11, 0 }
  0x38   : > { %s2391_s19 = sshll.u32 %s4193_s18, 2  ;;  %2860 = vmatprep.subr.bf16.mxu1 %v3186_v8  ;;  %2906 = vmatprep.subr.bf16.mxu0 %v3193_v25  ;;  %v3195_v27 = vld [vmem:[%s4171_s3 + $0x50] sm:$0xff]   ;;  %v3196_v28 = vld [vmem:[%s4171_s3 + $0x58] sm:$0xff]   ;;  %v3197_v29 = vld [vmem:[%s4171_s3 + $0x60] sm:$0xff]   ;;  %s2389_s18 = sshll.u32 %s285_s14, 7 }
  0x39   : > { %s3454_s21 = scalar_lea.vmem %s4168_s0, %s2391_s19  ;;  %v3198_v30 = vld [vmem:[%s4171_s3 + $0x68] sm:$0xff]   ;;  %v3199_v31 = vld [vmem:[%s4171_s3 + $0x70] sm:$0xff]   ;;  %v3539_v33 = vld [vmem:[%s4170_s2] ss:$0 sm:$0xff]  ;;  %s4070_s19 = scalar_lea.vmem [#allocation5], %s2389_s18 }
  0x3a   : > { %v3169_v1 = vld [vmem:[%s3454_s21] sm:$0xff]   ;;  %v3170_v2 = vld [vmem:[%s3454_s21 + $0x8] sm:$0xff]   ;;  %v3171_v3 = vld [vmem:[%s3454_s21 + $0x10] sm:$0xff]   ;;  %s2309_s16 = sshll.u32 %s4070_s19, 4  ;;  %s3324_s29 = smov [#allocation5]   ;;  %s4121_s16 = int_to_ptr.vmem [resolvable:$true] %s2309_s16 }
  0x3b   : > { %2826 = vmatprep.mubr.msk.bf16.mxu0 %vm423_vm0, %v3169_v1  ;;  %v3172_v4 = vld [vmem:[%s3454_s21 + $0x18] sm:$0xff]   ;;  %v3173_v5 = vld [vmem:[%s3454_s21 + $0x20] sm:$0xff]   ;;  %v3174_v6 = vld [vmem:[%s3454_s21 + $0x28] sm:$0xff]   ;;  %2861 = vmatpush3.bf16.msra.mxu1 %v3186_v8  ;;  %s3253_s23 = scalar_lea.vmem %s4121_s16, 2048  ;;  %s3257_s8 = sshll.u32 %s3324_s29, 4  ;;  %s3258_s8 = int_to_ptr.vmem [resolvable:$false] %s3257_s8 }
  0x3c   : > { %2827 = vmatmul.mubr.msk.bf16.vlgmr.msra.gmra.mrb[0].mxu0 %vm423_vm0, %v3170_v2  ;;  %v3175_v9 = vld [vmem:[%s3454_s21 + $0x30] sm:$0xff]   ;;  %v3176_v12 = vld [vmem:[%s3454_s21 + $0x38] sm:$0xff]   ;;  %v3177_v13 = vld [vmem:[%s3454_s21 + $0x40] sm:$0xff]   ;;  %2862 = vmatprep.subr.bf16.mxu1 %v3187_v10  ;;  %p3254_p6 = scmp.ne.s32.totalorder %s4121_s16, %s3253_s23  ;;  %s3259_s9 = scalar_lea.vmem %s3258_s8, 4096 }
  0x3d   : > { %2830 = vmatprep.mubr.msk.bf16.mxu0 %vm423_vm0, %v3171_v3  ;;  %v3178_v16 = vld [vmem:[%s3454_s21 + $0x48] sm:$0xff]   ;;  %v3179_v17 = vld [vmem:[%s3454_s21 + $0x50] sm:$0xff]   ;;  %v3180_v18 = vld [vmem:[%s3454_s21 + $0x58] sm:$0xff]   ;;  %2907 = vmatpush3.bf16.msra.mxu0 %v3193_v25  ;;  %p3260_p2 = scmp.lt.s32.totalorder %s4121_s16, %s3258_s8  ;;  %p3261_p3 = scmp.lt.s32.totalorder %s3259_s9, %s3253_s23 }
  0x3e   : > { %v3181_v19 = vld [vmem:[%s3454_s21 + $0x60] sm:$0xff]   ;;  %v3182_v20 = vld [vmem:[%s3454_s21 + $0x68] sm:$0xff]   ;;  %v3183_v21 = vld [vmem:[%s3454_s21 + $0x70] sm:$0xff]   ;;  %2908 = vmatprep.subr.bf16.mxu0 %v3194_v26  ;;  %p3255_p10 = pnand %p3254_p6, %p4186_p9 }
  0x3f   : > { %2863 = vmatpush3.bf16.msra.mxu1 %v3187_v10  ;;  %v3184_v22 = vld [vmem:[%s3454_s21 + $0x78] sm:$0xff]   ;;  %p3262_p4 = por %p3261_p3, %p3260_p2 }
  0x40   : > { %2864 = vmatprep.subr.bf16.mxu1 %v3188_v11  ;;  %p3256_p12 = pneg %p3255_p10 }
  0x41   : > { %2909 = vmatpush3.bf16.msra.mxu0 %v3194_v26 }
  0x42   : > { %2910 = vmatprep.subr.bf16.mxu0 %v3195_v27  ;;  %p3263_p7 = pnand %p3262_p4, %p3256_p12 }
  0x43   : > { %2865 = vmatpush3.bf16.msra.mxu1 %v3188_v11 }
  0x44   : > { %2831 = vmatmul.mubr.msk.bf16.gmra.mrb[4].mxu0 %vm423_vm0, %v3172_v4  ;;  %2866 = vmatprep.subr.bf16.mxu1 %v3189_v14 }
  0x45   : > { %2834 = vmatprep.mubr.msk.bf16.mxu0 %vm423_vm0, %v3173_v5  ;;  %2911 = vmatpush3.bf16.msra.mxu0 %v3195_v27 }
  0x46   : > { %2912 = vmatprep.subr.bf16.mxu0 %v3196_v28 }
  0x47   : > { %2867 = vmatpush3.bf16.msra.mxu1 %v3189_v14 }
  0x48   : > { %2868 = vmatprep.subr.bf16.mxu1 %v3190_v15 }
  0x49   : > { %2913 = vmatpush3.bf16.msra.mxu0 %v3196_v28 }
  0x4a   : > { %2914 = vmatprep.subr.bf16.mxu0 %v3197_v29 }
  0x4b   : > { %2869 = vmatpush3.bf16.msra.mxu1 %v3190_v15 }
  0x4c   : > { %2835 = vmatmul.mubr.msk.bf16.gmra.mrb[8].mxu0 %vm423_vm0, %v3174_v6  ;;  %2870 = vmatprep.subr.bf16.mxu1 %v3191_v23 }
  0x4d   : > { %2838 = vmatprep.mubr.msk.bf16.mxu0 %vm423_vm0, %v3175_v9  ;;  %2915 = vmatpush3.bf16.msra.mxu0 %v3197_v29 }
  0x4e   : > { %2916 = vmatprep.subr.bf16.mxu0 %v3198_v30 }
  0x4f   : > { %2871 = vmatpush3.bf16.msra.mxu1 %v3191_v23 }
  0x50   : > { %2872 = vmatprep.subr.bf16.mxu1 %v3192_v24 }
  0x51   : > { %2917 = vmatpush3.bf16.msra.mxu0 %v3198_v30 }
  0x52   : > { %2918 = vmatprep.subr.bf16.mxu0 %v3199_v31 }
  0x53   : > { %2873 = vmatpush3.bf16.msra.mxu1 %v3192_v24 }
  0x54   : > { %2839 = vmatmul.mubr.msk.bf16.gmra.mrb[12].mxu0 %vm423_vm0, %v3176_v12 }
  0x55   : > { %2842 = vmatprep.mubr.msk.bf16.mxu0 %vm423_vm0, %v3177_v13  ;;  %2919 = vmatpush3.bf16.msra.mxu0 %v3199_v31 }
  0x5c   : > { %2843 = vmatmul.mubr.msk.bf16.gmra.mrb[16].mxu0 %vm423_vm0, %v3178_v16 }
  0x5d   : > { %2846 = vmatprep.mubr.msk.bf16.mxu0 %vm423_vm0, %v3179_v17 }
  0x64   : > { %2847 = vmatmul.mubr.msk.bf16.gmra.mrb[20].mxu0 %vm423_vm0, %v3180_v18 }
  0x65   : > { %2850 = vmatprep.mubr.msk.bf16.mxu0 %vm423_vm0, %v3181_v19 }
  0x6c   : > { %2851 = vmatmul.mubr.msk.bf16.gmra.mrb[24].mxu0 %vm423_vm0, %v3182_v20 }
  0x6d   : > { %2854 = vmatprep.mubr.msk.bf16.mxu0 %vm423_vm0, %v3183_v21 }
  0x74   : > { %2855 = vmatmul.mubr.msk.bf16.gmra.mrb[28].mxu0 %vm423_vm0, %v3184_v22 }
 0x10f   : > { %v2828_v32 = vpop.f32.mrb[0].mxu0 }
 0x110   : > { %v506_v34 = vpop.f32.mrb[1].mxu0  ;;  %v3551_v40 = vadd.f32 %v2828_v32, %v3539_v33 }
 0x111   : > { %v2829_v35 = vpop.f32.mrb[2].mxu0  ;;  %v3545_v38 = vadd.f32 %v3539_v33, %v506_v34 }
 0x112   : > { %v3542_v36 = vadd.f32 %v2829_v35, %v3539_v33  ;;  %v509_v37 = vpop.f32.mrb[3].mxu0 }
 0x113   : > { %v3548_v39 = vadd.f32 %v3539_v33, %v509_v37 }
 0x114   : > { %v670_v42 = vpack.c.bf16 %v3542_v36, %v3551_v40 }
 0x115   : > { %v669_v41 = vpack.c.bf16 %v3548_v39, %v3545_v38 }
 0x117   : > { %v2832_v43 = vpop.f32.mrb[4].mxu0  ;;  %2874 = vmatprep.mubr.bf16.mxu1 %v669_v41 }
 0x118   : > { %v522_v44 = vpop.f32.mrb[5].mxu0  ;;  %2875 = vmatmul.mubr.bf16.vlgmr.msra.gmra.mrb[0].mxu1 %v670_v42  ;;  %v3567_v50 = vadd.f32 %v2832_v43, %v3539_v33 }
 0x119   : > { %v2833_v45 = vpop.f32.mrb[6].mxu0  ;;  %v3561_v48 = vadd.f32 %v3539_v33, %v522_v44 }
 0x11a   : > { %v3558_v46 = vadd.f32 %v2833_v45, %v3539_v33  ;;  %v525_v47 = vpop.f32.mrb[7].mxu0 }
 0x11b   : > { %v3564_v49 = vadd.f32 %v3539_v33, %v525_v47 }
 0x11c   : > { %v672_v52 = vpack.c.bf16 %v3558_v46, %v3567_v50 }
 0x11d   : > { %v671_v51 = vpack.c.bf16 %v3564_v49, %v3561_v48 }
 0x11f   : > { %v2836_v53 = vpop.f32.mrb[8].mxu0  ;;  %2878 = vmatprep.mubr.bf16.mxu1 %v671_v51 }
 0x120   : > { %v538_v54 = vpop.f32.mrb[9].mxu0  ;;  %2879 = vmatmul.mubr.bf16.gmra.mrb[4].mxu1 %v672_v52  ;;  %v3583_v60 = vadd.f32 %v2836_v53, %v3539_v33 }
 0x121   : > { %v2837_v55 = vpop.f32.mrb[10].mxu0  ;;  %v3577_v58 = vadd.f32 %v3539_v33, %v538_v54 }
 0x122   : > { %v3574_v56 = vadd.f32 %v2837_v55, %v3539_v33  ;;  %v541_v57 = vpop.f32.mrb[11].mxu0 }
 0x123   : > { %v3580_v59 = vadd.f32 %v3539_v33, %v541_v57 }
 0x124   : > { %v674_v62 = vpack.c.bf16 %v3574_v56, %v3583_v60 }
 0x125   : > { %v673_v61 = vpack.c.bf16 %v3580_v59, %v3577_v58 }
 0x127   : > { %v2840_v63 = vpop.f32.mrb[12].mxu0  ;;  %2882 = vmatprep.mubr.bf16.mxu1 %v673_v61 }
 0x128   : > { %v554_v0 = vpop.f32.mrb[13].mxu0  ;;  %2883 = vmatmul.mubr.bf16.gmra.mrb[8].mxu1 %v674_v62  ;;  %v3599_v6 = vadd.f32 %v2840_v63, %v3539_v33  ;;  %v3200_v62 = vld [vmem:[%s4171_s3 + $0x78] sm:$0xff]   ;;  %v3201_v63 = vld [vmem:[%s4171_s3 + $0x80] sm:$0xff]  }
 0x129   : > { %v2841_v1 = vpop.f32.mrb[14].mxu0  ;;  %v3593_v4 = vadd.f32 %v3539_v33, %v554_v0  ;;  %2920 = vmatprep.subr.bf16.mxu0 %v3200_v62  ;;  %2954 = vmatprep.subr.bf16.mxu1 %v3201_v63  ;;  %v3203_v0 = vld [vmem:[%s4171_s3 + $0x90] sm:$0xff]  }
 0x12a   : > { %v3590_v2 = vadd.f32 %v2841_v1, %v3539_v33  ;;  %v557_v3 = vpop.f32.mrb[15].mxu0  ;;  %2921 = vmatpush3.bf16.msra.mxu0 %v3200_v62  ;;  %2955 = vmatpush3.bf16.msra.mxu1 %v3201_v63  ;;  %v3204_v1 = vld [vmem:[%s4171_s3 + $0x98] sm:$0xff]  }
 0x12b   : > { %v3596_v5 = vadd.f32 %v3539_v33, %v557_v3  ;;  %v3205_v3 = vld [vmem:[%s4171_s3 + $0xa0] sm:$0xff]  }
 0x12c   : > { %v676_v8 = vpack.c.bf16 %v3590_v2, %v3599_v6 }
 0x12d   : > { %v675_v7 = vpack.c.bf16 %v3596_v5, %v3593_v4 }
 0x12f   : > { %v2844_v9 = vpop.f32.mrb[16].mxu0  ;;  %2886 = vmatprep.mubr.bf16.mxu1 %v675_v7  ;;  %v3206_v7 = vld [vmem:[%s4171_s3 + $0xa8] sm:$0xff]  }
 0x130   : > { %v570_v10 = vpop.f32.mrb[17].mxu0  ;;  %2887 = vmatmul.mubr.bf16.gmra.mrb[12].mxu1 %v676_v8  ;;  %v3615_v16 = vadd.f32 %v2844_v9, %v3539_v33  ;;  %v3207_v8 = vld [vmem:[%s4171_s3 + $0xb0] sm:$0xff]   ;;  %v3696_v9 = vld [vmem:[%s4172_s4] ss:$0 sm:$0xff] }
 0x131   : > { %v2845_v11 = vpop.f32.mrb[18].mxu0  ;;  %v3609_v14 = vadd.f32 %v3539_v33, %v570_v10 }
 0x132   : > { %v3606_v12 = vadd.f32 %v2845_v11, %v3539_v33  ;;  %v573_v13 = vpop.f32.mrb[19].mxu0 }
 0x133   : > { %v3612_v15 = vadd.f32 %v3539_v33, %v573_v13 }
 0x134   : > { %v678_v18 = vpack.c.bf16 %v3606_v12, %v3615_v16 }
 0x135   : > { %v677_v17 = vpack.c.bf16 %v3612_v15, %v3609_v14 }
 0x137   : > { %v2848_v19 = vpop.f32.mrb[20].mxu0  ;;  %2890 = vmatprep.mubr.bf16.mxu1 %v677_v17 }
 0x138   : > { %v586_v20 = vpop.f32.mrb[21].mxu0  ;;  %2891 = vmatmul.mubr.bf16.gmra.mrb[16].mxu1 %v678_v18  ;;  %v3631_v26 = vadd.f32 %v2848_v19, %v3539_v33 }
 0x139   : > { %v2849_v21 = vpop.f32.mrb[22].mxu0  ;;  %v3625_v24 = vadd.f32 %v3539_v33, %v586_v20 }
 0x13a   : > { %v3622_v22 = vadd.f32 %v2849_v21, %v3539_v33  ;;  %v589_v23 = vpop.f32.mrb[23].mxu0 }
 0x13b   : > { %v3628_v25 = vadd.f32 %v3539_v33, %v589_v23 }
 0x13c   : > { %v680_v28 = vpack.c.bf16 %v3622_v22, %v3631_v26 }
 0x13d   : > { %v679_v27 = vpack.c.bf16 %v3628_v25, %v3625_v24 }
 0x13f   : > { %v2852_v29 = vpop.f32.mrb[24].mxu0  ;;  %2894 = vmatprep.mubr.bf16.mxu1 %v679_v27 }
 0x140   : > { %v602_v30 = vpop.f32.mrb[25].mxu0  ;;  %2895 = vmatmul.mubr.bf16.gmra.mrb[20].mxu1 %v680_v28  ;;  %v3647_v41 = vadd.f32 %v2852_v29, %v3539_v33 }
 0x141   : > { %v2853_v31 = vpop.f32.mrb[26].mxu0  ;;  %v3641_v35 = vadd.f32 %v3539_v33, %v602_v30 }
 0x142   : > { %v3638_v32 = vadd.f32 %v2853_v31, %v3539_v33  ;;  %v605_v34 = vpop.f32.mrb[27].mxu0 }
 0x143   : > { %v3644_v37 = vadd.f32 %v3539_v33, %v605_v34 }
 0x144   : > { %v682_v43 = vpack.c.bf16 %v3638_v32, %v3647_v41 }
 0x145   : > { %v681_v42 = vpack.c.bf16 %v3644_v37, %v3641_v35 }
 0x147   : > { %v2856_v44 = vpop.f32.mrb[28].mxu0  ;;  %2898 = vmatprep.mubr.bf16.mxu1 %v681_v42 }
 0x148   : > { %v618_v45 = vpop.f32.mrb[29].mxu0  ;;  %2899 = vmatmul.mubr.bf16.gmra.mrb[24].mxu1 %v682_v43  ;;  %v3663_v55 = vadd.f32 %v2856_v44, %v3539_v33 }
 0x149   : > { %v2857_v47 = vpop.f32.mrb[30].mxu0  ;;  %v3657_v53 = vadd.f32 %v3539_v33, %v618_v45 }
 0x14a   : > { %v3654_v51 = vadd.f32 %v2857_v47, %v3539_v33  ;;  %v621_v52 = vpop.f32.mrb[31].mxu0 }
 0x14b   : > { %v3660_v54 = vadd.f32 %v3539_v33, %v621_v52  ;;  %v3202_v33 = vld [vmem:[%s4171_s3 + $0x88] sm:$0xff]  }
 0x14c   : > { %v684_v61 = vpack.c.bf16 %v3654_v51, %v3663_v55  ;;  %2956 = vmatprep.subr.bf16.mxu1 %v3202_v33 }
 0x14d   : > { %v683_v57 = vpack.c.bf16 %v3660_v54, %v3657_v53  ;;  %2957 = vmatpush3.bf16.msra.mxu1 %v3202_v33 }
 0x14e   : > { %2958 = vmatprep.subr.bf16.mxu1 %v3203_v0 }
 0x14f   : > { %2902 = vmatprep.mubr.bf16.mxu1 %v683_v57 }
 0x150   : > { %2903 = vmatmul.mubr.bf16.gmra.mrb[28].mxu1 %v684_v61 }
 0x151   : > { %2959 = vmatpush3.bf16.msra.mxu1 %v3203_v0 }
 0x152   : > { %2960 = vmatprep.subr.bf16.mxu1 %v3204_v1 }
 0x155   : > { %2961 = vmatpush3.bf16.msra.mxu1 %v3204_v1 }
 0x156   : > { %2962 = vmatprep.subr.bf16.mxu1 %v3205_v3 }
 0x159   : > { %2963 = vmatpush3.bf16.msra.mxu1 %v3205_v3 }
 0x15a   : > { %2964 = vmatprep.subr.bf16.mxu1 %v3206_v7 }
 0x15d   : > { %2965 = vmatpush3.bf16.msra.mxu1 %v3206_v7 }
 0x15e   : > { %2966 = vmatprep.subr.bf16.mxu1 %v3207_v8 }
 0x161   : > { %2967 = vmatpush3.bf16.msra.mxu1 %v3207_v8 }
 0x1eb   : > { %v2876_v10 = vpop.f32.mrb[0].mxu1 }
 0x1ec   : > { %v782_v11 = vadd.f32 %v2876_v10, %v3696_v9  ;;  %v773_v13 = vpop.f32.mrb[1].mxu1 }
 0x1ed   : > { %v774_v17 = vadd.f32 %v3696_v9, %v773_v13  ;;  %v2877_v18 = vpop.f32.mrb[2].mxu1 }
 0x1ee   : > { %v934_v19 = vmul.f32 0.01, %v782_v11  ;;  %v785_v20 = vadd.f32 %v2877_v18, %v3696_v9  ;;  %v776_v21 = vpop.f32.mrb[3].mxu1  ;;  %vm902_vm1 = vcmp.gt.f32.partialorder %v782_v11, 0.0 }
 0x1ef   : > { %v932_v23 = vmul.f32 0.01, %v774_v17  ;;  %v777_v27 = vadd.f32 %v3696_v9, %v776_v21  ;;  %vm900_vm2 = vcmp.gt.f32.partialorder %v774_v17, 0.0 }
 0x1f0   : > { %vm903_vm3 = vcmp.gt.f32.partialorder %v785_v20, 0.0  ;;  %v935_v28 = vmul.f32 0.01, %v785_v20  ;;  %v966_v30 = vsel %vm902_vm1, %v782_v11, %v934_v19 }
 0x1f1   : > { %vm901_vm4 = vcmp.gt.f32.partialorder %v777_v27, 0.0  ;;  %v933_v29 = vmul.f32 0.01, %v777_v27  ;;  %v964_v43 = vsel %vm900_vm2, %v774_v17, %v932_v23 }
 0x1f2   : > { %v967_v31 = vsel %vm903_vm3, %v785_v20, %v935_v28 }
 0x1f3   : > { %v997_v34 = vpack.c.bf16 %v967_v31, %v966_v30  ;;  %v2880_v42 = vpop.f32.mrb[4].mxu1  ;;  %v965_v44 = vsel %vm901_vm4, %v777_v27, %v933_v29 }
 0x1f4   : > { %v798_v45 = vadd.f32 %v2880_v42, %v3696_v9  ;;  %v789_v47 = vpop.f32.mrb[5].mxu1  ;;  %v996_v52 = vpack.c.bf16 %v965_v44, %v964_v43 }
 0x1f5   : > { %v790_v57 = vadd.f32 %v3696_v9, %v789_v47  ;;  %v2881_v61 = vpop.f32.mrb[6].mxu1 }
 0x1f6   : > { %v938_v62 = vmul.f32 0.01, %v798_v45  ;;  %v801_v63 = vadd.f32 %v2881_v61, %v3696_v9  ;;  %v792_v33 = vpop.f32.mrb[7].mxu1  ;;  %2922 = vmatprep.mubr.bf16.mxu0 %v996_v52  ;;  %vm906_vm5 = vcmp.gt.f32.partialorder %v798_v45, 0.0 }
 0x1f7   : > { %v936_v0 = vmul.f32 0.01, %v790_v57  ;;  %v793_v1 = vadd.f32 %v3696_v9, %v792_v33  ;;  %2923 = vmatmul.mubr.bf16.vlgmr.msra.gmra.mrb[32].mxu0 %v997_v34  ;;  %vm904_vm6 = vcmp.gt.f32.partialorder %v790_v57, 0.0 }
 0x1f8   : > { %vm907_vm7 = vcmp.gt.f32.partialorder %v801_v63, 0.0  ;;  %v939_v3 = vmul.f32 0.01, %v801_v63  ;;  %v970_v8 = vsel %vm906_vm5, %v798_v45, %v938_v62 }
 0x1f9   : > { %vm905_vm8 = vcmp.gt.f32.partialorder %v793_v1, 0.0  ;;  %v937_v7 = vmul.f32 0.01, %v793_v1  ;;  %v968_v13 = vsel %vm904_vm6, %v790_v57, %v936_v0 }
 0x1fa   : > { %v971_v10 = vsel %vm907_vm7, %v801_v63, %v939_v3 }
 0x1fb   : > { %v2884_v11 = vpop.f32.mrb[8].mxu1  ;;  %v969_v17 = vsel %vm905_vm8, %v793_v1, %v937_v7  ;;  %v999_v18 = vpack.c.bf16 %v971_v10, %v970_v8 }
 0x1fc   : > { %v814_v19 = vadd.f32 %v2884_v11, %v3696_v9  ;;  %v805_v20 = vpop.f32.mrb[9].mxu1  ;;  %v998_v21 = vpack.c.bf16 %v969_v17, %v968_v13 }
 0x1fd   : > { %v806_v23 = vadd.f32 %v3696_v9, %v805_v20  ;;  %v2885_v27 = vpop.f32.mrb[10].mxu1 }
 0x1fe   : > { %v942_v28 = vmul.f32 0.01, %v814_v19  ;;  %v817_v29 = vadd.f32 %v2885_v27, %v3696_v9  ;;  %v808_v30 = vpop.f32.mrb[11].mxu1  ;;  %2926 = vmatprep.mubr.bf16.mxu0 %v998_v21  ;;  %vm910_vm9 = vcmp.gt.f32.partialorder %v814_v19, 0.0 }
 0x1ff   : > { %v940_v31 = vmul.f32 0.01, %v806_v23  ;;  %v809_v34 = vadd.f32 %v3696_v9, %v808_v30  ;;  %2927 = vmatmul.mubr.bf16.gmra.mrb[36].mxu0 %v999_v18  ;;  %vm908_vm10 = vcmp.gt.f32.partialorder %v806_v23, 0.0 }
 0x200   : > { %vm911_vm11 = vcmp.gt.f32.partialorder %v817_v29, 0.0  ;;  %v943_v42 = vmul.f32 0.01, %v817_v29  ;;  %v974_v44 = vsel %vm910_vm9, %v814_v19, %v942_v28 }
 0x201   : > { %vm909_vm12 = vcmp.gt.f32.partialorder %v809_v34, 0.0  ;;  %v941_v43 = vmul.f32 0.01, %v809_v34  ;;  %v972_v52 = vsel %vm908_vm10, %v806_v23, %v940_v31 }
 0x202   : > { %v975_v45 = vsel %vm911_vm11, %v817_v29, %v943_v42 }
 0x203   : > { %v2888_v47 = vpop.f32.mrb[12].mxu1  ;;  %v973_v57 = vsel %vm909_vm12, %v809_v34, %v941_v43  ;;  %v1001_v61 = vpack.c.bf16 %v975_v45, %v974_v44 }
 0x204   : > { %v830_v62 = vadd.f32 %v2888_v47, %v3696_v9  ;;  %v821_v63 = vpop.f32.mrb[13].mxu1  ;;  %v1000_v33 = vpack.c.bf16 %v973_v57, %v972_v52 }
 0x205   : > { %v822_v0 = vadd.f32 %v3696_v9, %v821_v63  ;;  %v2889_v1 = vpop.f32.mrb[14].mxu1 }
 0x206   : > { %v946_v3 = vmul.f32 0.01, %v830_v62  ;;  %v833_v7 = vadd.f32 %v2889_v1, %v3696_v9  ;;  %v824_v8 = vpop.f32.mrb[15].mxu1  ;;  %2930 = vmatprep.mubr.bf16.mxu0 %v1000_v33  ;;  %vm914_vm13 = vcmp.gt.f32.partialorder %v830_v62, 0.0 }
 0x207   : > { %v944_v10 = vmul.f32 0.01, %v822_v0  ;;  %v825_v11 = vadd.f32 %v3696_v9, %v824_v8  ;;  %2931 = vmatmul.mubr.bf16.gmra.mrb[40].mxu0 %v1001_v61  ;;  %vm912_vm14 = vcmp.gt.f32.partialorder %v822_v0, 0.0 }
 0x208   : > { %vm915_vm15 = vcmp.gt.f32.partialorder %v833_v7, 0.0  ;;  %v947_v13 = vmul.f32 0.01, %v833_v7  ;;  %v978_v18 = vsel %vm914_vm13, %v830_v62, %v946_v3 }
 0x209   : > { %vm913_vm0 = vcmp.gt.f32.partialorder %v825_v11, 0.0  ;;  %v945_v17 = vmul.f32 0.01, %v825_v11  ;;  %v976_v21 = vsel %vm912_vm14, %v822_v0, %v944_v10 }
 0x20a   : > { %v979_v19 = vsel %vm915_vm15, %v833_v7, %v947_v13 }
 0x20b   : > { %v2892_v20 = vpop.f32.mrb[16].mxu1  ;;  %v977_v23 = vsel %vm913_vm0, %v825_v11, %v945_v17  ;;  %v1003_v27 = vpack.c.bf16 %v979_v19, %v978_v18 }
 0x20c   : > { %v846_v28 = vadd.f32 %v2892_v20, %v3696_v9  ;;  %v837_v29 = vpop.f32.mrb[17].mxu1  ;;  %v1002_v30 = vpack.c.bf16 %v977_v23, %v976_v21 }
 0x20d   : > { %v838_v31 = vadd.f32 %v3696_v9, %v837_v29  ;;  %v2893_v34 = vpop.f32.mrb[18].mxu1 }
 0x20e   : > { %v950_v42 = vmul.f32 0.01, %v846_v28  ;;  %v849_v43 = vadd.f32 %v2893_v34, %v3696_v9  ;;  %v840_v44 = vpop.f32.mrb[19].mxu1  ;;  %2934 = vmatprep.mubr.bf16.mxu0 %v1002_v30  ;;  %vm918_vm1 = vcmp.gt.f32.partialorder %v846_v28, 0.0 }
 0x20f   : > { %v948_v45 = vmul.f32 0.01, %v838_v31  ;;  %v841_v47 = vadd.f32 %v3696_v9, %v840_v44  ;;  %2935 = vmatmul.mubr.bf16.gmra.mrb[44].mxu0 %v1003_v27  ;;  %vm916_vm2 = vcmp.gt.f32.partialorder %v838_v31, 0.0 }
 0x210   : > { %vm919_vm3 = vcmp.gt.f32.partialorder %v849_v43, 0.0  ;;  %v951_v52 = vmul.f32 0.01, %v849_v43  ;;  %v982_v61 = vsel %vm918_vm1, %v846_v28, %v950_v42 }
 0x211   : > { %vm917_vm4 = vcmp.gt.f32.partialorder %v841_v47, 0.0  ;;  %v949_v57 = vmul.f32 0.01, %v841_v47  ;;  %v980_v33 = vsel %vm916_vm2, %v838_v31, %v948_v45 }
 0x212   : > { %v983_v62 = vsel %vm919_vm3, %v849_v43, %v951_v52 }
 0x213   : > { %v2896_v63 = vpop.f32.mrb[20].mxu1  ;;  %v981_v0 = vsel %vm917_vm4, %v841_v47, %v949_v57  ;;  %v1005_v1 = vpack.c.bf16 %v983_v62, %v982_v61 }
 0x214   : > { %v862_v3 = vadd.f32 %v2896_v63, %v3696_v9  ;;  %v853_v7 = vpop.f32.mrb[21].mxu1  ;;  %v1004_v8 = vpack.c.bf16 %v981_v0, %v980_v33 }
 0x215   : > { %v854_v10 = vadd.f32 %v3696_v9, %v853_v7  ;;  %v2897_v11 = vpop.f32.mrb[22].mxu1 }
 0x216   : > { %v954_v13 = vmul.f32 0.01, %v862_v3  ;;  %v865_v17 = vadd.f32 %v2897_v11, %v3696_v9  ;;  %v856_v18 = vpop.f32.mrb[23].mxu1  ;;  %2938 = vmatprep.mubr.bf16.mxu0 %v1004_v8  ;;  %vm922_vm5 = vcmp.gt.f32.partialorder %v862_v3, 0.0 }
 0x217   : > { %v952_v19 = vmul.f32 0.01, %v854_v10  ;;  %v857_v20 = vadd.f32 %v3696_v9, %v856_v18  ;;  %2939 = vmatmul.mubr.bf16.gmra.mrb[48].mxu0 %v1005_v1  ;;  %vm920_vm6 = vcmp.gt.f32.partialorder %v854_v10, 0.0 }
 0x218   : > { %vm923_vm7 = vcmp.gt.f32.partialorder %v865_v17, 0.0  ;;  %v955_v21 = vmul.f32 0.01, %v865_v17  ;;  %v986_v27 = vsel %vm922_vm5, %v862_v3, %v954_v13 }
 0x219   : > { %vm921_vm8 = vcmp.gt.f32.partialorder %v857_v20, 0.0  ;;  %v953_v23 = vmul.f32 0.01, %v857_v20  ;;  %v984_v30 = vsel %vm920_vm6, %v854_v10, %v952_v19 }
 0x21a   : > { %v987_v28 = vsel %vm923_vm7, %v865_v17, %v955_v21 }
 0x21b   : > { %v2900_v29 = vpop.f32.mrb[24].mxu1  ;;  %v985_v31 = vsel %vm921_vm8, %v857_v20, %v953_v23  ;;  %v1007_v34 = vpack.c.bf16 %v987_v28, %v986_v27 }
 0x21c   : > { %v878_v42 = vadd.f32 %v2900_v29, %v3696_v9  ;;  %v869_v43 = vpop.f32.mrb[25].mxu1  ;;  %v1006_v44 = vpack.c.bf16 %v985_v31, %v984_v30 }
 0x21d   : > { %v870_v45 = vadd.f32 %v3696_v9, %v869_v43  ;;  %v2901_v47 = vpop.f32.mrb[26].mxu1 }
 0x21e   : > { %v958_v52 = vmul.f32 0.01, %v878_v42  ;;  %v881_v57 = vadd.f32 %v2901_v47, %v3696_v9  ;;  %v872_v61 = vpop.f32.mrb[27].mxu1  ;;  %2942 = vmatprep.mubr.bf16.mxu0 %v1006_v44  ;;  %vm926_vm9 = vcmp.gt.f32.partialorder %v878_v42, 0.0 }
 0x21f   : > { %v956_v62 = vmul.f32 0.01, %v870_v45  ;;  %v873_v63 = vadd.f32 %v3696_v9, %v872_v61  ;;  %2943 = vmatmul.mubr.bf16.gmra.mrb[52].mxu0 %v1007_v34  ;;  %vm924_vm10 = vcmp.gt.f32.partialorder %v870_v45, 0.0  ;;  %v3211_v61 = vld [vmem:[%s4171_s3 + $0xd0] sm:$0xff]  }
 0x220   : > { %vm927_vm11 = vcmp.gt.f32.partialorder %v881_v57, 0.0  ;;  %v959_v33 = vmul.f32 0.01, %v881_v57  ;;  %v990_v1 = vsel %vm926_vm9, %v878_v42, %v958_v52  ;;  %v3208_v52 = vld [vmem:[%s4171_s3 + $0xb8] sm:$0xff]  }
 0x221   : > { %vm925_vm12 = vcmp.gt.f32.partialorder %v873_v63, 0.0  ;;  %v957_v0 = vmul.f32 0.01, %v873_v63  ;;  %v988_v8 = vsel %vm924_vm10, %v870_v45, %v956_v62  ;;  %2968 = vmatprep.subr.bf16.mxu1 %v3208_v52  ;;  %v3212_v62 = vld [vmem:[%s4171_s3 + $0xd8] sm:$0xff]  }
 0x222   : > { %v991_v3 = vsel %vm927_vm11, %v881_v57, %v959_v33  ;;  %2969 = vmatpush3.bf16.msra.mxu1 %v3208_v52  ;;  %v3210_v57 = vld [vmem:[%s4171_s3 + $0xc8] sm:$0xff]  }
 0x223   : > { %v2904_v7 = vpop.f32.mrb[28].mxu1  ;;  %v989_v10 = vsel %vm925_vm12, %v873_v63, %v957_v0  ;;  %v1009_v11 = vpack.c.bf16 %v991_v3, %v990_v1  ;;  %v3213_v63 = vld [vmem:[%s4171_s3 + $0xe0] sm:$0xff]   ;;  %v3214_v33 = vld [vmem:[%s4171_s3 + $0xe8] sm:$0xff]   ;;  %v3215_v0 = vld [vmem:[%s4171_s3 + $0xf0] sm:$0xff]  }
 0x224   : > { %v894_v13 = vadd.f32 %v2904_v7, %v3696_v9  ;;  %v885_v17 = vpop.f32.mrb[29].mxu1  ;;  %v1008_v18 = vpack.c.bf16 %v989_v10, %v988_v8  ;;  %v3757_v1 = vld [vmem:[%s4172_s4 + $0x1] ss:$0 sm:$0xff] }
 0x225   : > { %v886_v19 = vadd.f32 %v3696_v9, %v885_v17  ;;  %v2905_v20 = vpop.f32.mrb[30].mxu1 }
 0x226   : > { %v962_v21 = vmul.f32 0.01, %v894_v13  ;;  %v897_v23 = vadd.f32 %v2905_v20, %v3696_v9  ;;  %v888_v27 = vpop.f32.mrb[31].mxu1  ;;  %2946 = vmatprep.mubr.bf16.mxu0 %v1008_v18  ;;  %vm930_vm13 = vcmp.gt.f32.partialorder %v894_v13, 0.0 }
 0x227   : > { %v960_v28 = vmul.f32 0.01, %v886_v19  ;;  %v889_v29 = vadd.f32 %v3696_v9, %v888_v27  ;;  %2947 = vmatmul.mubr.bf16.gmra.mrb[56].mxu0 %v1009_v11  ;;  %vm928_vm14 = vcmp.gt.f32.partialorder %v886_v19, 0.0  ;;  %v3209_v9 = vld [vmem:[%s4171_s3 + $0xc0] sm:$0xff]  }
 0x228   : > { %vm931_vm15 = vcmp.gt.f32.partialorder %v897_v23, 0.0  ;;  %v963_v30 = vmul.f32 0.01, %v897_v23  ;;  %v994_v34 = vsel %vm930_vm13, %v894_v13, %v962_v21  ;;  %3002 = vmatprep.subr.bf16.mxu0 %v3209_v9 }
 0x229   : > { %vm929_vm0 = vcmp.gt.f32.partialorder %v889_v29, 0.0  ;;  %v961_v31 = vmul.f32 0.01, %v889_v29  ;;  %v992_v43 = vsel %vm928_vm14, %v886_v19, %v960_v28  ;;  %3003 = vmatpush3.bf16.msra.mxu0 %v3209_v9 }
 0x22a   : > { %v995_v42 = vsel %vm931_vm15, %v897_v23, %v963_v30  ;;  %3004 = vmatprep.subr.bf16.mxu0 %v3210_v57 }
 0x22b   : > { %v993_v44 = vsel %vm929_vm0, %v889_v29, %v961_v31  ;;  %v1011_v45 = vpack.c.bf16 %v995_v42, %v994_v34 }
 0x22c   : > { %v1010_v47 = vpack.c.bf16 %v993_v44, %v992_v43 }
 0x22d   : > { %3005 = vmatpush3.bf16.msra.mxu0 %v3210_v57 }
 0x22e   : > { %2950 = vmatprep.mubr.bf16.mxu0 %v1010_v47  ;;  %3006 = vmatprep.subr.bf16.mxu0 %v3211_v61 }
 0x22f   : > { %2951 = vmatmul.mubr.bf16.gmra.mrb[60].mxu0 %v1011_v45 }
 0x231   : > { %3007 = vmatpush3.bf16.msra.mxu0 %v3211_v61 }
 0x232   : > { %3008 = vmatprep.subr.bf16.mxu0 %v3212_v62 }
 0x235   : > { %3009 = vmatpush3.bf16.msra.mxu0 %v3212_v62 }
 0x236   : > { %3010 = vmatprep.subr.bf16.mxu0 %v3213_v63 }
 0x239   : > { %3011 = vmatpush3.bf16.msra.mxu0 %v3213_v63 }
 0x23a   : > { %3012 = vmatprep.subr.bf16.mxu0 %v3214_v33 }
 0x23d   : > { %3013 = vmatpush3.bf16.msra.mxu0 %v3214_v33 }
 0x23e   : > { %3014 = vmatprep.subr.bf16.mxu0 %v3215_v0 }
 0x241   : > { %3015 = vmatpush3.bf16.msra.mxu0 %v3215_v0 }
 0x2ca   : > { %v2924_v3 = vpop.f32.mrb[32].mxu0 }
 0x2cb   : > { %v1100_v7 = vpop.f32.mrb[33].mxu0  ;;  %v1109_v11 = vadd.f32 %v2924_v3, %v3757_v1 }
 0x2cc   : > { %v1101_v8 = vadd.f32 %v3757_v1, %v1100_v7  ;;  %v2925_v10 = vpop.f32.mrb[34].mxu0 }
 0x2cd   : > { %v1112_v13 = vadd.f32 %v2925_v10, %v3757_v1  ;;  %v1103_v17 = vpop.f32.mrb[35].mxu0  ;;  %v3773_v23 = vadd.f32 %v1109_v11, %v3551_v40 }
 0x2ce   : > { %v1104_v18 = vadd.f32 %v3757_v1, %v1103_v17  ;;  %v3767_v20 = vadd.f32 %v1101_v8, %v3545_v38 }
 0x2cf   : > { %v3764_v19 = vadd.f32 %v1112_v13, %v3542_v36 }
 0x2d0   : > { %v3770_v21 = vadd.f32 %v1104_v18, %v3548_v39 }
 0x2d1   : > { %v1298_v29 = vpack.c.bf16 %v3764_v19, %v3773_v23 }
 0x2d2   : > { %v2928_v27 = vpop.f32.mrb[36].mxu0  ;;  %v1297_v28 = vpack.c.bf16 %v3770_v21, %v3767_v20 }
 0x2d3   : > { %v1116_v30 = vpop.f32.mrb[37].mxu0  ;;  %v1125_v38 = vadd.f32 %v2928_v27, %v3757_v1 }
 0x2d4   : > { %v1117_v36 = vadd.f32 %v3757_v1, %v1116_v30  ;;  %v2929_v31 = vpop.f32.mrb[38].mxu0  ;;  %2970 = vmatprep.mubr.bf16.mxu1 %v1297_v28 }
 0x2d5   : > { %v1128_v39 = vadd.f32 %v2929_v31, %v3757_v1  ;;  %v1119_v34 = vpop.f32.mrb[39].mxu0  ;;  %2971 = vmatmul.mubr.bf16.vlgmr.msra.gmra.mrb[32].mxu1 %v1298_v29  ;;  %v3793_v45 = vadd.f32 %v1125_v38, %v3567_v50 }
 0x2d6   : > { %v1120_v40 = vadd.f32 %v3757_v1, %v1119_v34  ;;  %v3787_v43 = vadd.f32 %v1117_v36, %v3561_v48 }
 0x2d7   : > { %v3784_v42 = vadd.f32 %v1128_v39, %v3558_v46 }
 0x2d8   : > { %v3790_v44 = vadd.f32 %v1120_v40, %v3564_v49 }
 0x2d9   : > { %v1300_v57 = vpack.c.bf16 %v3784_v42, %v3793_v45 }
 0x2da   : > { %v2932_v47 = vpop.f32.mrb[40].mxu0  ;;  %v1299_v52 = vpack.c.bf16 %v3790_v44, %v3787_v43 }
 0x2db   : > { %v1132_v9 = vpop.f32.mrb[41].mxu0  ;;  %v1141_v48 = vadd.f32 %v2932_v47, %v3757_v1 }
 0x2dc   : > { %v1133_v46 = vadd.f32 %v3757_v1, %v1132_v9  ;;  %v2933_v61 = vpop.f32.mrb[42].mxu0  ;;  %2974 = vmatprep.mubr.bf16.mxu1 %v1299_v52 }
 0x2dd   : > { %v1144_v49 = vadd.f32 %v2933_v61, %v3757_v1  ;;  %v1135_v62 = vpop.f32.mrb[43].mxu0  ;;  %2975 = vmatmul.mubr.bf16.gmra.mrb[36].mxu1 %v1300_v57  ;;  %v3813_v3 = vadd.f32 %v1141_v48, %v3583_v60 }
 0x2de   : > { %v1136_v50 = vadd.f32 %v3757_v1, %v1135_v62  ;;  %v3807_v33 = vadd.f32 %v1133_v46, %v3577_v58 }
 0x2df   : > { %v3804_v63 = vadd.f32 %v1144_v49, %v3574_v56 }
 0x2e0   : > { %v3810_v0 = vadd.f32 %v1136_v50, %v3580_v59 }
 0x2e1   : > { %v1302_v11 = vpack.c.bf16 %v3804_v63, %v3813_v3 }
 0x2e2   : > { %v2936_v7 = vpop.f32.mrb[44].mxu0  ;;  %v1301_v8 = vpack.c.bf16 %v3810_v0, %v3807_v33 }
 0x2e3   : > { %v1148_v10 = vpop.f32.mrb[45].mxu0  ;;  %v1157_v58 = vadd.f32 %v2936_v7, %v3757_v1 }
 0x2e4   : > { %v1149_v56 = vadd.f32 %v3757_v1, %v1148_v10  ;;  %v2937_v13 = vpop.f32.mrb[46].mxu0  ;;  %2978 = vmatprep.mubr.bf16.mxu1 %v1301_v8 }
 0x2e5   : > { %v1160_v59 = vadd.f32 %v2937_v13, %v3757_v1  ;;  %v1151_v17 = vpop.f32.mrb[47].mxu0  ;;  %2979 = vmatmul.mubr.bf16.gmra.mrb[40].mxu1 %v1302_v11  ;;  %v3833_v29 = vadd.f32 %v1157_v58, %v3599_v6 }
 0x2e6   : > { %v1152_v60 = vadd.f32 %v3757_v1, %v1151_v17  ;;  %v3827_v27 = vadd.f32 %v1149_v56, %v3593_v4 }
 0x2e7   : > { %v3824_v18 = vadd.f32 %v1160_v59, %v3590_v2 }
 0x2e8   : > { %v3830_v28 = vadd.f32 %v1152_v60, %v3596_v5 }
 0x2e9   : > { %v1304_v38 = vpack.c.bf16 %v3824_v18, %v3833_v29 }
 0x2ea   : > { %v2940_v30 = vpop.f32.mrb[48].mxu0  ;;  %v1303_v36 = vpack.c.bf16 %v3830_v28, %v3827_v27 }
 0x2eb   : > { %v1164_v31 = vpop.f32.mrb[49].mxu0  ;;  %v1173_v4 = vadd.f32 %v2940_v30, %v3757_v1 }
 0x2ec   : > { %v1165_v2 = vadd.f32 %v3757_v1, %v1164_v31  ;;  %v2941_v39 = vpop.f32.mrb[50].mxu0  ;;  %2982 = vmatprep.mubr.bf16.mxu1 %v1303_v36 }
 0x2ed   : > { %v1176_v5 = vadd.f32 %v2941_v39, %v3757_v1  ;;  %v1167_v34 = vpop.f32.mrb[51].mxu0  ;;  %2983 = vmatmul.mubr.bf16.gmra.mrb[44].mxu1 %v1304_v38  ;;  %v3853_v9 = vadd.f32 %v1173_v4, %v3615_v16 }
 0x2ee   : > { %v1168_v6 = vadd.f32 %v3757_v1, %v1167_v34  ;;  %v3847_v47 = vadd.f32 %v1165_v2, %v3609_v14 }
 0x2ef   : > { %v3844_v40 = vadd.f32 %v1176_v5, %v3606_v12 }
 0x2f0   : > { %v3850_v52 = vadd.f32 %v1168_v6, %v3612_v15 }
 0x2f1   : > { %v1306_v48 = vpack.c.bf16 %v3844_v40, %v3853_v9 }
 0x2f2   : > { %v2944_v57 = vpop.f32.mrb[52].mxu0  ;;  %v1305_v46 = vpack.c.bf16 %v3850_v52, %v3847_v47 }
 0x2f3   : > { %v1180_v61 = vpop.f32.mrb[53].mxu0  ;;  %v1189_v14 = vadd.f32 %v2944_v57, %v3757_v1 }
 0x2f4   : > { %v1181_v12 = vadd.f32 %v3757_v1, %v1180_v61  ;;  %v2945_v49 = vpop.f32.mrb[54].mxu0  ;;  %2986 = vmatprep.mubr.bf16.mxu1 %v1305_v46 }
 0x2f5   : > { %v1192_v15 = vadd.f32 %v2945_v49, %v3757_v1  ;;  %v1183_v62 = vpop.f32.mrb[55].mxu0  ;;  %2987 = vmatmul.mubr.bf16.gmra.mrb[48].mxu1 %v1306_v48  ;;  %v3873_v10 = vadd.f32 %v1189_v14, %v3631_v26  ;;  %v3933_v49 = vld [vmem:[#allocation2 + $0x20] sm:$0xff]   ;;  %v3937_v14 = vld [vmem:[#allocation2 + $0x28] sm:$0xff]  }
 0x2f6   : > { %v1184_v16 = vadd.f32 %v3757_v1, %v1183_v62  ;;  %v3867_v7 = vadd.f32 %v1181_v12, %v3625_v24 }
 0x2f7   : > { %v3864_v50 = vadd.f32 %v1192_v15, %v3622_v22  ;;  %v3945_v15 = vld [vmem:[%s4172_s4 + $0x2] ss:$0 sm:$0xff] }
 0x2f8   : > { %v3870_v8 = vadd.f32 %v1184_v16, %v3628_v25 }
 0x2f9   : > { %v1308_v58 = vpack.c.bf16 %v3864_v50, %v3873_v10 }
 0x2fa   : > { %v2948_v11 = vpop.f32.mrb[56].mxu0  ;;  %v1307_v56 = vpack.c.bf16 %v3870_v8, %v3867_v7 }
 0x2fb   : > { %v1196_v13 = vpop.f32.mrb[57].mxu0  ;;  %v1205_v24 = vadd.f32 %v2948_v11, %v3757_v1 }
 0x2fc   : > { %v1197_v22 = vadd.f32 %v3757_v1, %v1196_v13  ;;  %v2949_v59 = vpop.f32.mrb[58].mxu0  ;;  %2990 = vmatprep.mubr.bf16.mxu1 %v1307_v56 }
 0x2fd   : > { %v1208_v25 = vadd.f32 %v2949_v59, %v3757_v1  ;;  %v1199_v17 = vpop.f32.mrb[59].mxu0  ;;  %2991 = vmatmul.mubr.bf16.gmra.mrb[52].mxu1 %v1308_v58  ;;  %v3893_v31 = vadd.f32 %v1205_v24, %v3647_v41 }
 0x2fe   : > { %v1200_v26 = vadd.f32 %v3757_v1, %v1199_v17  ;;  %v3887_v30 = vadd.f32 %v1197_v22, %v3641_v35 }
 0x2ff   : > { %v3884_v60 = vadd.f32 %v1208_v25, %v3638_v32 }
 0x300   : > { %v3890_v36 = vadd.f32 %v1200_v26, %v3644_v37 }
 0x301   : > { %v1310_v4 = vpack.c.bf16 %v3884_v60, %v3893_v31 }
 0x302   : > { %v2952_v38 = vpop.f32.mrb[60].mxu0  ;;  %v1309_v2 = vpack.c.bf16 %v3890_v36, %v3887_v30 }
 0x303   : > { %v1212_v39 = vpop.f32.mrb[61].mxu0  ;;  %v1221_v35 = vadd.f32 %v2952_v38, %v3757_v1 }
 0x304   : > { %v1213_v32 = vadd.f32 %v3757_v1, %v1212_v39  ;;  %v2953_v5 = vpop.f32.mrb[62].mxu0  ;;  %2994 = vmatprep.mubr.bf16.mxu1 %v1309_v2 }
 0x305   : > { %v1224_v37 = vadd.f32 %v2953_v5, %v3757_v1  ;;  %v1215_v34 = vpop.f32.mrb[63].mxu0  ;;  %2995 = vmatmul.mubr.bf16.gmra.mrb[56].mxu1 %v1310_v4  ;;  %v3913_v61 = vadd.f32 %v1221_v35, %v3663_v55  ;;  %v3925_v55 = vld [vmem:[#allocation2 + $0x10] sm:$0xff]  }
 0x306   : > { %v1216_v41 = vadd.f32 %v3757_v1, %v1215_v34  ;;  %v3907_v57 = vadd.f32 %v1213_v32, %v3657_v53  ;;  %v3217_v53 = vld [vmem:[#allocation2] sm:$0xff]   ;;  %v3929_v1 = vld [vmem:[#allocation2 + $0x18] sm:$0xff]  }
 0x307   : > { %v3904_v6 = vadd.f32 %v1224_v37, %v3654_v51  ;;  %v3216_v51 = vld [vmem:[%s4171_s3 + $0xf8] sm:$0xff]   ;;  %3098 = vmatprep.subr.bf16.mxu1 %v3217_v53 }
 0x308   : > { %v3910_v46 = vadd.f32 %v1216_v41, %v3660_v54  ;;  %3016 = vmatprep.subr.bf16.mxu0 %v3216_v51  ;;  %v3922_v54 = vld [vmem:[#allocation2 + $0x8] sm:$0xff]   ;;  %3106 = vmatpush3.bf16.msra.mxu1 %v3217_v53 }
 0x309   : > { %v1312_v12 = vpack.c.bf16 %v3904_v6, %v3913_v61  ;;  %3017 = vmatpush3.bf16.msra.mxu0 %v3216_v51  ;;  %3099 = vmatprep.subr.bf16.mxu1 %v3922_v54 }
 0x30a   : > { %v1311_v48 = vpack.c.bf16 %v3910_v46, %v3907_v57  ;;  %3050 = vmatprep.subr.bf16.mxu0 %v3217_v53 }
 0x30c   : > { %2998 = vmatprep.mubr.bf16.mxu1 %v1311_v48  ;;  %3107 = vmatpush3.bf16.msra.mxu1 %v3922_v54 }
 0x30d   : > { %2999 = vmatmul.mubr.bf16.gmra.mrb[60].mxu1 %v1312_v12  ;;  %3100 = vmatprep.subr.bf16.mxu1 %v3925_v55 }
 0x310   : > { %3108 = vmatpush3.bf16.msra.mxu1 %v3925_v55 }
 0x311   : > { %3101 = vmatprep.subr.bf16.mxu1 %v3929_v1 }
 0x314   : > { %3109 = vmatpush3.bf16.msra.mxu1 %v3929_v1 }
 0x315   : > { %3102 = vmatprep.subr.bf16.mxu1 %v3933_v49 }
 0x318   : > { %3110 = vmatpush3.bf16.msra.mxu1 %v3933_v49 }
 0x319   : > { %3103 = vmatprep.subr.bf16.mxu1 %v3937_v14 }
 0x31c   : > { %3111 = vmatpush3.bf16.msra.mxu1 %v3937_v14 }
 0x3a8   : > { %v2972_v62 = vpop.f32.mrb[32].mxu1 }
 0x3a9   : > { %v1410_v16 = vadd.f32 %v2972_v62, %v3945_v15  ;;  %v1401_v11 = vpop.f32.mrb[33].mxu1 }
 0x3aa   : > { %v1402_v56 = vadd.f32 %v3945_v15, %v1401_v11  ;;  %v2973_v13 = vpop.f32.mrb[34].mxu1 }
 0x3ab   : > { %v1562_v58 = vmul.f32 0.01, %v1410_v16  ;;  %v1413_v22 = vadd.f32 %v2973_v13, %v3945_v15  ;;  %v1404_v59 = vpop.f32.mrb[35].mxu1  ;;  %vm1530_vm1 = vcmp.gt.f32.partialorder %v1410_v16, 0.0 }
 0x3ac   : > { %v1560_v24 = vmul.f32 0.01, %v1402_v56  ;;  %v1405_v25 = vadd.f32 %v3945_v15, %v1404_v59  ;;  %vm1528_vm2 = vcmp.gt.f32.partialorder %v1402_v56, 0.0 }
 0x3ad   : > { %vm1531_vm3 = vcmp.gt.f32.partialorder %v1413_v22, 0.0  ;;  %v1563_v17 = vmul.f32 0.01, %v1413_v22  ;;  %v1594_v38 = vsel %vm1530_vm1, %v1410_v16, %v1562_v58 }
 0x3ae   : > { %vm1529_vm4 = vcmp.gt.f32.partialorder %v1405_v25, 0.0  ;;  %v1561_v26 = vmul.f32 0.01, %v1405_v25  ;;  %v1592_v32 = vsel %vm1528_vm2, %v1402_v56, %v1560_v24 }
 0x3af   : > { %v1595_v2 = vsel %vm1531_vm3, %v1413_v22, %v1563_v17 }
 0x3b0   : > { %v1625_v39 = vpack.c.bf16 %v1595_v2, %v1594_v38  ;;  %v2976_v4 = vpop.f32.mrb[36].mxu1  ;;  %v1593_v5 = vsel %vm1529_vm4, %v1405_v25, %v1561_v26 }
 0x3b1   : > { %v1426_v35 = vadd.f32 %v2976_v4, %v3945_v15  ;;  %v1417_v37 = vpop.f32.mrb[37].mxu1  ;;  %v1624_v34 = vpack.c.bf16 %v1593_v5, %v1592_v32 }
 0x3b2   : > { %v1418_v41 = vadd.f32 %v3945_v15, %v1417_v37  ;;  %v2977_v48 = vpop.f32.mrb[38].mxu1 }
 0x3b3   : > { %v1566_v12 = vmul.f32 0.01, %v1426_v35  ;;  %v1429_v51 = vadd.f32 %v2977_v48, %v3945_v15  ;;  %v1420_v62 = vpop.f32.mrb[39].mxu1  ;;  %3018 = vmatprep.mubr.bf16.mxu0 %v1624_v34  ;;  %vm1534_vm5 = vcmp.gt.f32.partialorder %v1426_v35, 0.0 }
 0x3b4   : > { %v1564_v11 = vmul.f32 0.01, %v1418_v41  ;;  %v1421_v16 = vadd.f32 %v3945_v15, %v1420_v62  ;;  %3019 = vmatmul.mubr.bf16.vlgmr.msra.gmra.mrb[64].mxu0 %v1625_v39  ;;  %vm1532_vm6 = vcmp.gt.f32.partialorder %v1418_v41, 0.0 }
 0x3b5   : > { %vm1535_vm7 = vcmp.gt.f32.partialorder %v1429_v51, 0.0  ;;  %v1567_v56 = vmul.f32 0.01, %v1429_v51  ;;  %3051 = vmatpush3.bf16.msra.mxu0 %v3217_v53  ;;  %v1598_v58 = vsel %vm1534_vm5, %v1426_v35, %v1566_v12 }
 0x3b6   : > { %vm1533_vm8 = vcmp.gt.f32.partialorder %v1421_v16, 0.0  ;;  %v1565_v13 = vmul.f32 0.01, %v1421_v16  ;;  %3052 = vmatprep.subr.bf16.mxu0 %v3922_v54  ;;  %v1596_v24 = vsel %vm1532_vm6, %v1418_v41, %v1564_v11 }
 0x3b7   : > { %v1599_v22 = vsel %vm1535_vm7, %v1429_v51, %v1567_v56 }
 0x3b8   : > { %v2980_v59 = vpop.f32.mrb[40].mxu1  ;;  %v1597_v25 = vsel %vm1533_vm8, %v1421_v16, %v1565_v13  ;;  %v1627_v17 = vpack.c.bf16 %v1599_v22, %v1598_v58 }
 0x3b9   : > { %v1442_v26 = vadd.f32 %v2980_v59, %v3945_v15  ;;  %v1433_v38 = vpop.f32.mrb[41].mxu1  ;;  %v1626_v2 = vpack.c.bf16 %v1597_v25, %v1596_v24  ;;  %3053 = vmatpush3.bf16.msra.mxu0 %v3922_v54 }
 0x3ba   : > { %v1434_v39 = vadd.f32 %v3945_v15, %v1433_v38  ;;  %v2981_v4 = vpop.f32.mrb[42].mxu1  ;;  %3054 = vmatprep.subr.bf16.mxu0 %v3925_v55 }
 0x3bb   : > { %v1570_v53 = vmul.f32 0.01, %v1442_v26  ;;  %v1445_v32 = vadd.f32 %v2981_v4, %v3945_v15  ;;  %v1436_v5 = vpop.f32.mrb[43].mxu1  ;;  %3022 = vmatprep.mubr.bf16.mxu0 %v1626_v2  ;;  %vm1538_vm9 = vcmp.gt.f32.partialorder %v1442_v26, 0.0 }
 0x3bc   : > { %v1568_v35 = vmul.f32 0.01, %v1434_v39  ;;  %v1437_v37 = vadd.f32 %v3945_v15, %v1436_v5  ;;  %3023 = vmatmul.mubr.bf16.gmra.mrb[68].mxu0 %v1627_v17  ;;  %vm1536_vm10 = vcmp.gt.f32.partialorder %v1434_v39, 0.0 }
 0x3bd   : > { %vm1539_vm11 = vcmp.gt.f32.partialorder %v1445_v32, 0.0  ;;  %v1571_v34 = vmul.f32 0.01, %v1445_v32  ;;  %3055 = vmatpush3.bf16.msra.mxu0 %v3925_v55  ;;  %v1602_v41 = vsel %vm1538_vm9, %v1442_v26, %v1570_v53 }
 0x3be   : > { %vm1537_vm12 = vcmp.gt.f32.partialorder %v1437_v37, 0.0  ;;  %v1569_v54 = vmul.f32 0.01, %v1437_v37  ;;  %3056 = vmatprep.subr.bf16.mxu0 %v3929_v1  ;;  %v1600_v51 = vsel %vm1536_vm10, %v1434_v39, %v1568_v35 }
 0x3bf   : > { %v1603_v48 = vsel %vm1539_vm11, %v1445_v32, %v1571_v34 }
 0x3c0   : > { %v2984_v12 = vpop.f32.mrb[44].mxu1  ;;  %v1601_v62 = vsel %vm1537_vm12, %v1437_v37, %v1569_v54  ;;  %v1629_v11 = vpack.c.bf16 %v1603_v48, %v1602_v41 }
 0x3c1   : > { %v1458_v16 = vadd.f32 %v2984_v12, %v3945_v15  ;;  %v1449_v56 = vpop.f32.mrb[45].mxu1  ;;  %v1628_v13 = vpack.c.bf16 %v1601_v62, %v1600_v51  ;;  %3057 = vmatpush3.bf16.msra.mxu0 %v3929_v1 }
 0x3c2   : > { %v1450_v58 = vadd.f32 %v3945_v15, %v1449_v56  ;;  %v2985_v22 = vpop.f32.mrb[46].mxu1  ;;  %3058 = vmatprep.subr.bf16.mxu0 %v3933_v49 }
 0x3c3   : > { %v1574_v55 = vmul.f32 0.01, %v1458_v16  ;;  %v1461_v59 = vadd.f32 %v2985_v22, %v3945_v15  ;;  %v1452_v24 = vpop.f32.mrb[47].mxu1  ;;  %3026 = vmatprep.mubr.bf16.mxu0 %v1628_v13  ;;  %vm1542_vm13 = vcmp.gt.f32.partialorder %v1458_v16, 0.0 }
 0x3c4   : > { %v1572_v25 = vmul.f32 0.01, %v1450_v58  ;;  %v1453_v17 = vadd.f32 %v3945_v15, %v1452_v24  ;;  %3027 = vmatmul.mubr.bf16.gmra.mrb[72].mxu0 %v1629_v11  ;;  %vm1540_vm14 = vcmp.gt.f32.partialorder %v1450_v58, 0.0 }
 0x3c5   : > { %vm1543_vm15 = vcmp.gt.f32.partialorder %v1461_v59, 0.0  ;;  %v1575_v26 = vmul.f32 0.01, %v1461_v59  ;;  %3059 = vmatpush3.bf16.msra.mxu0 %v3933_v49  ;;  %v1606_v38 = vsel %vm1542_vm13, %v1458_v16, %v1574_v55 }
 0x3c6   : > { %vm1541_vm0 = vcmp.gt.f32.partialorder %v1453_v17, 0.0  ;;  %v1573_v1 = vmul.f32 0.01, %v1453_v17  ;;  %3060 = vmatprep.subr.bf16.mxu0 %v3937_v14  ;;  %v1604_v4 = vsel %vm1540_vm14, %v1450_v58, %v1572_v25 }
 0x3c7   : > { %v1607_v2 = vsel %vm1543_vm15, %v1461_v59, %v1575_v26 }
 0x3c8   : > { %v2988_v39 = vpop.f32.mrb[48].mxu1  ;;  %v1605_v53 = vsel %vm1541_vm0, %v1453_v17, %v1573_v1  ;;  %v1631_v32 = vpack.c.bf16 %v1607_v2, %v1606_v38 }
 0x3c9   : > { %v1474_v5 = vadd.f32 %v2988_v39, %v3945_v15  ;;  %v1465_v35 = vpop.f32.mrb[49].mxu1  ;;  %v1630_v37 = vpack.c.bf16 %v1605_v53, %v1604_v4  ;;  %3061 = vmatpush3.bf16.msra.mxu0 %v3937_v14 }
 0x3ca   : > { %v1466_v34 = vadd.f32 %v3945_v15, %v1465_v35  ;;  %v2989_v54 = vpop.f32.mrb[50].mxu1 }
 0x3cb   : > { %v1578_v49 = vmul.f32 0.01, %v1474_v5  ;;  %v1477_v41 = vadd.f32 %v2989_v54, %v3945_v15  ;;  %v1468_v48 = vpop.f32.mrb[51].mxu1  ;;  %3030 = vmatprep.mubr.bf16.mxu0 %v1630_v37  ;;  %vm1546_vm1 = vcmp.gt.f32.partialorder %v1474_v5, 0.0 }
 0x3cc   : > { %v1576_v12 = vmul.f32 0.01, %v1466_v34  ;;  %v1469_v51 = vadd.f32 %v3945_v15, %v1468_v48  ;;  %3031 = vmatmul.mubr.bf16.gmra.mrb[76].mxu0 %v1631_v32  ;;  %vm1544_vm2 = vcmp.gt.f32.partialorder %v1466_v34, 0.0 }
 0x3cd   : > { %vm1547_vm3 = vcmp.gt.f32.partialorder %v1477_v41, 0.0  ;;  %v1579_v62 = vmul.f32 0.01, %v1477_v41  ;;  %v1610_v16 = vsel %vm1546_vm1, %v1474_v5, %v1578_v49 }
 0x3ce   : > { %vm1545_vm4 = vcmp.gt.f32.partialorder %v1469_v51, 0.0  ;;  %v1577_v11 = vmul.f32 0.01, %v1469_v51  ;;  %v1608_v13 = vsel %vm1544_vm2, %v1466_v34, %v1576_v12 }
 0x3cf   : > { %v1611_v14 = vsel %vm1547_vm3, %v1477_v41, %v1579_v62 }
 0x3d0   : > { %v2992_v56 = vpop.f32.mrb[52].mxu1  ;;  %v1609_v58 = vsel %vm1545_vm4, %v1469_v51, %v1577_v11  ;;  %v1633_v22 = vpack.c.bf16 %v1611_v14, %v1610_v16 }
 0x3d1   : > { %v1490_v55 = vadd.f32 %v2992_v56, %v3945_v15  ;;  %v1481_v59 = vpop.f32.mrb[53].mxu1  ;;  %v1632_v24 = vpack.c.bf16 %v1609_v58, %v1608_v13 }
 0x3d2   : > { %v1482_v25 = vadd.f32 %v3945_v15, %v1481_v59  ;;  %v2993_v17 = vpop.f32.mrb[54].mxu1 }
 0x3d3   : > { %v1582_v26 = vmul.f32 0.01, %v1490_v55  ;;  %v1493_v1 = vadd.f32 %v2993_v17, %v3945_v15  ;;  %v1484_v38 = vpop.f32.mrb[55].mxu1  ;;  %3034 = vmatprep.mubr.bf16.mxu0 %v1632_v24  ;;  %vm1550_vm5 = vcmp.gt.f32.partialorder %v1490_v55, 0.0 }
 0x3d4   : > { %v1580_v2 = vmul.f32 0.01, %v1482_v25  ;;  %v1485_v39 = vadd.f32 %v3945_v15, %v1484_v38  ;;  %3035 = vmatmul.mubr.bf16.gmra.mrb[80].mxu0 %v1633_v22  ;;  %vm1548_vm6 = vcmp.gt.f32.partialorder %v1482_v25, 0.0 }
 0x3d5   : > { %vm1551_vm7 = vcmp.gt.f32.partialorder %v1493_v1, 0.0  ;;  %v1583_v4 = vmul.f32 0.01, %v1493_v1  ;;  %v1614_v32 = vsel %vm1550_vm5, %v1490_v55, %v1582_v26 }
 0x3d6   : > { %vm1549_vm8 = vcmp.gt.f32.partialorder %v1485_v39, 0.0  ;;  %v1581_v53 = vmul.f32 0.01, %v1485_v39  ;;  %v1612_v37 = vsel %vm1548_vm6, %v1482_v25, %v1580_v2 }
 0x3d7   : > { %v1615_v5 = vsel %vm1551_vm7, %v1493_v1, %v1583_v4 }
 0x3d8   : > { %v2996_v35 = vpop.f32.mrb[56].mxu1  ;;  %v1613_v34 = vsel %vm1549_vm8, %v1485_v39, %v1581_v53  ;;  %v1635_v54 = vpack.c.bf16 %v1615_v5, %v1614_v32 }
 0x3d9   : > { %v1506_v49 = vadd.f32 %v2996_v35, %v3945_v15  ;;  %v1497_v41 = vpop.f32.mrb[57].mxu1  ;;  %v1634_v48 = vpack.c.bf16 %v1613_v34, %v1612_v37 }
 0x3da   : > { %v1498_v12 = vadd.f32 %v3945_v15, %v1497_v41  ;;  %v2997_v51 = vpop.f32.mrb[58].mxu1 }
 0x3db   : > { %v1586_v62 = vmul.f32 0.01, %v1506_v49  ;;  %v1509_v11 = vadd.f32 %v2997_v51, %v3945_v15  ;;  %v1500_v16 = vpop.f32.mrb[59].mxu1  ;;  %3038 = vmatprep.mubr.bf16.mxu0 %v1634_v48  ;;  %vm1554_vm9 = vcmp.gt.f32.partialorder %v1506_v49, 0.0 }
 0x3dc   : > { %v1584_v14 = vmul.f32 0.01, %v1498_v12  ;;  %v1501_v56 = vadd.f32 %v3945_v15, %v1500_v16  ;;  %3039 = vmatmul.mubr.bf16.gmra.mrb[84].mxu0 %v1635_v54  ;;  %vm1552_vm10 = vcmp.gt.f32.partialorder %v1498_v12, 0.0 }
 0x3dd   : > { %vm1555_vm11 = vcmp.gt.f32.partialorder %v1509_v11, 0.0  ;;  %v1587_v13 = vmul.f32 0.01, %v1509_v11  ;;  %v1618_v22 = vsel %vm1554_vm9, %v1506_v49, %v1586_v62  ;;  %v3223_v62 = vld [vmem:[#allocation2 + $0x30] sm:$0xff]  }
 0x3de   : > { %vm1553_vm12 = vcmp.gt.f32.partialorder %v1501_v56, 0.0  ;;  %v1585_v58 = vmul.f32 0.01, %v1501_v56  ;;  %v1616_v24 = vsel %vm1552_vm10, %v1498_v12, %v1584_v14  ;;  %3104 = vmatprep.subr.bf16.mxu1 %v3223_v62  ;;  %3062 = vmatprep.subr.bf16.mxu0 %v3223_v62 }
 0x3df   : > { %v1619_v55 = vsel %vm1555_vm11, %v1509_v11, %v1587_v13  ;;  %3112 = vmatpush3.bf16.msra.mxu1 %v3223_v62  ;;  %3063 = vmatpush3.bf16.msra.mxu0 %v3223_v62  ;;  %v3992_v11 = vld [vmem:[%s4172_s4 + $0x3] ss:$0 sm:$0xff] }
 0x3e0   : > { %v3000_v59 = vpop.f32.mrb[60].mxu1  ;;  %v1617_v25 = vsel %vm1553_vm12, %v1501_v56, %v1585_v58  ;;  %v1637_v17 = vpack.c.bf16 %v1619_v55, %v1618_v22 }
 0x3e1   : > { %v1522_v26 = vadd.f32 %v3000_v59, %v3945_v15  ;;  %v1513_v1 = vpop.f32.mrb[61].mxu1  ;;  %v1636_v38 = vpack.c.bf16 %v1617_v25, %v1616_v24 }
 0x3e2   : > { %v1514_v2 = vadd.f32 %v3945_v15, %v1513_v1  ;;  %v3001_v39 = vpop.f32.mrb[62].mxu1 }
 0x3e3   : > { %v1590_v4 = vmul.f32 0.01, %v1522_v26  ;;  %v1525_v53 = vadd.f32 %v3001_v39, %v3945_v15  ;;  %v1516_v32 = vpop.f32.mrb[63].mxu1  ;;  %3042 = vmatprep.mubr.bf16.mxu0 %v1636_v38  ;;  %vm1558_vm13 = vcmp.gt.f32.partialorder %v1522_v26, 0.0 }
 0x3e4   : > { %v1588_v5 = vmul.f32 0.01, %v1514_v2  ;;  %v1517_v35 = vadd.f32 %v3945_v15, %v1516_v32  ;;  %3043 = vmatmul.mubr.bf16.gmra.mrb[88].mxu0 %v1637_v17  ;;  %vm1556_vm14 = vcmp.gt.f32.partialorder %v1514_v2, 0.0  ;;  %v3224_v15 = vld [vmem:[#allocation2 + $0x38] sm:$0xff]  }
 0x3e5   : > { %vm1559_vm15 = vcmp.gt.f32.partialorder %v1525_v53, 0.0  ;;  %v1591_v37 = vmul.f32 0.01, %v1525_v53  ;;  %v1622_v54 = vsel %vm1558_vm13, %v1522_v26, %v1590_v4  ;;  %3064 = vmatprep.subr.bf16.mxu0 %v3224_v15  ;;  %3105 = vmatprep.subr.bf16.mxu1 %v3224_v15 }
 0x3e6   : > { %vm1557_vm0 = vcmp.gt.f32.partialorder %v1517_v35, 0.0  ;;  %v1589_v34 = vmul.f32 0.01, %v1517_v35  ;;  %v1620_v41 = vsel %vm1556_vm14, %v1514_v2, %v1588_v5  ;;  %3065 = vmatpush3.bf16.msra.mxu0 %v3224_v15  ;;  %3113 = vmatpush3.bf16.msra.mxu1 %v3224_v15 }
 0x3e7   : > { %v1623_v49 = vsel %vm1559_vm15, %v1525_v53, %v1591_v37 }
 0x3e8   : > { %v1621_v48 = vsel %vm1557_vm0, %v1517_v35, %v1589_v34  ;;  %v1639_v12 = vpack.c.bf16 %v1623_v49, %v1622_v54 }
 0x3e9   : > { %v1638_v51 = vpack.c.bf16 %v1621_v48, %v1620_v41 }
 0x3eb   : > { %3046 = vmatprep.mubr.bf16.mxu0 %v1638_v51 }
 0x3ec   : > { %3047 = vmatmul.mubr.bf16.gmra.mrb[92].mxu0 %v1639_v12 }
 0x487   : > { %v3020_v16 = vpop.f32.mrb[64].mxu0 }
 0x488   : > { %v1737_v14 = vadd.f32 %v3020_v16, %v3992_v11  ;;  %v1728_v56 = vpop.f32.mrb[65].mxu0 }
 0x489   : > { %v1729_v13 = vadd.f32 %v3992_v11, %v1728_v56  ;;  %v3021_v58 = vpop.f32.mrb[66].mxu0 }
 0x48a   : > { %v1740_v22 = vadd.f32 %v3021_v58, %v3992_v11  ;;  %v1731_v55 = vpop.f32.mrb[67].mxu0  ;;  %v1857_v24 = vadd.f32 %v1737_v14, %v3773_v23 }
 0x48b   : > { %v1732_v59 = vadd.f32 %v3992_v11, %v1731_v55  ;;  %v1855_v17 = vadd.f32 %v1729_v13, %v3767_v20 }
 0x48c   : > { %v1858_v25 = vadd.f32 %v1740_v22, %v3764_v19 }
 0x48d   : > { %v1856_v26 = vadd.f32 %v1732_v59, %v3770_v21 }
 0x48e   : > { %v1888_v1 = vpack.c.bf16 %v1858_v25, %v1857_v24 }
 0x48f   : > { %v3024_v38 = vpop.f32.mrb[68].mxu0  ;;  %v1887_v2 = vpack.c.bf16 %v1856_v26, %v1855_v17 }
 0x490   : > { %v1753_v39 = vadd.f32 %v3024_v38, %v3992_v11  ;;  %v1744_v4 = vpop.f32.mrb[69].mxu0 }
 0x491   : > { %v1745_v53 = vadd.f32 %v3992_v11, %v1744_v4  ;;  %v3025_v32 = vpop.f32.mrb[70].mxu0  ;;  %3066 = vmatprep.mubr.bf16.mxu0 %v1887_v2 }
 0x492   : > { %v1756_v5 = vadd.f32 %v3025_v32, %v3992_v11  ;;  %v1747_v35 = vpop.f32.mrb[71].mxu0  ;;  %3067 = vmatmul.mubr.bf16.vlgmr.msra.gmra.mrb[96].mxu0 %v1888_v1  ;;  %v1861_v20 = vadd.f32 %v1753_v39, %v3793_v45 }
 0x493   : > { %v1748_v19 = vadd.f32 %v3992_v11, %v1747_v35  ;;  %v1859_v23 = vadd.f32 %v1745_v53, %v3787_v43 }
 0x494   : > { %v1862_v21 = vadd.f32 %v1756_v5, %v3784_v42 }
 0x495   : > { %v1860_v37 = vadd.f32 %v1748_v19, %v3790_v44 }
 0x496   : > { %v1890_v34 = vpack.c.bf16 %v1862_v21, %v1861_v20 }
 0x497   : > { %v3028_v54 = vpop.f32.mrb[72].mxu0  ;;  %v1889_v49 = vpack.c.bf16 %v1860_v37, %v1859_v23 }
 0x498   : > { %v1769_v41 = vadd.f32 %v3028_v54, %v3992_v11  ;;  %v1760_v48 = vpop.f32.mrb[73].mxu0 }
 0x499   : > { %v1761_v12 = vadd.f32 %v3992_v11, %v1760_v48  ;;  %v3029_v51 = vpop.f32.mrb[74].mxu0  ;;  %3070 = vmatprep.mubr.bf16.mxu1 %v1889_v49 }
 0x49a   : > { %v1772_v62 = vadd.f32 %v3029_v51, %v3992_v11  ;;  %v1763_v15 = vpop.f32.mrb[75].mxu0  ;;  %3071 = vmatmul.mubr.bf16.vlgmr.msra.gmra.mrb[64].mxu1 %v1890_v34  ;;  %v1865_v43 = vadd.f32 %v1769_v41, %v3813_v3 }
 0x49b   : > { %v1764_v42 = vadd.f32 %v3992_v11, %v1763_v15  ;;  %v1863_v45 = vadd.f32 %v1761_v12, %v3807_v33 }
 0x49c   : > { %v1866_v44 = vadd.f32 %v1772_v62, %v3804_v63 }
 0x49d   : > { %v1864_v16 = vadd.f32 %v1764_v42, %v3810_v0 }
 0x49e   : > { %v1892_v14 = vpack.c.bf16 %v1866_v44, %v1865_v43 }
 0x49f   : > { %v3032_v56 = vpop.f32.mrb[76].mxu0  ;;  %v1891_v13 = vpack.c.bf16 %v1864_v16, %v1863_v45 }
 0x4a0   : > { %v1785_v58 = vadd.f32 %v3032_v56, %v3992_v11  ;;  %v1776_v22 = vpop.f32.mrb[77].mxu0 }
 0x4a1   : > { %v1777_v55 = vadd.f32 %v3992_v11, %v1776_v22  ;;  %v3033_v59 = vpop.f32.mrb[78].mxu0  ;;  %3074 = vmatprep.mubr.bf16.mxu1 %v1891_v13 }
 0x4a2   : > { %v1788_v24 = vadd.f32 %v3033_v59, %v3992_v11  ;;  %v1779_v25 = vpop.f32.mrb[79].mxu0  ;;  %3075 = vmatmul.mubr.bf16.gmra.mrb[68].mxu1 %v1892_v14  ;;  %v1869_v33 = vadd.f32 %v1785_v58, %v3833_v29 }
 0x4a3   : > { %v1780_v63 = vadd.f32 %v3992_v11, %v1779_v25  ;;  %v1867_v3 = vadd.f32 %v1777_v55, %v3827_v27 }
 0x4a4   : > { %v1870_v0 = vadd.f32 %v1788_v24, %v3824_v18 }
 0x4a5   : > { %v1868_v17 = vadd.f32 %v1780_v63, %v3830_v28 }
 0x4a6   : > { %v1894_v26 = vpack.c.bf16 %v1870_v0, %v1869_v33 }
 0x4a7   : > { %v3036_v1 = vpop.f32.mrb[80].mxu0  ;;  %v1893_v38 = vpack.c.bf16 %v1868_v17, %v1867_v3 }
 0x4a8   : > { %v1801_v2 = vadd.f32 %v3036_v1, %v3992_v11  ;;  %v1792_v39 = vpop.f32.mrb[81].mxu0 }
 0x4a9   : > { %v1793_v4 = vadd.f32 %v3992_v11, %v1792_v39  ;;  %v3037_v53 = vpop.f32.mrb[82].mxu0  ;;  %3078 = vmatprep.mubr.bf16.mxu1 %v1893_v38 }
 0x4aa   : > { %v1804_v32 = vadd.f32 %v3037_v53, %v3992_v11  ;;  %v1795_v5 = vpop.f32.mrb[83].mxu0  ;;  %3079 = vmatmul.mubr.bf16.gmra.mrb[72].mxu1 %v1894_v26  ;;  %v1873_v27 = vadd.f32 %v1801_v2, %v3853_v9  ;;  %v4062_v26 = vld [vmem:[%s4174_s6] ss:$0 sm:$0xff] }
 0x4ab   : > { %v1796_v18 = vadd.f32 %v3992_v11, %v1795_v5  ;;  %v1871_v29 = vadd.f32 %v1793_v4, %v3847_v47 }
 0x4ac   : > { %v1874_v28 = vadd.f32 %v1804_v32, %v3844_v40 }
 0x4ad   : > { %v1872_v35 = vadd.f32 %v1796_v18, %v3850_v52 }
 0x4ae   : > { %v1896_v19 = vpack.c.bf16 %v1874_v28, %v1873_v27 }
 0x4af   : > { %v3040_v20 = vpop.f32.mrb[84].mxu0  ;;  %v1895_v21 = vpack.c.bf16 %v1872_v35, %v1871_v29 }
 0x4b0   : > { %v1817_v23 = vadd.f32 %v3040_v20, %v3992_v11  ;;  %v1808_v37 = vpop.f32.mrb[85].mxu0 }
 0x4b1   : > { %v1809_v34 = vadd.f32 %v3992_v11, %v1808_v37  ;;  %v3041_v54 = vpop.f32.mrb[86].mxu0  ;;  %3082 = vmatprep.mubr.bf16.mxu1 %v1895_v21 }
 0x4b2   : > { %v1820_v49 = vadd.f32 %v3041_v54, %v3992_v11  ;;  %v1811_v41 = vpop.f32.mrb[87].mxu0  ;;  %3083 = vmatmul.mubr.bf16.gmra.mrb[76].mxu1 %v1896_v19  ;;  %v1877_v47 = vadd.f32 %v1817_v23, %v3873_v10 }
 0x4b3   : > { %v1812_v40 = vadd.f32 %v3992_v11, %v1811_v41  ;;  %v1875_v9 = vadd.f32 %v1809_v34, %v3867_v7 }
 0x4b4   : > { %v1878_v52 = vadd.f32 %v1820_v49, %v3864_v50 }
 0x4b5   : > { %v1876_v48 = vadd.f32 %v1812_v40, %v3870_v8 }
 0x4b6   : > { %v1898_v12 = vpack.c.bf16 %v1878_v52, %v1877_v47 }
 0x4b7   : > { %v3044_v51 = vpop.f32.mrb[88].mxu0  ;;  %v1897_v62 = vpack.c.bf16 %v1876_v48, %v1875_v9 }
 0x4b8   : > { %v1833_v15 = vadd.f32 %v3044_v51, %v3992_v11  ;;  %v1824_v42 = vpop.f32.mrb[89].mxu0 }
 0x4b9   : > { %v1825_v43 = vadd.f32 %v3992_v11, %v1824_v42  ;;  %v3045_v44 = vpop.f32.mrb[90].mxu0  ;;  %3086 = vmatprep.mubr.bf16.mxu1 %v1897_v62 }
 0x4ba   : > { %v1836_v45 = vadd.f32 %v3045_v44, %v3992_v11  ;;  %v1827_v16 = vpop.f32.mrb[91].mxu0  ;;  %3087 = vmatmul.mubr.bf16.gmra.mrb[80].mxu1 %v1898_v12  ;;  %v1881_v7 = vadd.f32 %v1833_v15, %v3893_v31 }
 0x4bb   : > { %v1828_v50 = vadd.f32 %v3992_v11, %v1827_v16  ;;  %v1879_v10 = vadd.f32 %v1825_v43, %v3887_v30 }
 0x4bc   : > { %v1882_v8 = vadd.f32 %v1836_v45, %v3884_v60 }
 0x4bd   : > { %v1880_v14 = vadd.f32 %v1828_v50, %v3890_v36 }
 0x4be   : > { %v1900_v56 = vpack.c.bf16 %v1882_v8, %v1881_v7 }
 0x4bf   : > { %v3048_v13 = vpop.f32.mrb[92].mxu0  ;;  %v1899_v58 = vpack.c.bf16 %v1880_v14, %v1879_v10 }
 0x4c0   : > { %v1849_v22 = vadd.f32 %v3048_v13, %v3992_v11  ;;  %v1840_v55 = vpop.f32.mrb[93].mxu0 }
 0x4c1   : > { %v1841_v59 = vadd.f32 %v3992_v11, %v1840_v55  ;;  %v3049_v24 = vpop.f32.mrb[94].mxu0  ;;  %3090 = vmatprep.mubr.bf16.mxu1 %v1899_v58 }
 0x4c2   : > { %v1852_v25 = vadd.f32 %v3049_v24, %v3992_v11  ;;  %v1843_v31 = vpop.f32.mrb[95].mxu0  ;;  %3091 = vmatmul.mubr.bf16.gmra.mrb[84].mxu1 %v1900_v56  ;;  %v1885_v30 = vadd.f32 %v1849_v22, %v3913_v61 }
 0x4c3   : > { %v1844_v60 = vadd.f32 %v3992_v11, %v1843_v31  ;;  %v1883_v63 = vadd.f32 %v1841_v59, %v3907_v57 }
 0x4c4   : > { %v1886_v36 = vadd.f32 %v1852_v25, %v3904_v6 }
 0x4c5   : > { %v1884_v33 = vadd.f32 %v1844_v60, %v3910_v46 }
 0x4c6   : > { %v1902_v0 = vpack.c.bf16 %v1886_v36, %v1885_v30 }
 0x4c7   : > { %v1901_v3 = vpack.c.bf16 %v1884_v33, %v1883_v63 }
 0x4c9   : > { %3094 = vmatprep.mubr.bf16.mxu1 %v1901_v3 }
 0x4ca   : > { %3095 = vmatmul.mubr.bf16.gmra.mrb[88].mxu1 %v1902_v0 }
 0x565   : > { %v3068_v17 = vpop.f32.mrb[96].mxu0 }
 0x566   : > { %v2008_v11 = vpop.f32.mrb[97].mxu0  ;;  %v2017_v6 = vadd.f32 %v3068_v17, %v4062_v26 }
 0x567   : > { %v3069_v61 = vpop.f32.mrb[98].mxu0  ;;  %v2009_v1 = vadd.f32 %v4062_v26, %v2008_v11 }
 0x568   : > { %v2020_v57 = vadd.f32 %v3069_v61, %v4062_v26  ;;  %v2011_v46 = vpop.f32.mrb[99].mxu0 }
 0x569   : > { %v2012_v38 = vadd.f32 %v4062_v26, %v2011_v46 }
 0x56a   : > { %v2600_v2 = vpack.c.bf16 %v2020_v57, %v2017_v6 }
 0x56b   : > { %v2595_v39 = vpack.c.bf16 %v2012_v38, %v2009_v1 }
 0x56c   : > { %2672 = vst [vmem:[%s4070_s19 + $0x8] sm:$0xff] %v2600_v2  }
 0x56d   : > { %2596 = vst [vmem:[%s4070_s19] sm:$0xff] %v2595_v39   ;;  %v3072_v4 = vpop.f32.mrb[64].mxu1 }
 0x56e   : > { %v2024_v53 = vpop.f32.mrb[65].mxu1  ;;  %v2033_v5 = vadd.f32 %v3072_v4, %v4062_v26 }
 0x56f   : > { %v3073_v32 = vpop.f32.mrb[66].mxu1  ;;  %v2025_v28 = vadd.f32 %v4062_v26, %v2024_v53 }
 0x570   : > { %v2036_v18 = vadd.f32 %v3073_v32, %v4062_v26  ;;  %v2027_v27 = vpop.f32.mrb[67].mxu1 }
 0x571   : > { %v2028_v29 = vadd.f32 %v4062_v26, %v2027_v27 }
 0x572   : > { %v2610_v35 = vpack.c.bf16 %v2036_v18, %v2033_v5 }
 0x573   : > { %v2605_v19 = vpack.c.bf16 %v2028_v29, %v2025_v28 }
 0x574   : > { %2674 = vst [vmem:[%s4070_s19 + $0x18] sm:$0xff] %v2610_v35  }
 0x575   : > { %2673 = vst [vmem:[%s4070_s19 + $0x10] sm:$0xff] %v2605_v19   ;;  %v3076_v20 = vpop.f32.mrb[68].mxu1 }
 0x576   : > { %v2040_v21 = vpop.f32.mrb[69].mxu1  ;;  %v2049_v37 = vadd.f32 %v3076_v20, %v4062_v26 }
 0x577   : > { %v3077_v23 = vpop.f32.mrb[70].mxu1  ;;  %v2041_v49 = vadd.f32 %v4062_v26, %v2040_v21 }
 0x578   : > { %v2052_v34 = vadd.f32 %v3077_v23, %v4062_v26  ;;  %v2043_v54 = vpop.f32.mrb[71].mxu1 }
 0x579   : > { %v2044_v41 = vadd.f32 %v4062_v26, %v2043_v54 }
 0x57a   : > { %v2620_v40 = vpack.c.bf16 %v2052_v34, %v2049_v37 }
 0x57b   : > { %v2615_v47 = vpack.c.bf16 %v2044_v41, %v2041_v49 }
 0x57c   : > { %2676 = vst [vmem:[%s4070_s19 + $0x28] sm:$0xff] %v2620_v40  }
 0x57d   : > { %2675 = vst [vmem:[%s4070_s19 + $0x20] sm:$0xff] %v2615_v47   ;;  %v3080_v52 = vpop.f32.mrb[72].mxu1 }
 0x57e   : > { %v2056_v9 = vpop.f32.mrb[73].mxu1  ;;  %v2065_v12 = vadd.f32 %v3080_v52, %v4062_v26 }
 0x57f   : > { %v3081_v48 = vpop.f32.mrb[74].mxu1  ;;  %v2057_v15 = vadd.f32 %v4062_v26, %v2056_v9 }
 0x580   : > { %v2068_v51 = vadd.f32 %v3081_v48, %v4062_v26  ;;  %v2059_v62 = vpop.f32.mrb[75].mxu1 }
 0x581   : > { %v2060_v42 = vadd.f32 %v4062_v26, %v2059_v62 }
 0x582   : > { %v2630_v43 = vpack.c.bf16 %v2068_v51, %v2065_v12 }
 0x583   : > { %v2625_v44 = vpack.c.bf16 %v2060_v42, %v2057_v15 }
 0x584   : > { %2678 = vst [vmem:[%s4070_s19 + $0x38] sm:$0xff] %v2630_v43  }
 0x585   : > { %2677 = vst [vmem:[%s4070_s19 + $0x30] sm:$0xff] %v2625_v44   ;;  %v3084_v45 = vpop.f32.mrb[76].mxu1 }
 0x586   : > { %v2072_v16 = vpop.f32.mrb[77].mxu1  ;;  %v2081_v7 = vadd.f32 %v3084_v45, %v4062_v26 }
 0x587   : > { %v3085_v50 = vpop.f32.mrb[78].mxu1  ;;  %v2073_v14 = vadd.f32 %v4062_v26, %v2072_v16 }
 0x588   : > { %v2084_v8 = vadd.f32 %v3085_v50, %v4062_v26  ;;  %v2075_v10 = vpop.f32.mrb[79].mxu1 }
 0x589   : > { %v2076_v56 = vadd.f32 %v4062_v26, %v2075_v10 }
 0x58a   : > { %v2640_v13 = vpack.c.bf16 %v2084_v8, %v2081_v7 }
 0x58b   : > { %v2635_v58 = vpack.c.bf16 %v2076_v56, %v2073_v14 }
 0x58c   : > { %2680 = vst [vmem:[%s4070_s19 + $0x48] sm:$0xff] %v2640_v13  }
 0x58d   : > { %2679 = vst [vmem:[%s4070_s19 + $0x40] sm:$0xff] %v2635_v58   ;;  %v3088_v22 = vpop.f32.mrb[80].mxu1 }
 0x58e   : > { %v2088_v55 = vpop.f32.mrb[81].mxu1  ;;  %v2097_v24 = vadd.f32 %v3088_v22, %v4062_v26 }
 0x58f   : > { %v3089_v59 = vpop.f32.mrb[82].mxu1  ;;  %v2089_v60 = vadd.f32 %v4062_v26, %v2088_v55 }
 0x590   : > { %v2100_v25 = vadd.f32 %v3089_v59, %v4062_v26  ;;  %v2091_v31 = vpop.f32.mrb[83].mxu1 }
 0x591   : > { %v2092_v30 = vadd.f32 %v4062_v26, %v2091_v31 }
 0x592   : > { %v2650_v36 = vpack.c.bf16 %v2100_v25, %v2097_v24 }
 0x593   : > { %v2645_v63 = vpack.c.bf16 %v2092_v30, %v2089_v60 }
 0x594   : > { %2682 = vst [vmem:[%s4070_s19 + $0x58] sm:$0xff] %v2650_v36  }
 0x595   : > { %2681 = vst [vmem:[%s4070_s19 + $0x50] sm:$0xff] %v2645_v63   ;;  %v3092_v33 = vpop.f32.mrb[84].mxu1 }
 0x596   : > { %v2104_v0 = vpop.f32.mrb[85].mxu1  ;;  %v2113_v17 = vadd.f32 %v3092_v33, %v4062_v26 }
 0x597   : > { %v3093_v3 = vpop.f32.mrb[86].mxu1  ;;  %v2105_v6 = vadd.f32 %v4062_v26, %v2104_v0 }
 0x598   : > { %v2116_v11 = vadd.f32 %v3093_v3, %v4062_v26  ;;  %v2107_v61 = vpop.f32.mrb[87].mxu1 }
 0x599   : > { %v2108_v57 = vadd.f32 %v4062_v26, %v2107_v61 }
 0x59a   : > { %v2660_v46 = vpack.c.bf16 %v2116_v11, %v2113_v17 }
 0x59b   : > { %v2655_v1 = vpack.c.bf16 %v2108_v57, %v2105_v6 }
 0x59c   : > { %2684 = vst [vmem:[%s4070_s19 + $0x68] sm:$0xff] %v2660_v46  }
 0x59d   : > { %2683 = vst [vmem:[%s4070_s19 + $0x60] sm:$0xff] %v2655_v1   ;;  %v3096_v38 = vpop.f32.mrb[88].mxu1 }
 0x59e   : > { %v2120_v2 = vpop.f32.mrb[89].mxu1  ;;  %v2129_v4 = vadd.f32 %v3096_v38, %v4062_v26 }
 0x59f   : > { %v3097_v39 = vpop.f32.mrb[90].mxu1  ;;  %v2121_v5 = vadd.f32 %v4062_v26, %v2120_v2 }
 0x5a0   : > { %v2132_v53 = vadd.f32 %v3097_v39, %v4062_v26  ;;  %v2123_v32 = vpop.f32.mrb[91].mxu1 }
 0x5a1   : > { %v2124_v18 = vadd.f32 %v4062_v26, %v2123_v32 }
 0x5a2   : > { %v2670_v27 = vpack.c.bf16 %v2132_v53, %v2129_v4 }
 0x5a3   : > { %v2665_v28 = vpack.c.bf16 %v2124_v18, %v2121_v5 }
 0x5a4   : > { %2686 = vst [vmem:[%s4070_s19 + $0x78] sm:$0xff] %v2670_v27  }
 0x5a5   : > { %2685 = vst [vmem:[%s4070_s19 + $0x70] sm:$0xff] %v2665_v28  }
 0x5a6   : > { %3266 = shalt.err (!%p3263_p7)
}
 0x5a7   : > { %s3267_s14 = scalar_lea.hbm %s4119_s13, 2048  ;;  %s3271_s18 = scalar_lea.hbm %s4175_s7, 4096 }
 0x5a8   : > { %p3268_p8 = scmp.ne.s32.totalorder %s4119_s13, %s3267_s14  ;;  %p3272_p1 = scmp.lt.u32.totalorder %s4119_s13, %s4175_s7 }
 0x5a9   : > { %p3273_p0 = scmp.lt.u32.totalorder %s3271_s18, %s3267_s14  ;;  %p3275_p6 = scmp.lt.u32.totalorder %s3267_s14, %s4119_s13 }
 0x5aa   : > { %p3269_p11 = pnand %p3268_p8, %p4186_p9 }
 0x5ab   : > { %p3274_p5 = por %p3273_p0, %p3272_p1 }
 0x5ac   : > { %p3270_p13 = pneg %p3269_p11 }
 0x5ad   : > { %p3276_p10 = por %p3275_p6, %p3274_p5 }
 0x5af   : > { %p3277_p12 = pnand %p3276_p10, %p3270_p13 }
 0x5b1   : > { %3280 = shalt.err (!%p3277_p12)
}
 0x5b2   : > { %s3325_s15 = smov 64   ;;  %s3326_s22 = smov 4  }
 0x5b3   : > { %3118 = dma.vmem_to_hbm [thread:$0]  (%p4186_p9), %s4121_s16, 2048, %s4119_s13, %s4127_s28, %s3325_s15, %s3325_s15, %s3326_s22  }
 0x5b4 PF: > { %p3130_p2 = scmp.ge.s32.totalorder %s3319_s27, 2  ;;  %s2324_s23 = sand.u32 1, %s3307_s24  }
 0x5b5   : > { %p4187_p3 = scmp.ne.s32.totalorder %s4180_s12, 0  ;;  %s2325_s29 = scalar_lea.sflag [#allocation4], %s2324_s23 }
 0x5b7   : > { %p3125_p4 = pnand %p3130_p2, %p4187_p3 }
 0x5b9   : > { %3302 = dma.done.wait (!%p3125_p4), %s2325_s29, 2048  }
 0x5ba   : > { %3304 = vsyncadd (!%p3125_p4), %s2325_s29, 4294965248  ;;  %p18_p7 = scmp.ge.s32.totalorder %s3392_s30, 4   ;;  %s4188_s24 = smov %s3311_s25 }
 0x5bb   : > { %s4189_s25 = smov %s3315_s26  ;;  %s4190_s26 = smov %s3403_s10 }
 0x5bc   : > { %s4191_s27 = smov %s3392_s30  ;;  %20 = sbr.rel (!%p18_p7) target bundleno = 4 (0x4), region = 94 }
 0x5c3   :  { %2330 = vsyncpa [#allocation3], 1 }
 0x5c4   :  { %2332 = vsyncpa [#allocation3 + $0x1], 1 }
 0x5c5   :  { %2333 = vsyncpa [#allocation4], 1 }
 0x5c6   :  { %2335 = vsyncpa [#allocation4 + $0x1], 1 }

// kernel: tpu_custom_call.1
= control target key start
LH: loop header
LB: loop body
LE: loop exit
PB: predicated region body
PF: predicated region fallthrough
CT: control target
= control target key end

     0   :  { %12 = vsyncpa [#allocation3], 0  ;;  %s4168_s0 = inlined_call_operand.vmem [shape: bf16[512,16], index: 0, kind: input, shape index: {}]   ;;  %s4169_s1 = inlined_call_operand.vmem [shape: bf16[16,128], index: 1, kind: input, shape index: {}]   ;;  %s4170_s2 = inlined_call_operand.vmem [shape: f32[1,128], index: 2, kind: input, shape index: {}]   ;;  %s4171_s3 = inlined_call_operand.vmem [shape: bf16[4,128,128], index: 3, kind: input, shape index: {}]   ;;  %s4172_s4 = inlined_call_operand.vmem [shape: f32[4,1,128], index: 4, kind: input, shape index: {}]   ;;  %s4173_s5 = inlined_call_operand.hbm [shape: bf16[128,128], index: 5, kind: input, shape index: {}]   ;;  %s4174_s6 = inlined_call_operand.vmem [shape: f32[1,128], index: 6, kind: input, shape index: {}]   ;;  %s4175_s7 = inlined_call_operand.hbm [shape: bf16[512,128], index: 7, kind: output, shape index: {}]  }
   0x1   :  { %13 = vsyncpa [#allocation4], 0 }
   0x2   :  { %15 = vsyncpa [#allocation4 + $0x1], 0  ;;  %s3367_s24 = smov 0   ;;  %s3369_s25 = smov 0  }
   0x3   :  { %s3371_s26 = smov 0   ;;  %s3373_s27 = smov 0  }
   0x4 LB: > { %s3388_s28 = sadd.s32 4294967295, %s3319_s27   ;;  %s2383_s29 = sadd.s32 4294967294, %s3319_s27   ;;  %s3319_s27 = sphi %s3373_s27, %s4191_s27   ;;  %s3315_s26 = sphi %s3371_s26, %s4190_s26   ;;  %s3311_s25 = sphi %s3369_s25, %s4189_s25   ;;  %s3307_s24 = sphi %s3367_s24, %s4188_s24  }
   0x5   : > { %s3392_s30 = sadd.s32 1, %s3319_s27   ;;  %s180_s8 = sadd.s32 1, %s3315_s26 }
   0x6   : > { %s177_s9 = ssub.s32 %s3319_s27, %s3392_s30  ;;  %p190_p0 = scmp.ne.s32.totalorder %s3315_s26, %s3311_s25 }
   0x7   : > { %p178_p1 = scmp.eq.s32.totalorder %s177_s9, 0  ;;  %p191_p2 = scmp.eq.s32.totalorder %s3388_s28, 1 }
   0x8   : > { %p196_p3 = scmp.ne.s32.totalorder %s3311_s25, %s3307_s24  ;;  %p197_p4 = scmp.eq.s32.totalorder %s2383_s29, 1 }
   0x9   : > { %s3403_s10 = scalar_select %p178_p1, %s3315_s26, %s180_s8  }
   0xa   : > { %p3405_p5 = por %p191_p2, %p190_p0  ;;  %p3409_p6 = por %p197_p4, %p196_p3 }
   0xb   : > { %p2384_p7 = scmp.ge.s32.totalorder %s3319_s27, 1  ;;  %p204_p8 = scmp.lt.s32.totalorder %s3319_s27, 3 }
   0xc   : > { %s4179_s11 = scalar_select %p3405_p5, 1, 0 }
   0xd   : > { %s4180_s12 = scalar_select %p3409_p6, 1, 0 }
   0xe   : > { %p4176_p9 = scmp.eq.s32.totalorder %s3388_s28, 0  ;;  %p3416_p10 = pnand %p2384_p7, %p204_p8 }
   0xf   : > { %s3321_s14 = smov [#allocation2]   ;;  %s3225_s19 = scalar_lea.hbm %s4173_s5, 1024 }
  0x10   : > { %s4181_s13 = scalar_select %p3416_p10, 1, 0 }
  0x11   : > { %s228_s15 = sshll.u32 %s3321_s14, 4  ;;  %p3120_p11 = pneg %p3416_p10  ;;  %s229_s15 = int_to_ptr.vmem [resolvable:$true] %s228_s15 }
  0x12   : > { %p3226_p13 = scmp.ne.s32.totalorder %s4173_s5, %s3225_s19  ;;  %p3232_p3 = scmp.lt.u32.totalorder %s3225_s19, %s4173_s5 }
  0x13   : > { %p3424_p12 = pnand %p4176_p9, %p3120_p11 }
  0x15   : > { %p3227_p0 = pneg %p3424_p12 }
  0x17   : > { %p3228_p1 = pnand %p3227_p0, %p3226_p13 }
  0x19   : > { %p3229_p2 = pneg %p3228_p1 }
  0x1b   : > { %p3234_p4 = pnand %p3232_p3, %p3229_p2 }
  0x1d   : > { %3237 = shalt.err (!%p3234_p4)
}
  0x1e   : > { %s3238_s29 = scalar_lea.vmem %s229_s15, 1024  ;;  %p3246_p9 = scmp.lt.s32.totalorder %s229_s15, %s229_s15 }
  0x1f   : > { %p3239_p7 = scmp.ne.s32.totalorder %s229_s15, %s3238_s29  ;;  %p3247_p6 = scmp.lt.s32.totalorder %s3238_s29, %s3238_s29 }
  0x21   : > { %p3241_p8 = pnand %p3239_p7, %p3227_p0  ;;  %p3248_p5 = por %p3247_p6, %p3246_p9 }
  0x23   : > { %p3242_p11 = pneg %p3241_p8 }
  0x25   : > { %p3249_p10 = pnand %p3248_p5, %p3242_p11 }
  0x27   : > { %3252 = shalt.err (!%p3249_p10)
}
  0x28   : > { %s3322_s8 = smov 64   ;;  %s3323_s9 = smov 4  }
  0x29   : > { %3123 = dma.hbm_to_vmem [thread:$0]  (!%p3424_p12), %s4173_s5, 1024, %s229_s15, [#allocation3], %s3322_s8, %s3322_s8, %s3323_s9  }
  0x2a   : > { %p4183_p13 = scmp.ne.s32.totalorder %s4181_s13, 0 }
  0x2b   : > { %p4184_p1 = scmp.eq.s32.totalorder (!%p4183_p13), %s3388_s28, 0 }
  0x2c   : > { %256 = sbr.rel (%p4183_p13) target bundleno = 1460 (0x5b4), region = 48 }
  0x33   : > { %3298 = dma.done.wait (%p4184_p1), [#allocation3], 1024   ;;  %p4185_p0 = pmov %p4184_p1 }
  0x34   : > { %s2390_s18 = sshll.u32 %s3388_s28, 5  ;;  %v3168_v0 = vld [vmem:[%s4169_s1] sm:$0xff]   ;;  %vm423_vm0 = vcmask 130048   ;;  %v3186_v8 = vld [vmem:[%s4171_s3 + $0x8] sm:$0xff]   ;;  %v3187_v10 = vld [vmem:[%s4171_s3 + $0x10] sm:$0xff]   ;;  %s285_s14 = sand.u32 1, %s3311_s25  }
  0x35   : > { %3300 = vsyncadd (%p4185_p0), [#allocation3], 4294966272  ;;  %p289_p5 = scmp.lt.s32.totalorder %s2390_s18, 63  ;;  %2824 = vmatprep.subr.bf16.mxu0 %v3168_v0  ;;  %v3185_v7 = vld [vmem:[%s4171_s3] sm:$0xff]   ;;  %v3188_v11 = vld [vmem:[%s4171_s3 + $0x18] sm:$0xff]   ;;  %s2591_s20 = sshll.u32 %s3388_s28, 11 }
  0x36   : > { %2825 = vmatpush3.bf16.msra.mxu0 %v3168_v0  ;;  %2858 = vmatprep.subr.bf16.mxu1 %v3185_v7  ;;  %v3189_v14 = vld [vmem:[%s4171_s3 + $0x20] sm:$0xff]   ;;  %v3190_v15 = vld [vmem:[%s4171_s3 + $0x28] sm:$0xff]   ;;  %v3191_v23 = vld [vmem:[%s4171_s3 + $0x30] sm:$0xff]   ;;  %s4119_s13 = scalar_lea.hbm %s4175_s7, %s2591_s20  ;;  %s4127_s28 = scalar_lea.sflag [#allocation4], %s285_s14 }
  0x37   : > { %s4193_s18 = smov (!%p289_p5, %s2390_s18), 63  ;;  %2859 = vmatpush3.bf16.msra.mxu1 %v3185_v7  ;;  %v3192_v24 = vld [vmem:[%s4171_s3 + $0x38] sm:$0xff]   ;;  %v3193_v25 = vld [vmem:[%s4171_s3 + $0x40] sm:$0xff]   ;;  %v3194_v26 = vld [vmem:[%s4171_s3 + $0x48] sm:$0xff]   ;;  %p4186_p9 = scmp.ne.s32.totalorder %s4179_s11, 0 }
  0x38   : > { %s2391_s19 = sshll.u32 %s4193_s18, 2  ;;  %2860 = vmatprep.subr.bf16.mxu1 %v3186_v8  ;;  %2906 = vmatprep.subr.bf16.mxu0 %v3193_v25  ;;  %v3195_v27 = vld [vmem:[%s4171_s3 + $0x50] sm:$0xff]   ;;  %v3196_v28 = vld [vmem:[%s4171_s3 + $0x58] sm:$0xff]   ;;  %v3197_v29 = vld [vmem:[%s4171_s3 + $0x60] sm:$0xff]   ;;  %s2389_s18 = sshll.u32 %s285_s14, 7 }
  0x39   : > { %s3454_s21 = scalar_lea.vmem %s4168_s0, %s2391_s19  ;;  %v3198_v30 = vld [vmem:[%s4171_s3 + $0x68] sm:$0xff]   ;;  %v3199_v31 = vld [vmem:[%s4171_s3 + $0x70] sm:$0xff]   ;;  %v3539_v33 = vld [vmem:[%s4170_s2] ss:$0 sm:$0xff]  ;;  %s4070_s19 = scalar_lea.vmem [#allocation5], %s2389_s18 }
  0x3a   : > { %v3169_v1 = vld [vmem:[%s3454_s21] sm:$0xff]   ;;  %v3170_v2 = vld [vmem:[%s3454_s21 + $0x8] sm:$0xff]   ;;  %v3171_v3 = vld [vmem:[%s3454_s21 + $0x10] sm:$0xff]   ;;  %s2309_s16 = sshll.u32 %s4070_s19, 4  ;;  %s3324_s29 = smov [#allocation5]   ;;  %s4121_s16 = int_to_ptr.vmem [resolvable:$true] %s2309_s16 }
  0x3b   : > { %2826 = vmatprep.mubr.msk.bf16.mxu0 %vm423_vm0, %v3169_v1  ;;  %v3172_v4 = vld [vmem:[%s3454_s21 + $0x18] sm:$0xff]   ;;  %v3173_v5 = vld [vmem:[%s3454_s21 + $0x20] sm:$0xff]   ;;  %v3174_v6 = vld [vmem:[%s3454_s21 + $0x28] sm:$0xff]   ;;  %2861 = vmatpush3.bf16.msra.mxu1 %v3186_v8  ;;  %s3253_s23 = scalar_lea.vmem %s4121_s16, 2048  ;;  %s3257_s8 = sshll.u32 %s3324_s29, 4  ;;  %s3258_s8 = int_to_ptr.vmem [resolvable:$false] %s3257_s8 }
  0x3c   : > { %2827 = vmatmul.mubr.msk.bf16.vlgmr.msra.gmra.mrb[0].mxu0 %vm423_vm0, %v3170_v2  ;;  %v3175_v9 = vld [vmem:[%s3454_s21 + $0x30] sm:$0xff]   ;;  %v3176_v12 = vld [vmem:[%s3454_s21 + $0x38] sm:$0xff]   ;;  %v3177_v13 = vld [vmem:[%s3454_s21 + $0x40] sm:$0xff]   ;;  %2862 = vmatprep.subr.bf16.mxu1 %v3187_v10  ;;  %p3254_p6 = scmp.ne.s32.totalorder %s4121_s16, %s3253_s23  ;;  %s3259_s9 = scalar_lea.vmem %s3258_s8, 4096 }
  0x3d   : > { %2830 = vmatprep.mubr.msk.bf16.mxu0 %vm423_vm0, %v3171_v3  ;;  %v3178_v16 = vld [vmem:[%s3454_s21 + $0x48] sm:$0xff]   ;;  %v3179_v17 = vld [vmem:[%s3454_s21 + $0x50] sm:$0xff]   ;;  %v3180_v18 = vld [vmem:[%s3454_s21 + $0x58] sm:$0xff]   ;;  %2907 = vmatpush3.bf16.msra.mxu0 %v3193_v25  ;;  %p3260_p2 = scmp.lt.s32.totalorder %s4121_s16, %s3258_s8  ;;  %p3261_p3 = scmp.lt.s32.totalorder %s3259_s9, %s3253_s23 }
  0x3e   : > { %v3181_v19 = vld [vmem:[%s3454_s21 + $0x60] sm:$0xff]   ;;  %v3182_v20 = vld [vmem:[%s3454_s21 + $0x68] sm:$0xff]   ;;  %v3183_v21 = vld [vmem:[%s3454_s21 + $0x70] sm:$0xff]   ;;  %2908 = vmatprep.subr.bf16.mxu0 %v3194_v26  ;;  %p3255_p10 = pnand %p3254_p6, %p4186_p9 }
  0x3f   : > { %2863 = vmatpush3.bf16.msra.mxu1 %v3187_v10  ;;  %v3184_v22 = vld [vmem:[%s3454_s21 + $0x78] sm:$0xff]   ;;  %p3262_p4 = por %p3261_p3, %p3260_p2 }
  0x40   : > { %2864 = vmatprep.subr.bf16.mxu1 %v3188_v11  ;;  %p3256_p12 = pneg %p3255_p10 }
  0x41   : > { %2909 = vmatpush3.bf16.msra.mxu0 %v3194_v26 }
  0x42   : > { %2910 = vmatprep.subr.bf16.mxu0 %v3195_v27  ;;  %p3263_p7 = pnand %p3262_p4, %p3256_p12 }
  0x43   : > { %2865 = vmatpush3.bf16.msra.mxu1 %v3188_v11 }
  0x44   : > { %2831 = vmatmul.mubr.msk.bf16.gmra.mrb[4].mxu0 %vm423_vm0, %v3172_v4  ;;  %2866 = vmatprep.subr.bf16.mxu1 %v3189_v14 }
  0x45   : > { %2834 = vmatprep.mubr.msk.bf16.mxu0 %vm423_vm0, %v3173_v5  ;;  %2911 = vmatpush3.bf16.msra.mxu0 %v3195_v27 }
  0x46   : > { %2912 = vmatprep.subr.bf16.mxu0 %v3196_v28 }
  0x47   : > { %2867 = vmatpush3.bf16.msra.mxu1 %v3189_v14 }
  0x48   : > { %2868 = vmatprep.subr.bf16.mxu1 %v3190_v15 }
  0x49   : > { %2913 = vmatpush3.bf16.msra.mxu0 %v3196_v28 }
  0x4a   : > { %2914 = vmatprep.subr.bf16.mxu0 %v3197_v29 }
  0x4b   : > { %2869 = vmatpush3.bf16.msra.mxu1 %v3190_v15 }
  0x4c   : > { %2835 = vmatmul.mubr.msk.bf16.gmra.mrb[8].mxu0 %vm423_vm0, %v3174_v6  ;;  %2870 = vmatprep.subr.bf16.mxu1 %v3191_v23 }
  0x4d   : > { %2838 = vmatprep.mubr.msk.bf16.mxu0 %vm423_vm0, %v3175_v9  ;;  %2915 = vmatpush3.bf16.msra.mxu0 %v3197_v29 }
  0x4e   : > { %2916 = vmatprep.subr.bf16.mxu0 %v3198_v30 }
  0x4f   : > { %2871 = vmatpush3.bf16.msra.mxu1 %v3191_v23 }
  0x50   : > { %2872 = vmatprep.subr.bf16.mxu1 %v3192_v24 }
  0x51   : > { %2917 = vmatpush3.bf16.msra.mxu0 %v3198_v30 }
  0x52   : > { %2918 = vmatprep.subr.bf16.mxu0 %v3199_v31 }
  0x53   : > { %2873 = vmatpush3.bf16.msra.mxu1 %v3192_v24 }
  0x54   : > { %2839 = vmatmul.mubr.msk.bf16.gmra.mrb[12].mxu0 %vm423_vm0, %v3176_v12 }
  0x55   : > { %2842 = vmatprep.mubr.msk.bf16.mxu0 %vm423_vm0, %v3177_v13  ;;  %2919 = vmatpush3.bf16.msra.mxu0 %v3199_v31 }
  0x5c   : > { %2843 = vmatmul.mubr.msk.bf16.gmra.mrb[16].mxu0 %vm423_vm0, %v3178_v16 }
  0x5d   : > { %2846 = vmatprep.mubr.msk.bf16.mxu0 %vm423_vm0, %v3179_v17 }
  0x64   : > { %2847 = vmatmul.mubr.msk.bf16.gmra.mrb[20].mxu0 %vm423_vm0, %v3180_v18 }
  0x65   : > { %2850 = vmatprep.mubr.msk.bf16.mxu0 %vm423_vm0, %v3181_v19 }
  0x6c   : > { %2851 = vmatmul.mubr.msk.bf16.gmra.mrb[24].mxu0 %vm423_vm0, %v3182_v20 }
  0x6d   : > { %2854 = vmatprep.mubr.msk.bf16.mxu0 %vm423_vm0, %v3183_v21 }
  0x74   : > { %2855 = vmatmul.mubr.msk.bf16.gmra.mrb[28].mxu0 %vm423_vm0, %v3184_v22 }
 0x10f   : > { %v2828_v32 = vpop.f32.mrb[0].mxu0 }
 0x110   : > { %v506_v34 = vpop.f32.mrb[1].mxu0  ;;  %v3551_v40 = vadd.f32 %v2828_v32, %v3539_v33 }
 0x111   : > { %v2829_v35 = vpop.f32.mrb[2].mxu0  ;;  %v3545_v38 = vadd.f32 %v3539_v33, %v506_v34 }
 0x112   : > { %v3542_v36 = vadd.f32 %v2829_v35, %v3539_v33  ;;  %v509_v37 = vpop.f32.mrb[3].mxu0 }
 0x113   : > { %v3548_v39 = vadd.f32 %v3539_v33, %v509_v37 }
 0x114   : > { %v670_v42 = vpack.c.bf16 %v3542_v36, %v3551_v40 }
 0x115   : > { %v669_v41 = vpack.c.bf16 %v3548_v39, %v3545_v38 }
 0x117   : > { %v2832_v43 = vpop.f32.mrb[4].mxu0  ;;  %2874 = vmatprep.mubr.bf16.mxu1 %v669_v41 }
 0x118   : > { %v522_v44 = vpop.f32.mrb[5].mxu0  ;;  %2875 = vmatmul.mubr.bf16.vlgmr.msra.gmra.mrb[0].mxu1 %v670_v42  ;;  %v3567_v50 = vadd.f32 %v2832_v43, %v3539_v33 }
 0x119   : > { %v2833_v45 = vpop.f32.mrb[6].mxu0  ;;  %v3561_v48 = vadd.f32 %v3539_v33, %v522_v44 }
 0x11a   : > { %v3558_v46 = vadd.f32 %v2833_v45, %v3539_v33  ;;  %v525_v47 = vpop.f32.mrb[7].mxu0 }
 0x11b   : > { %v3564_v49 = vadd.f32 %v3539_v33, %v525_v47 }
 0x11c   : > { %v672_v52 = vpack.c.bf16 %v3558_v46, %v3567_v50 }
 0x11d   : > { %v671_v51 = vpack.c.bf16 %v3564_v49, %v3561_v48 }
 0x11f   : > { %v2836_v53 = vpop.f32.mrb[8].mxu0  ;;  %2878 = vmatprep.mubr.bf16.mxu1 %v671_v51 }
 0x120   : > { %v538_v54 = vpop.f32.mrb[9].mxu0  ;;  %2879 = vmatmul.mubr.bf16.gmra.mrb[4].mxu1 %v672_v52  ;;  %v3583_v60 = vadd.f32 %v2836_v53, %v3539_v33 }
 0x121   : > { %v2837_v55 = vpop.f32.mrb[10].mxu0  ;;  %v3577_v58 = vadd.f32 %v3539_v33, %v538_v54 }
 0x122   : > { %v3574_v56 = vadd.f32 %v2837_v55, %v3539_v33  ;;  %v541_v57 = vpop.f32.mrb[11].mxu0 }
 0x123   : > { %v3580_v59 = vadd.f32 %v3539_v33, %v541_v57 }
 0x124   : > { %v674_v62 = vpack.c.bf16 %v3574_v56, %v3583_v60 }
 0x125   : > { %v673_v61 = vpack.c.bf16 %v3580_v59, %v3577_v58 }
 0x127   : > { %v2840_v63 = vpop.f32.mrb[12].mxu0  ;;  %2882 = vmatprep.mubr.bf16.mxu1 %v673_v61 }
 0x128   : > { %v554_v0 = vpop.f32.mrb[13].mxu0  ;;  %2883 = vmatmul.mubr.bf16.gmra.mrb[8].mxu1 %v674_v62  ;;  %v3599_v6 = vadd.f32 %v2840_v63, %v3539_v33  ;;  %v3200_v62 = vld [vmem:[%s4171_s3 + $0x78] sm:$0xff]   ;;  %v3201_v63 = vld [vmem:[%s4171_s3 + $0x80] sm:$0xff]  }
 0x129   : > { %v2841_v1 = vpop.f32.mrb[14].mxu0  ;;  %v3593_v4 = vadd.f32 %v3539_v33, %v554_v0  ;;  %2920 = vmatprep.subr.bf16.mxu0 %v3200_v62  ;;  %2954 = vmatprep.subr.bf16.mxu1 %v3201_v63  ;;  %v3203_v0 = vld [vmem:[%s4171_s3 + $0x90] sm:$0xff]  }
 0x12a   : > { %v3590_v2 = vadd.f32 %v2841_v1, %v3539_v33  ;;  %v557_v3 = vpop.f32.mrb[15].mxu0  ;;  %2921 = vmatpush3.bf16.msra.mxu0 %v3200_v62  ;;  %2955 = vmatpush3.bf16.msra.mxu1 %v3201_v63  ;;  %v3204_v1 = vld [vmem:[%s4171_s3 + $0x98] sm:$0xff]  }
 0x12b   : > { %v3596_v5 = vadd.f32 %v3539_v33, %v557_v3  ;;  %v3205_v3 = vld [vmem:[%s4171_s3 + $0xa0] sm:$0xff]  }
 0x12c   : > { %v676_v8 = vpack.c.bf16 %v3590_v2, %v3599_v6 }
 0x12d   : > { %v675_v7 = vpack.c.bf16 %v3596_v5, %v3593_v4 }
 0x12f   : > { %v2844_v9 = vpop.f32.mrb[16].mxu0  ;;  %2886 = vmatprep.mubr.bf16.mxu1 %v675_v7  ;;  %v3206_v7 = vld [vmem:[%s4171_s3 + $0xa8] sm:$0xff]  }
 0x130   : > { %v570_v10 = vpop.f32.mrb[17].mxu0  ;;  %2887 = vmatmul.mubr.bf16.gmra.mrb[12].mxu1 %v676_v8  ;;  %v3615_v16 = vadd.f32 %v2844_v9, %v3539_v33  ;;  %v3207_v8 = vld [vmem:[%s4171_s3 + $0xb0] sm:$0xff]   ;;  %v3696_v9 = vld [vmem:[%s4172_s4] ss:$0 sm:$0xff] }
 0x131   : > { %v2845_v11 = vpop.f32.mrb[18].mxu0  ;;  %v3609_v14 = vadd.f32 %v3539_v33, %v570_v10 }
 0x132   : > { %v3606_v12 = vadd.f32 %v2845_v11, %v3539_v33  ;;  %v573_v13 = vpop.f32.mrb[19].mxu0 }
 0x133   : > { %v3612_v15 = vadd.f32 %v3539_v33, %v573_v13 }
 0x134   : > { %v678_v18 = vpack.c.bf16 %v3606_v12, %v3615_v16 }
 0x135   : > { %v677_v17 = vpack.c.bf16 %v3612_v15, %v3609_v14 }
 0x137   : > { %v2848_v19 = vpop.f32.mrb[20].mxu0  ;;  %2890 = vmatprep.mubr.bf16.mxu1 %v677_v17 }
 0x138   : > { %v586_v20 = vpop.f32.mrb[21].mxu0  ;;  %2891 = vmatmul.mubr.bf16.gmra.mrb[16].mxu1 %v678_v18  ;;  %v3631_v26 = vadd.f32 %v2848_v19, %v3539_v33 }
 0x139   : > { %v2849_v21 = vpop.f32.mrb[22].mxu0  ;;  %v3625_v24 = vadd.f32 %v3539_v33, %v586_v20 }
 0x13a   : > { %v3622_v22 = vadd.f32 %v2849_v21, %v3539_v33  ;;  %v589_v23 = vpop.f32.mrb[23].mxu0 }
 0x13b   : > { %v3628_v25 = vadd.f32 %v3539_v33, %v589_v23 }
 0x13c   : > { %v680_v28 = vpack.c.bf16 %v3622_v22, %v3631_v26 }
 0x13d   : > { %v679_v27 = vpack.c.bf16 %v3628_v25, %v3625_v24 }
 0x13f   : > { %v2852_v29 = vpop.f32.mrb[24].mxu0  ;;  %2894 = vmatprep.mubr.bf16.mxu1 %v679_v27 }
 0x140   : > { %v602_v30 = vpop.f32.mrb[25].mxu0  ;;  %2895 = vmatmul.mubr.bf16.gmra.mrb[20].mxu1 %v680_v28  ;;  %v3647_v41 = vadd.f32 %v2852_v29, %v3539_v33 }
 0x141   : > { %v2853_v31 = vpop.f32.mrb[26].mxu0  ;;  %v3641_v35 = vadd.f32 %v3539_v33, %v602_v30 }
 0x142   : > { %v3638_v32 = vadd.f32 %v2853_v31, %v3539_v33  ;;  %v605_v34 = vpop.f32.mrb[27].mxu0 }
 0x143   : > { %v3644_v37 = vadd.f32 %v3539_v33, %v605_v34 }
 0x144   : > { %v682_v43 = vpack.c.bf16 %v3638_v32, %v3647_v41 }
 0x145   : > { %v681_v42 = vpack.c.bf16 %v3644_v37, %v3641_v35 }
 0x147   : > { %v2856_v44 = vpop.f32.mrb[28].mxu0  ;;  %2898 = vmatprep.mubr.bf16.mxu1 %v681_v42 }
 0x148   : > { %v618_v45 = vpop.f32.mrb[29].mxu0  ;;  %2899 = vmatmul.mubr.bf16.gmra.mrb[24].mxu1 %v682_v43  ;;  %v3663_v55 = vadd.f32 %v2856_v44, %v3539_v33 }
 0x149   : > { %v2857_v47 = vpop.f32.mrb[30].mxu0  ;;  %v3657_v53 = vadd.f32 %v3539_v33, %v618_v45 }
 0x14a   : > { %v3654_v51 = vadd.f32 %v2857_v47, %v3539_v33  ;;  %v621_v52 = vpop.f32.mrb[31].mxu0 }
 0x14b   : > { %v3660_v54 = vadd.f32 %v3539_v33, %v621_v52  ;;  %v3202_v33 = vld [vmem:[%s4171_s3 + $0x88] sm:$0xff]  }
 0x14c   : > { %v684_v61 = vpack.c.bf16 %v3654_v51, %v3663_v55  ;;  %2956 = vmatprep.subr.bf16.mxu1 %v3202_v33 }
 0x14d   : > { %v683_v57 = vpack.c.bf16 %v3660_v54, %v3657_v53  ;;  %2957 = vmatpush3.bf16.msra.mxu1 %v3202_v33 }
 0x14e   : > { %2958 = vmatprep.subr.bf16.mxu1 %v3203_v0 }
 0x14f   : > { %2902 = vmatprep.mubr.bf16.mxu1 %v683_v57 }
 0x150   : > { %2903 = vmatmul.mubr.bf16.gmra.mrb[28].mxu1 %v684_v61 }
 0x151   : > { %2959 = vmatpush3.bf16.msra.mxu1 %v3203_v0 }
 0x152   : > { %2960 = vmatprep.subr.bf16.mxu1 %v3204_v1 }
 0x155   : > { %2961 = vmatpush3.bf16.msra.mxu1 %v3204_v1 }
 0x156   : > { %2962 = vmatprep.subr.bf16.mxu1 %v3205_v3 }
 0x159   : > { %2963 = vmatpush3.bf16.msra.mxu1 %v3205_v3 }
 0x15a   : > { %2964 = vmatprep.subr.bf16.mxu1 %v3206_v7 }
 0x15d   : > { %2965 = vmatpush3.bf16.msra.mxu1 %v3206_v7 }
 0x15e   : > { %2966 = vmatprep.subr.bf16.mxu1 %v3207_v8 }
 0x161   : > { %2967 = vmatpush3.bf16.msra.mxu1 %v3207_v8 }
 0x1eb   : > { %v2876_v10 = vpop.f32.mrb[0].mxu1 }
 0x1ec   : > { %v782_v11 = vadd.f32 %v2876_v10, %v3696_v9  ;;  %v773_v13 = vpop.f32.mrb[1].mxu1 }
 0x1ed   : > { %v774_v17 = vadd.f32 %v3696_v9, %v773_v13  ;;  %v2877_v18 = vpop.f32.mrb[2].mxu1 }
 0x1ee   : > { %v934_v19 = vmul.f32 0.01, %v782_v11  ;;  %v785_v20 = vadd.f32 %v2877_v18, %v3696_v9  ;;  %v776_v21 = vpop.f32.mrb[3].mxu1  ;;  %vm902_vm1 = vcmp.gt.f32.partialorder %v782_v11, 0.0 }
 0x1ef   : > { %v932_v23 = vmul.f32 0.01, %v774_v17  ;;  %v777_v27 = vadd.f32 %v3696_v9, %v776_v21  ;;  %vm900_vm2 = vcmp.gt.f32.partialorder %v774_v17, 0.0 }
 0x1f0   : > { %vm903_vm3 = vcmp.gt.f32.partialorder %v785_v20, 0.0  ;;  %v935_v28 = vmul.f32 0.01, %v785_v20  ;;  %v966_v30 = vsel %vm902_vm1, %v782_v11, %v934_v19 }
 0x1f1   : > { %vm901_vm4 = vcmp.gt.f32.partialorder %v777_v27, 0.0  ;;  %v933_v29 = vmul.f32 0.01, %v777_v27  ;;  %v964_v43 = vsel %vm900_vm2, %v774_v17, %v932_v23 }
 0x1f2   : > { %v967_v31 = vsel %vm903_vm3, %v785_v20, %v935_v28 }
 0x1f3   : > { %v997_v34 = vpack.c.bf16 %v967_v31, %v966_v30  ;;  %v2880_v42 = vpop.f32.mrb[4].mxu1  ;;  %v965_v44 = vsel %vm901_vm4, %v777_v27, %v933_v29 }
 0x1f4   : > { %v798_v45 = vadd.f32 %v2880_v42, %v3696_v9  ;;  %v789_v47 = vpop.f32.mrb[5].mxu1  ;;  %v996_v52 = vpack.c.bf16 %v965_v44, %v964_v43 }
 0x1f5   : > { %v790_v57 = vadd.f32 %v3696_v9, %v789_v47  ;;  %v2881_v61 = vpop.f32.mrb[6].mxu1 }
 0x1f6   : > { %v938_v62 = vmul.f32 0.01, %v798_v45  ;;  %v801_v63 = vadd.f32 %v2881_v61, %v3696_v9  ;;  %v792_v33 = vpop.f32.mrb[7].mxu1  ;;  %2922 = vmatprep.mubr.bf16.mxu0 %v996_v52  ;;  %vm906_vm5 = vcmp.gt.f32.partialorder %v798_v45, 0.0 }
 0x1f7   : > { %v936_v0 = vmul.f32 0.01, %v790_v57  ;;  %v793_v1 = vadd.f32 %v3696_v9, %v792_v33  ;;  %2923 = vmatmul.mubr.bf16.vlgmr.msra.gmra.mrb[32].mxu0 %v997_v34  ;;  %vm904_vm6 = vcmp.gt.f32.partialorder %v790_v57, 0.0 }
 0x1f8   : > { %vm907_vm7 = vcmp.gt.f32.partialorder %v801_v63, 0.0  ;;  %v939_v3 = vmul.f32 0.01, %v801_v63  ;;  %v970_v8 = vsel %vm906_vm5, %v798_v45, %v938_v62 }
 0x1f9   : > { %vm905_vm8 = vcmp.gt.f32.partialorder %v793_v1, 0.0  ;;  %v937_v7 = vmul.f32 0.01, %v793_v1  ;;  %v968_v13 = vsel %vm904_vm6, %v790_v57, %v936_v0 }
 0x1fa   : > { %v971_v10 = vsel %vm907_vm7, %v801_v63, %v939_v3 }
 0x1fb   : > { %v2884_v11 = vpop.f32.mrb[8].mxu1  ;;  %v969_v17 = vsel %vm905_vm8, %v793_v1, %v937_v7  ;;  %v999_v18 = vpack.c.bf16 %v971_v10, %v970_v8 }
 0x1fc   : > { %v814_v19 = vadd.f32 %v2884_v11, %v3696_v9  ;;  %v805_v20 = vpop.f32.mrb[9].mxu1  ;;  %v998_v21 = vpack.c.bf16 %v969_v17, %v968_v13 }
 0x1fd   : > { %v806_v23 = vadd.f32 %v3696_v9, %v805_v20  ;;  %v2885_v27 = vpop.f32.mrb[10].mxu1 }
 0x1fe   : > { %v942_v28 = vmul.f32 0.01, %v814_v19  ;;  %v817_v29 = vadd.f32 %v2885_v27, %v3696_v9  ;;  %v808_v30 = vpop.f32.mrb[11].mxu1  ;;  %2926 = vmatprep.mubr.bf16.mxu0 %v998_v21  ;;  %vm910_vm9 = vcmp.gt.f32.partialorder %v814_v19, 0.0 }
 0x1ff   : > { %v940_v31 = vmul.f32 0.01, %v806_v23  ;;  %v809_v34 = vadd.f32 %v3696_v9, %v808_v30  ;;  %2927 = vmatmul.mubr.bf16.gmra.mrb[36].mxu0 %v999_v18  ;;  %vm908_vm10 = vcmp.gt.f32.partialorder %v806_v23, 0.0 }
 0x200   : > { %vm911_vm11 = vcmp.gt.f32.partialorder %v817_v29, 0.0  ;;  %v943_v42 = vmul.f32 0.01, %v817_v29  ;;  %v974_v44 = vsel %vm910_vm9, %v814_v19, %v942_v28 }
 0x201   : > { %vm909_vm12 = vcmp.gt.f32.partialorder %v809_v34, 0.0  ;;  %v941_v43 = vmul.f32 0.01, %v809_v34  ;;  %v972_v52 = vsel %vm908_vm10, %v806_v23, %v940_v31 }
 0x202   : > { %v975_v45 = vsel %vm911_vm11, %v817_v29, %v943_v42 }
 0x203   : > { %v2888_v47 = vpop.f32.mrb[12].mxu1  ;;  %v973_v57 = vsel %vm909_vm12, %v809_v34, %v941_v43  ;;  %v1001_v61 = vpack.c.bf16 %v975_v45, %v974_v44 }
 0x204   : > { %v830_v62 = vadd.f32 %v2888_v47, %v3696_v9  ;;  %v821_v63 = vpop.f32.mrb[13].mxu1  ;;  %v1000_v33 = vpack.c.bf16 %v973_v57, %v972_v52 }
 0x205   : > { %v822_v0 = vadd.f32 %v3696_v9, %v821_v63  ;;  %v2889_v1 = vpop.f32.mrb[14].mxu1 }
 0x206   : > { %v946_v3 = vmul.f32 0.01, %v830_v62  ;;  %v833_v7 = vadd.f32 %v2889_v1, %v3696_v9  ;;  %v824_v8 = vpop.f32.mrb[15].mxu1  ;;  %2930 = vmatprep.mubr.bf16.mxu0 %v1000_v33  ;;  %vm914_vm13 = vcmp.gt.f32.partialorder %v830_v62, 0.0 }
 0x207   : > { %v944_v10 = vmul.f32 0.01, %v822_v0  ;;  %v825_v11 = vadd.f32 %v3696_v9, %v824_v8  ;;  %2931 = vmatmul.mubr.bf16.gmra.mrb[40].mxu0 %v1001_v61  ;;  %vm912_vm14 = vcmp.gt.f32.partialorder %v822_v0, 0.0 }
 0x208   : > { %vm915_vm15 = vcmp.gt.f32.partialorder %v833_v7, 0.0  ;;  %v947_v13 = vmul.f32 0.01, %v833_v7  ;;  %v978_v18 = vsel %vm914_vm13, %v830_v62, %v946_v3 }
 0x209   : > { %vm913_vm0 = vcmp.gt.f32.partialorder %v825_v11, 0.0  ;;  %v945_v17 = vmul.f32 0.01, %v825_v11  ;;  %v976_v21 = vsel %vm912_vm14, %v822_v0, %v944_v10 }
 0x20a   : > { %v979_v19 = vsel %vm915_vm15, %v833_v7, %v947_v13 }
 0x20b   : > { %v2892_v20 = vpop.f32.mrb[16].mxu1  ;;  %v977_v23 = vsel %vm913_vm0, %v825_v11, %v945_v17  ;;  %v1003_v27 = vpack.c.bf16 %v979_v19, %v978_v18 }
 0x20c   : > { %v846_v28 = vadd.f32 %v2892_v20, %v3696_v9  ;;  %v837_v29 = vpop.f32.mrb[17].mxu1  ;;  %v1002_v30 = vpack.c.bf16 %v977_v23, %v976_v21 }
 0x20d   : > { %v838_v31 = vadd.f32 %v3696_v9, %v837_v29  ;;  %v2893_v34 = vpop.f32.mrb[18].mxu1 }
 0x20e   : > { %v950_v42 = vmul.f32 0.01, %v846_v28  ;;  %v849_v43 = vadd.f32 %v2893_v34, %v3696_v9  ;;  %v840_v44 = vpop.f32.mrb[19].mxu1  ;;  %2934 = vmatprep.mubr.bf16.mxu0 %v1002_v30  ;;  %vm918_vm1 = vcmp.gt.f32.partialorder %v846_v28, 0.0 }
 0x20f   : > { %v948_v45 = vmul.f32 0.01, %v838_v31  ;;  %v841_v47 = vadd.f32 %v3696_v9, %v840_v44  ;;  %2935 = vmatmul.mubr.bf16.gmra.mrb[44].mxu0 %v1003_v27  ;;  %vm916_vm2 = vcmp.gt.f32.partialorder %v838_v31, 0.0 }
 0x210   : > { %vm919_vm3 = vcmp.gt.f32.partialorder %v849_v43, 0.0  ;;  %v951_v52 = vmul.f32 0.01, %v849_v43  ;;  %v982_v61 = vsel %vm918_vm1, %v846_v28, %v950_v42 }
 0x211   : > { %vm917_vm4 = vcmp.gt.f32.partialorder %v841_v47, 0.0  ;;  %v949_v57 = vmul.f32 0.01, %v841_v47  ;;  %v980_v33 = vsel %vm916_vm2, %v838_v31, %v948_v45 }
 0x212   : > { %v983_v62 = vsel %vm919_vm3, %v849_v43, %v951_v52 }
 0x213   : > { %v2896_v63 = vpop.f32.mrb[20].mxu1  ;;  %v981_v0 = vsel %vm917_vm4, %v841_v47, %v949_v57  ;;  %v1005_v1 = vpack.c.bf16 %v983_v62, %v982_v61 }
 0x214   : > { %v862_v3 = vadd.f32 %v2896_v63, %v3696_v9  ;;  %v853_v7 = vpop.f32.mrb[21].mxu1  ;;  %v1004_v8 = vpack.c.bf16 %v981_v0, %v980_v33 }
 0x215   : > { %v854_v10 = vadd.f32 %v3696_v9, %v853_v7  ;;  %v2897_v11 = vpop.f32.mrb[22].mxu1 }
 0x216   : > { %v954_v13 = vmul.f32 0.01, %v862_v3  ;;  %v865_v17 = vadd.f32 %v2897_v11, %v3696_v9  ;;  %v856_v18 = vpop.f32.mrb[23].mxu1  ;;  %2938 = vmatprep.mubr.bf16.mxu0 %v1004_v8  ;;  %vm922_vm5 = vcmp.gt.f32.partialorder %v862_v3, 0.0 }
 0x217   : > { %v952_v19 = vmul.f32 0.01, %v854_v10  ;;  %v857_v20 = vadd.f32 %v3696_v9, %v856_v18  ;;  %2939 = vmatmul.mubr.bf16.gmra.mrb[48].mxu0 %v1005_v1  ;;  %vm920_vm6 = vcmp.gt.f32.partialorder %v854_v10, 0.0 }
 0x218   : > { %vm923_vm7 = vcmp.gt.f32.partialorder %v865_v17, 0.0  ;;  %v955_v21 = vmul.f32 0.01, %v865_v17  ;;  %v986_v27 = vsel %vm922_vm5, %v862_v3, %v954_v13 }
 0x219   : > { %vm921_vm8 = vcmp.gt.f32.partialorder %v857_v20, 0.0  ;;  %v953_v23 = vmul.f32 0.01, %v857_v20  ;;  %v984_v30 = vsel %vm920_vm6, %v854_v10, %v952_v19 }
 0x21a   : > { %v987_v28 = vsel %vm923_vm7, %v865_v17, %v955_v21 }
 0x21b   : > { %v2900_v29 = vpop.f32.mrb[24].mxu1  ;;  %v985_v31 = vsel %vm921_vm8, %v857_v20, %v953_v23  ;;  %v1007_v34 = vpack.c.bf16 %v987_v28, %v986_v27 }
 0x21c   : > { %v878_v42 = vadd.f32 %v2900_v29, %v3696_v9  ;;  %v869_v43 = vpop.f32.mrb[25].mxu1  ;;  %v1006_v44 = vpack.c.bf16 %v985_v31, %v984_v30 }
 0x21d   : > { %v870_v45 = vadd.f32 %v3696_v9, %v869_v43  ;;  %v2901_v47 = vpop.f32.mrb[26].mxu1 }
 0x21e   : > { %v958_v52 = vmul.f32 0.01, %v878_v42  ;;  %v881_v57 = vadd.f32 %v2901_v47, %v3696_v9  ;;  %v872_v61 = vpop.f32.mrb[27].mxu1  ;;  %2942 = vmatprep.mubr.bf16.mxu0 %v1006_v44  ;;  %vm926_vm9 = vcmp.gt.f32.partialorder %v878_v42, 0.0 }
 0x21f   : > { %v956_v62 = vmul.f32 0.01, %v870_v45  ;;  %v873_v63 = vadd.f32 %v3696_v9, %v872_v61  ;;  %2943 = vmatmul.mubr.bf16.gmra.mrb[52].mxu0 %v1007_v34  ;;  %vm924_vm10 = vcmp.gt.f32.partialorder %v870_v45, 0.0  ;;  %v3211_v61 = vld [vmem:[%s4171_s3 + $0xd0] sm:$0xff]  }
 0x220   : > { %vm927_vm11 = vcmp.gt.f32.partialorder %v881_v57, 0.0  ;;  %v959_v33 = vmul.f32 0.01, %v881_v57  ;;  %v990_v1 = vsel %vm926_vm9, %v878_v42, %v958_v52  ;;  %v3208_v52 = vld [vmem:[%s4171_s3 + $0xb8] sm:$0xff]  }
 0x221   : > { %vm925_vm12 = vcmp.gt.f32.partialorder %v873_v63, 0.0  ;;  %v957_v0 = vmul.f32 0.01, %v873_v63  ;;  %v988_v8 = vsel %vm924_vm10, %v870_v45, %v956_v62  ;;  %2968 = vmatprep.subr.bf16.mxu1 %v3208_v52  ;;  %v3212_v62 = vld [vmem:[%s4171_s3 + $0xd8] sm:$0xff]  }
 0x222   : > { %v991_v3 = vsel %vm927_vm11, %v881_v57, %v959_v33  ;;  %2969 = vmatpush3.bf16.msra.mxu1 %v3208_v52  ;;  %v3210_v57 = vld [vmem:[%s4171_s3 + $0xc8] sm:$0xff]  }
 0x223   : > { %v2904_v7 = vpop.f32.mrb[28].mxu1  ;;  %v989_v10 = vsel %vm925_vm12, %v873_v63, %v957_v0  ;;  %v1009_v11 = vpack.c.bf16 %v991_v3, %v990_v1  ;;  %v3213_v63 = vld [vmem:[%s4171_s3 + $0xe0] sm:$0xff]   ;;  %v3214_v33 = vld [vmem:[%s4171_s3 + $0xe8] sm:$0xff]   ;;  %v3215_v0 = vld [vmem:[%s4171_s3 + $0xf0] sm:$0xff]  }
 0x224   : > { %v894_v13 = vadd.f32 %v2904_v7, %v3696_v9  ;;  %v885_v17 = vpop.f32.mrb[29].mxu1  ;;  %v1008_v18 = vpack.c.bf16 %v989_v10, %v988_v8  ;;  %v3757_v1 = vld [vmem:[%s4172_s4 + $0x1] ss:$0 sm:$0xff] }
 0x225   : > { %v886_v19 = vadd.f32 %v3696_v9, %v885_v17  ;;  %v2905_v20 = vpop.f32.mrb[30].mxu1 }
 0x226   : > { %v962_v21 = vmul.f32 0.01, %v894_v13  ;;  %v897_v23 = vadd.f32 %v2905_v20, %v3696_v9  ;;  %v888_v27 = vpop.f32.mrb[31].mxu1  ;;  %2946 = vmatprep.mubr.bf16.mxu0 %v1008_v18  ;;  %vm930_vm13 = vcmp.gt.f32.partialorder %v894_v13, 0.0 }
 0x227   : > { %v960_v28 = vmul.f32 0.01, %v886_v19  ;;  %v889_v29 = vadd.f32 %v3696_v9, %v888_v27  ;;  %2947 = vmatmul.mubr.bf16.gmra.mrb[56].mxu0 %v1009_v11  ;;  %vm928_vm14 = vcmp.gt.f32.partialorder %v886_v19, 0.0  ;;  %v3209_v9 = vld [vmem:[%s4171_s3 + $0xc0] sm:$0xff]  }
 0x228   : > { %vm931_vm15 = vcmp.gt.f32.partialorder %v897_v23, 0.0  ;;  %v963_v30 = vmul.f32 0.01, %v897_v23  ;;  %v994_v34 = vsel %vm930_vm13, %v894_v13, %v962_v21  ;;  %3002 = vmatprep.subr.bf16.mxu0 %v3209_v9 }
 0x229   : > { %vm929_vm0 = vcmp.gt.f32.partialorder %v889_v29, 0.0  ;;  %v961_v31 = vmul.f32 0.01, %v889_v29  ;;  %v992_v43 = vsel %vm928_vm14, %v886_v19, %v960_v28  ;;  %3003 = vmatpush3.bf16.msra.mxu0 %v3209_v9 }
 0x22a   : > { %v995_v42 = vsel %vm931_vm15, %v897_v23, %v963_v30  ;;  %3004 = vmatprep.subr.bf16.mxu0 %v3210_v57 }
 0x22b   : > { %v993_v44 = vsel %vm929_vm0, %v889_v29, %v961_v31  ;;  %v1011_v45 = vpack.c.bf16 %v995_v42, %v994_v34 }
 0x22c   : > { %v1010_v47 = vpack.c.bf16 %v993_v44, %v992_v43 }
 0x22d   : > { %3005 = vmatpush3.bf16.msra.mxu0 %v3210_v57 }
 0x22e   : > { %2950 = vmatprep.mubr.bf16.mxu0 %v1010_v47  ;;  %3006 = vmatprep.subr.bf16.mxu0 %v3211_v61 }
 0x22f   : > { %2951 = vmatmul.mubr.bf16.gmra.mrb[60].mxu0 %v1011_v45 }
 0x231   : > { %3007 = vmatpush3.bf16.msra.mxu0 %v3211_v61 }
 0x232   : > { %3008 = vmatprep.subr.bf16.mxu0 %v3212_v62 }
 0x235   : > { %3009 = vmatpush3.bf16.msra.mxu0 %v3212_v62 }
 0x236   : > { %3010 = vmatprep.subr.bf16.mxu0 %v3213_v63 }
 0x239   : > { %3011 = vmatpush3.bf16.msra.mxu0 %v3213_v63 }
 0x23a   : > { %3012 = vmatprep.subr.bf16.mxu0 %v3214_v33 }
 0x23d   : > { %3013 = vmatpush3.bf16.msra.mxu0 %v3214_v33 }
 0x23e   : > { %3014 = vmatprep.subr.bf16.mxu0 %v3215_v0 }
 0x241   : > { %3015 = vmatpush3.bf16.msra.mxu0 %v3215_v0 }
 0x2ca   : > { %v2924_v3 = vpop.f32.mrb[32].mxu0 }
 0x2cb   : > { %v1100_v7 = vpop.f32.mrb[33].mxu0  ;;  %v1109_v11 = vadd.f32 %v2924_v3, %v3757_v1 }
 0x2cc   : > { %v1101_v8 = vadd.f32 %v3757_v1, %v1100_v7  ;;  %v2925_v10 = vpop.f32.mrb[34].mxu0 }
 0x2cd   : > { %v1112_v13 = vadd.f32 %v2925_v10, %v3757_v1  ;;  %v1103_v17 = vpop.f32.mrb[35].mxu0  ;;  %v3773_v23 = vadd.f32 %v1109_v11, %v3551_v40 }
 0x2ce   : > { %v1104_v18 = vadd.f32 %v3757_v1, %v1103_v17  ;;  %v3767_v20 = vadd.f32 %v1101_v8, %v3545_v38 }
 0x2cf   : > { %v3764_v19 = vadd.f32 %v1112_v13, %v3542_v36 }
 0x2d0   : > { %v3770_v21 = vadd.f32 %v1104_v18, %v3548_v39 }
 0x2d1   : > { %v1298_v29 = vpack.c.bf16 %v3764_v19, %v3773_v23 }
 0x2d2   : > { %v2928_v27 = vpop.f32.mrb[36].mxu0  ;;  %v1297_v28 = vpack.c.bf16 %v3770_v21, %v3767_v20 }
 0x2d3   : > { %v1116_v30 = vpop.f32.mrb[37].mxu0  ;;  %v1125_v38 = vadd.f32 %v2928_v27, %v3757_v1 }
 0x2d4   : > { %v1117_v36 = vadd.f32 %v3757_v1, %v1116_v30  ;;  %v2929_v31 = vpop.f32.mrb[38].mxu0  ;;  %2970 = vmatprep.mubr.bf16.mxu1 %v1297_v28 }
 0x2d5   : > { %v1128_v39 = vadd.f32 %v2929_v31, %v3757_v1  ;;  %v1119_v34 = vpop.f32.mrb[39].mxu0  ;;  %2971 = vmatmul.mubr.bf16.vlgmr.msra.gmra.mrb[32].mxu1 %v1298_v29  ;;  %v3793_v45 = vadd.f32 %v1125_v38, %v3567_v50 }
 0x2d6   : > { %v1120_v40 = vadd.f32 %v3757_v1, %v1119_v34  ;;  %v3787_v43 = vadd.f32 %v1117_v36, %v3561_v48 }
 0x2d7   : > { %v3784_v42 = vadd.f32 %v1128_v39, %v3558_v46 }
 0x2d8   : > { %v3790_v44 = vadd.f32 %v1120_v40, %v3564_v49 }
 0x2d9   : > { %v1300_v57 = vpack.c.bf16 %v3784_v42, %v3793_v45 }
 0x2da   : > { %v2932_v47 = vpop.f32.mrb[40].mxu0  ;;  %v1299_v52 = vpack.c.bf16 %v3790_v44, %v3787_v43 }
 0x2db   : > { %v1132_v9 = vpop.f32.mrb[41].mxu0  ;;  %v1141_v48 = vadd.f32 %v2932_v47, %v3757_v1 }
 0x2dc   : > { %v1133_v46 = vadd.f32 %v3757_v1, %v1132_v9  ;;  %v2933_v61 = vpop.f32.mrb[42].mxu0  ;;  %2974 = vmatprep.mubr.bf16.mxu1 %v1299_v52 }
 0x2dd   : > { %v1144_v49 = vadd.f32 %v2933_v61, %v3757_v1  ;;  %v1135_v62 = vpop.f32.mrb[43].mxu0  ;;  %2975 = vmatmul.mubr.bf16.gmra.mrb[36].mxu1 %v1300_v57  ;;  %v3813_v3 = vadd.f32 %v1141_v48, %v3583_v60 }
 0x2de   : > { %v1136_v50 = vadd.f32 %v3757_v1, %v1135_v62  ;;  %v3807_v33 = vadd.f32 %v1133_v46, %v3577_v58 }
 0x2df   : > { %v3804_v63 = vadd.f32 %v1144_v49, %v3574_v56 }
 0x2e0   : > { %v3810_v0 = vadd.f32 %v1136_v50, %v3580_v59 }
 0x2e1   : > { %v1302_v11 = vpack.c.bf16 %v3804_v63, %v3813_v3 }
 0x2e2   : > { %v2936_v7 = vpop.f32.mrb[44].mxu0  ;;  %v1301_v8 = vpack.c.bf16 %v3810_v0, %v3807_v33 }
 0x2e3   : > { %v1148_v10 = vpop.f32.mrb[45].mxu0  ;;  %v1157_v58 = vadd.f32 %v2936_v7, %v3757_v1 }
 0x2e4   : > { %v1149_v56 = vadd.f32 %v3757_v1, %v1148_v10  ;;  %v2937_v13 = vpop.f32.mrb[46].mxu0  ;;  %2978 = vmatprep.mubr.bf16.mxu1 %v1301_v8 }
 0x2e5   : > { %v1160_v59 = vadd.f32 %v2937_v13, %v3757_v1  ;;  %v1151_v17 = vpop.f32.mrb[47].mxu0  ;;  %2979 = vmatmul.mubr.bf16.gmra.mrb[40].mxu1 %v1302_v11  ;;  %v3833_v29 = vadd.f32 %v1157_v58, %v3599_v6 }
 0x2e6   : > { %v1152_v60 = vadd.f32 %v3757_v1, %v1151_v17  ;;  %v3827_v27 = vadd.f32 %v1149_v56, %v3593_v4 }
 0x2e7   : > { %v3824_v18 = vadd.f32 %v1160_v59, %v3590_v2 }
 0x2e8   : > { %v3830_v28 = vadd.f32 %v1152_v60, %v3596_v5 }
 0x2e9   : > { %v1304_v38 = vpack.c.bf16 %v3824_v18, %v3833_v29 }
 0x2ea   : > { %v2940_v30 = vpop.f32.mrb[48].mxu0  ;;  %v1303_v36 = vpack.c.bf16 %v3830_v28, %v3827_v27 }
 0x2eb   : > { %v1164_v31 = vpop.f32.mrb[49].mxu0  ;;  %v1173_v4 = vadd.f32 %v2940_v30, %v3757_v1 }
 0x2ec   : > { %v1165_v2 = vadd.f32 %v3757_v1, %v1164_v31  ;;  %v2941_v39 = vpop.f32.mrb[50].mxu0  ;;  %2982 = vmatprep.mubr.bf16.mxu1 %v1303_v36 }
 0x2ed   : > { %v1176_v5 = vadd.f32 %v2941_v39, %v3757_v1  ;;  %v1167_v34 = vpop.f32.mrb[51].mxu0  ;;  %2983 = vmatmul.mubr.bf16.gmra.mrb[44].mxu1 %v1304_v38  ;;  %v3853_v9 = vadd.f32 %v1173_v4, %v3615_v16 }
 0x2ee   : > { %v1168_v6 = vadd.f32 %v3757_v1, %v1167_v34  ;;  %v3847_v47 = vadd.f32 %v1165_v2, %v3609_v14 }
 0x2ef   : > { %v3844_v40 = vadd.f32 %v1176_v5, %v3606_v12 }
 0x2f0   : > { %v3850_v52 = vadd.f32 %v1168_v6, %v3612_v15 }
 0x2f1   : > { %v1306_v48 = vpack.c.bf16 %v3844_v40, %v3853_v9 }
 0x2f2   : > { %v2944_v57 = vpop.f32.mrb[52].mxu0  ;;  %v1305_v46 = vpack.c.bf16 %v3850_v52, %v3847_v47 }
 0x2f3   : > { %v1180_v61 = vpop.f32.mrb[53].mxu0  ;;  %v1189_v14 = vadd.f32 %v2944_v57, %v3757_v1 }
 0x2f4   : > { %v1181_v12 = vadd.f32 %v3757_v1, %v1180_v61  ;;  %v2945_v49 = vpop.f32.mrb[54].mxu0  ;;  %2986 = vmatprep.mubr.bf16.mxu1 %v1305_v46 }
 0x2f5   : > { %v1192_v15 = vadd.f32 %v2945_v49, %v3757_v1  ;;  %v1183_v62 = vpop.f32.mrb[55].mxu0  ;;  %2987 = vmatmul.mubr.bf16.gmra.mrb[48].mxu1 %v1306_v48  ;;  %v3873_v10 = vadd.f32 %v1189_v14, %v3631_v26  ;;  %v3933_v49 = vld [vmem:[#allocation2 + $0x20] sm:$0xff]   ;;  %v3937_v14 = vld [vmem:[#allocation2 + $0x28] sm:$0xff]  }
 0x2f6   : > { %v1184_v16 = vadd.f32 %v3757_v1, %v1183_v62  ;;  %v3867_v7 = vadd.f32 %v1181_v12, %v3625_v24 }
 0x2f7   : > { %v3864_v50 = vadd.f32 %v1192_v15, %v3622_v22  ;;  %v3945_v15 = vld [vmem:[%s4172_s4 + $0x2] ss:$0 sm:$0xff] }
 0x2f8   : > { %v3870_v8 = vadd.f32 %v1184_v16, %v3628_v25 }
 0x2f9   : > { %v1308_v58 = vpack.c.bf16 %v3864_v50, %v3873_v10 }
 0x2fa   : > { %v2948_v11 = vpop.f32.mrb[56].mxu0  ;;  %v1307_v56 = vpack.c.bf16 %v3870_v8, %v3867_v7 }
 0x2fb   : > { %v1196_v13 = vpop.f32.mrb[57].mxu0  ;;  %v1205_v24 = vadd.f32 %v2948_v11, %v3757_v1 }
 0x2fc   : > { %v1197_v22 = vadd.f32 %v3757_v1, %v1196_v13  ;;  %v2949_v59 = vpop.f32.mrb[58].mxu0  ;;  %2990 = vmatprep.mubr.bf16.mxu1 %v1307_v56 }
 0x2fd   : > { %v1208_v25 = vadd.f32 %v2949_v59, %v3757_v1  ;;  %v1199_v17 = vpop.f32.mrb[59].mxu0  ;;  %2991 = vmatmul.mubr.bf16.gmra.mrb[52].mxu1 %v1308_v58  ;;  %v3893_v31 = vadd.f32 %v1205_v24, %v3647_v41 }
 0x2fe   : > { %v1200_v26 = vadd.f32 %v3757_v1, %v1199_v17  ;;  %v3887_v30 = vadd.f32 %v1197_v22, %v3641_v35 }
 0x2ff   : > { %v3884_v60 = vadd.f32 %v1208_v25, %v3638_v32 }
 0x300   : > { %v3890_v36 = vadd.f32 %v1200_v26, %v3644_v37 }
 0x301   : > { %v1310_v4 = vpack.c.bf16 %v3884_v60, %v3893_v31 }
 0x302   : > { %v2952_v38 = vpop.f32.mrb[60].mxu0  ;;  %v1309_v2 = vpack.c.bf16 %v3890_v36, %v3887_v30 }
 0x303   : > { %v1212_v39 = vpop.f32.mrb[61].mxu0  ;;  %v1221_v35 = vadd.f32 %v2952_v38, %v3757_v1 }
 0x304   : > { %v1213_v32 = vadd.f32 %v3757_v1, %v1212_v39  ;;  %v2953_v5 = vpop.f32.mrb[62].mxu0  ;;  %2994 = vmatprep.mubr.bf16.mxu1 %v1309_v2 }
 0x305   : > { %v1224_v37 = vadd.f32 %v2953_v5, %v3757_v1  ;;  %v1215_v34 = vpop.f32.mrb[63].mxu0  ;;  %2995 = vmatmul.mubr.bf16.gmra.mrb[56].mxu1 %v1310_v4  ;;  %v3913_v61 = vadd.f32 %v1221_v35, %v3663_v55  ;;  %v3925_v55 = vld [vmem:[#allocation2 + $0x10] sm:$0xff]  }
 0x306   : > { %v1216_v41 = vadd.f32 %v3757_v1, %v1215_v34  ;;  %v3907_v57 = vadd.f32 %v1213_v32, %v3657_v53  ;;  %v3217_v53 = vld [vmem:[#allocation2] sm:$0xff]   ;;  %v3929_v1 = vld [vmem:[#allocation2 + $0x18] sm:$0xff]  }
 0x307   : > { %v3904_v6 = vadd.f32 %v1224_v37, %v3654_v51  ;;  %v3216_v51 = vld [vmem:[%s4171_s3 + $0xf8] sm:$0xff]   ;;  %3098 = vmatprep.subr.bf16.mxu1 %v3217_v53 }
 0x308   : > { %v3910_v46 = vadd.f32 %v1216_v41, %v3660_v54  ;;  %3016 = vmatprep.subr.bf16.mxu0 %v3216_v51  ;;  %v3922_v54 = vld [vmem:[#allocation2 + $0x8] sm:$0xff]   ;;  %3106 = vmatpush3.bf16.msra.mxu1 %v3217_v53 }
 0x309   : > { %v1312_v12 = vpack.c.bf16 %v3904_v6, %v3913_v61  ;;  %3017 = vmatpush3.bf16.msra.mxu0 %v3216_v51  ;;  %3099 = vmatprep.subr.bf16.mxu1 %v3922_v54 }
 0x30a   : > { %v1311_v48 = vpack.c.bf16 %v3910_v46, %v3907_v57  ;;  %3050 = vmatprep.subr.bf16.mxu0 %v3217_v53 }
 0x30c   : > { %2998 = vmatprep.mubr.bf16.mxu1 %v1311_v48  ;;  %3107 = vmatpush3.bf16.msra.mxu1 %v3922_v54 }
 0x30d   : > { %2999 = vmatmul.mubr.bf16.gmra.mrb[60].mxu1 %v1312_v12  ;;  %3100 = vmatprep.subr.bf16.mxu1 %v3925_v55 }
 0x310   : > { %3108 = vmatpush3.bf16.msra.mxu1 %v3925_v55 }
 0x311   : > { %3101 = vmatprep.subr.bf16.mxu1 %v3929_v1 }
 0x314   : > { %3109 = vmatpush3.bf16.msra.mxu1 %v3929_v1 }
 0x315   : > { %3102 = vmatprep.subr.bf16.mxu1 %v3933_v49 }
 0x318   : > { %3110 = vmatpush3.bf16.msra.mxu1 %v3933_v49 }
 0x319   : > { %3103 = vmatprep.subr.bf16.mxu1 %v3937_v14 }
 0x31c   : > { %3111 = vmatpush3.bf16.msra.mxu1 %v3937_v14 }
 0x3a8   : > { %v2972_v62 = vpop.f32.mrb[32].mxu1 }
 0x3a9   : > { %v1410_v16 = vadd.f32 %v2972_v62, %v3945_v15  ;;  %v1401_v11 = vpop.f32.mrb[33].mxu1 }
 0x3aa   : > { %v1402_v56 = vadd.f32 %v3945_v15, %v1401_v11  ;;  %v2973_v13 = vpop.f32.mrb[34].mxu1 }
 0x3ab   : > { %v1562_v58 = vmul.f32 0.01, %v1410_v16  ;;  %v1413_v22 = vadd.f32 %v2973_v13, %v3945_v15  ;;  %v1404_v59 = vpop.f32.mrb[35].mxu1  ;;  %vm1530_vm1 = vcmp.gt.f32.partialorder %v1410_v16, 0.0 }
 0x3ac   : > { %v1560_v24 = vmul.f32 0.01, %v1402_v56  ;;  %v1405_v25 = vadd.f32 %v3945_v15, %v1404_v59  ;;  %vm1528_vm2 = vcmp.gt.f32.partialorder %v1402_v56, 0.0 }
 0x3ad   : > { %vm1531_vm3 = vcmp.gt.f32.partialorder %v1413_v22, 0.0  ;;  %v1563_v17 = vmul.f32 0.01, %v1413_v22  ;;  %v1594_v38 = vsel %vm1530_vm1, %v1410_v16, %v1562_v58 }
 0x3ae   : > { %vm1529_vm4 = vcmp.gt.f32.partialorder %v1405_v25, 0.0  ;;  %v1561_v26 = vmul.f32 0.01, %v1405_v25  ;;  %v1592_v32 = vsel %vm1528_vm2, %v1402_v56, %v1560_v24 }
 0x3af   : > { %v1595_v2 = vsel %vm1531_vm3, %v1413_v22, %v1563_v17 }
 0x3b0   : > { %v1625_v39 = vpack.c.bf16 %v1595_v2, %v1594_v38  ;;  %v2976_v4 = vpop.f32.mrb[36].mxu1  ;;  %v1593_v5 = vsel %vm1529_vm4, %v1405_v25, %v1561_v26 }
 0x3b1   : > { %v1426_v35 = vadd.f32 %v2976_v4, %v3945_v15  ;;  %v1417_v37 = vpop.f32.mrb[37].mxu1  ;;  %v1624_v34 = vpack.c.bf16 %v1593_v5, %v1592_v32 }
 0x3b2   : > { %v1418_v41 = vadd.f32 %v3945_v15, %v1417_v37  ;;  %v2977_v48 = vpop.f32.mrb[38].mxu1 }
 0x3b3   : > { %v1566_v12 = vmul.f32 0.01, %v1426_v35  ;;  %v1429_v51 = vadd.f32 %v2977_v48, %v3945_v15  ;;  %v1420_v62 = vpop.f32.mrb[39].mxu1  ;;  %3018 = vmatprep.mubr.bf16.mxu0 %v1624_v34  ;;  %vm1534_vm5 = vcmp.gt.f32.partialorder %v1426_v35, 0.0 }
 0x3b4   : > { %v1564_v11 = vmul.f32 0.01, %v1418_v41  ;;  %v1421_v16 = vadd.f32 %v3945_v15, %v1420_v62  ;;  %3019 = vmatmul.mubr.bf16.vlgmr.msra.gmra.mrb[64].mxu0 %v1625_v39  ;;  %vm1532_vm6 = vcmp.gt.f32.partialorder %v1418_v41, 0.0 }
 0x3b5   : > { %vm1535_vm7 = vcmp.gt.f32.partialorder %v1429_v51, 0.0  ;;  %v1567_v56 = vmul.f32 0.01, %v1429_v51  ;;  %3051 = vmatpush3.bf16.msra.mxu0 %v3217_v53  ;;  %v1598_v58 = vsel %vm1534_vm5, %v1426_v35, %v1566_v12 }
 0x3b6   : > { %vm1533_vm8 = vcmp.gt.f32.partialorder %v1421_v16, 0.0  ;;  %v1565_v13 = vmul.f32 0.01, %v1421_v16  ;;  %3052 = vmatprep.subr.bf16.mxu0 %v3922_v54  ;;  %v1596_v24 = vsel %vm1532_vm6, %v1418_v41, %v1564_v11 }
 0x3b7   : > { %v1599_v22 = vsel %vm1535_vm7, %v1429_v51, %v1567_v56 }
 0x3b8   : > { %v2980_v59 = vpop.f32.mrb[40].mxu1  ;;  %v1597_v25 = vsel %vm1533_vm8, %v1421_v16, %v1565_v13  ;;  %v1627_v17 = vpack.c.bf16 %v1599_v22, %v1598_v58 }
 0x3b9   : > { %v1442_v26 = vadd.f32 %v2980_v59, %v3945_v15  ;;  %v1433_v38 = vpop.f32.mrb[41].mxu1  ;;  %v1626_v2 = vpack.c.bf16 %v1597_v25, %v1596_v24  ;;  %3053 = vmatpush3.bf16.msra.mxu0 %v3922_v54 }
 0x3ba   : > { %v1434_v39 = vadd.f32 %v3945_v15, %v1433_v38  ;;  %v2981_v4 = vpop.f32.mrb[42].mxu1  ;;  %3054 = vmatprep.subr.bf16.mxu0 %v3925_v55 }
 0x3bb   : > { %v1570_v53 = vmul.f32 0.01, %v1442_v26  ;;  %v1445_v32 = vadd.f32 %v2981_v4, %v3945_v15  ;;  %v1436_v5 = vpop.f32.mrb[43].mxu1  ;;  %3022 = vmatprep.mubr.bf16.mxu0 %v1626_v2  ;;  %vm1538_vm9 = vcmp.gt.f32.partialorder %v1442_v26, 0.0 }
 0x3bc   : > { %v1568_v35 = vmul.f32 0.01, %v1434_v39  ;;  %v1437_v37 = vadd.f32 %v3945_v15, %v1436_v5  ;;  %3023 = vmatmul.mubr.bf16.gmra.mrb[68].mxu0 %v1627_v17  ;;  %vm1536_vm10 = vcmp.gt.f32.partialorder %v1434_v39, 0.0 }
 0x3bd   : > { %vm1539_vm11 = vcmp.gt.f32.partialorder %v1445_v32, 0.0  ;;  %v1571_v34 = vmul.f32 0.01, %v1445_v32  ;;  %3055 = vmatpush3.bf16.msra.mxu0 %v3925_v55  ;;  %v1602_v41 = vsel %vm1538_vm9, %v1442_v26, %v1570_v53 }
 0x3be   : > { %vm1537_vm12 = vcmp.gt.f32.partialorder %v1437_v37, 0.0  ;;  %v1569_v54 = vmul.f32 0.01, %v1437_v37  ;;  %3056 = vmatprep.subr.bf16.mxu0 %v3929_v1  ;;  %v1600_v51 = vsel %vm1536_vm10, %v1434_v39, %v1568_v35 }
 0x3bf   : > { %v1603_v48 = vsel %vm1539_vm11, %v1445_v32, %v1571_v34 }
 0x3c0   : > { %v2984_v12 = vpop.f32.mrb[44].mxu1  ;;  %v1601_v62 = vsel %vm1537_vm12, %v1437_v37, %v1569_v54  ;;  %v1629_v11 = vpack.c.bf16 %v1603_v48, %v1602_v41 }
 0x3c1   : > { %v1458_v16 = vadd.f32 %v2984_v12, %v3945_v15  ;;  %v1449_v56 = vpop.f32.mrb[45].mxu1  ;;  %v1628_v13 = vpack.c.bf16 %v1601_v62, %v1600_v51  ;;  %3057 = vmatpush3.bf16.msra.mxu0 %v3929_v1 }
 0x3c2   : > { %v1450_v58 = vadd.f32 %v3945_v15, %v1449_v56  ;;  %v2985_v22 = vpop.f32.mrb[46].mxu1  ;;  %3058 = vmatprep.subr.bf16.mxu0 %v3933_v49 }
 0x3c3   : > { %v1574_v55 = vmul.f32 0.01, %v1458_v16  ;;  %v1461_v59 = vadd.f32 %v2985_v22, %v3945_v15  ;;  %v1452_v24 = vpop.f32.mrb[47].mxu1  ;;  %3026 = vmatprep.mubr.bf16.mxu0 %v1628_v13  ;;  %vm1542_vm13 = vcmp.gt.f32.partialorder %v1458_v16, 0.0 }
 0x3c4   : > { %v1572_v25 = vmul.f32 0.01, %v1450_v58  ;;  %v1453_v17 = vadd.f32 %v3945_v15, %v1452_v24  ;;  %3027 = vmatmul.mubr.bf16.gmra.mrb[72].mxu0 %v1629_v11  ;;  %vm1540_vm14 = vcmp.gt.f32.partialorder %v1450_v58, 0.0 }
 0x3c5   : > { %vm1543_vm15 = vcmp.gt.f32.partialorder %v1461_v59, 0.0  ;;  %v1575_v26 = vmul.f32 0.01, %v1461_v59  ;;  %3059 = vmatpush3.bf16.msra.mxu0 %v3933_v49  ;;  %v1606_v38 = vsel %vm1542_vm13, %v1458_v16, %v1574_v55 }
 0x3c6   : > { %vm1541_vm0 = vcmp.gt.f32.partialorder %v1453_v17, 0.0  ;;  %v1573_v1 = vmul.f32 0.01, %v1453_v17  ;;  %3060 = vmatprep.subr.bf16.mxu0 %v3937_v14  ;;  %v1604_v4 = vsel %vm1540_vm14, %v1450_v58, %v1572_v25 }
 0x3c7   : > { %v1607_v2 = vsel %vm1543_vm15, %v1461_v59, %v1575_v26 }
 0x3c8   : > { %v2988_v39 = vpop.f32.mrb[48].mxu1  ;;  %v1605_v53 = vsel %vm1541_vm0, %v1453_v17, %v1573_v1  ;;  %v1631_v32 = vpack.c.bf16 %v1607_v2, %v1606_v38 }
 0x3c9   : > { %v1474_v5 = vadd.f32 %v2988_v39, %v3945_v15  ;;  %v1465_v35 = vpop.f32.mrb[49].mxu1  ;;  %v1630_v37 = vpack.c.bf16 %v1605_v53, %v1604_v4  ;;  %3061 = vmatpush3.bf16.msra.mxu0 %v3937_v14 }
 0x3ca   : > { %v1466_v34 = vadd.f32 %v3945_v15, %v1465_v35  ;;  %v2989_v54 = vpop.f32.mrb[50].mxu1 }
 0x3cb   : > { %v1578_v49 = vmul.f32 0.01, %v1474_v5  ;;  %v1477_v41 = vadd.f32 %v2989_v54, %v3945_v15  ;;  %v1468_v48 = vpop.f32.mrb[51].mxu1  ;;  %3030 = vmatprep.mubr.bf16.mxu0 %v1630_v37  ;;  %vm1546_vm1 = vcmp.gt.f32.partialorder %v1474_v5, 0.0 }
 0x3cc   : > { %v1576_v12 = vmul.f32 0.01, %v1466_v34  ;;  %v1469_v51 = vadd.f32 %v3945_v15, %v1468_v48  ;;  %3031 = vmatmul.mubr.bf16.gmra.mrb[76].mxu0 %v1631_v32  ;;  %vm1544_vm2 = vcmp.gt.f32.partialorder %v1466_v34, 0.0 }
 0x3cd   : > { %vm1547_vm3 = vcmp.gt.f32.partialorder %v1477_v41, 0.0  ;;  %v1579_v62 = vmul.f32 0.01, %v1477_v41  ;;  %v1610_v16 = vsel %vm1546_vm1, %v1474_v5, %v1578_v49 }
 0x3ce   : > { %vm1545_vm4 = vcmp.gt.f32.partialorder %v1469_v51, 0.0  ;;  %v1577_v11 = vmul.f32 0.01, %v1469_v51  ;;  %v1608_v13 = vsel %vm1544_vm2, %v1466_v34, %v1576_v12 }
 0x3cf   : > { %v1611_v14 = vsel %vm1547_vm3, %v1477_v41, %v1579_v62 }
 0x3d0   : > { %v2992_v56 = vpop.f32.mrb[52].mxu1  ;;  %v1609_v58 = vsel %vm1545_vm4, %v1469_v51, %v1577_v11  ;;  %v1633_v22 = vpack.c.bf16 %v1611_v14, %v1610_v16 }
 0x3d1   : > { %v1490_v55 = vadd.f32 %v2992_v56, %v3945_v15  ;;  %v1481_v59 = vpop.f32.mrb[53].mxu1  ;;  %v1632_v24 = vpack.c.bf16 %v1609_v58, %v1608_v13 }
 0x3d2   : > { %v1482_v25 = vadd.f32 %v3945_v15, %v1481_v59  ;;  %v2993_v17 = vpop.f32.mrb[54].mxu1 }
 0x3d3   : > { %v1582_v26 = vmul.f32 0.01, %v1490_v55  ;;  %v1493_v1 = vadd.f32 %v2993_v17, %v3945_v15  ;;  %v1484_v38 = vpop.f32.mrb[55].mxu1  ;;  %3034 = vmatprep.mubr.bf16.mxu0 %v1632_v24  ;;  %vm1550_vm5 = vcmp.gt.f32.partialorder %v1490_v55, 0.0 }
 0x3d4   : > { %v1580_v2 = vmul.f32 0.01, %v1482_v25  ;;  %v1485_v39 = vadd.f32 %v3945_v15, %v1484_v38  ;;  %3035 = vmatmul.mubr.bf16.gmra.mrb[80].mxu0 %v1633_v22  ;;  %vm1548_vm6 = vcmp.gt.f32.partialorder %v1482_v25, 0.0 }
 0x3d5   : > { %vm1551_vm7 = vcmp.gt.f32.partialorder %v1493_v1, 0.0  ;;  %v1583_v4 = vmul.f32 0.01, %v1493_v1  ;;  %v1614_v32 = vsel %vm1550_vm5, %v1490_v55, %v1582_v26 }
 0x3d6   : > { %vm1549_vm8 = vcmp.gt.f32.partialorder %v1485_v39, 0.0  ;;  %v1581_v53 = vmul.f32 0.01, %v1485_v39  ;;  %v1612_v37 = vsel %vm1548_vm6, %v1482_v25, %v1580_v2 }
 0x3d7   : > { %v1615_v5 = vsel %vm1551_vm7, %v1493_v1, %v1583_v4 }
 0x3d8   : > { %v2996_v35 = vpop.f32.mrb[56].mxu1  ;;  %v1613_v34 = vsel %vm1549_vm8, %v1485_v39, %v1581_v53  ;;  %v1635_v54 = vpack.c.bf16 %v1615_v5, %v1614_v32 }
 0x3d9   : > { %v1506_v49 = vadd.f32 %v2996_v35, %v3945_v15  ;;  %v1497_v41 = vpop.f32.mrb[57].mxu1  ;;  %v1634_v48 = vpack.c.bf16 %v1613_v34, %v1612_v37 }
 0x3da   : > { %v1498_v12 = vadd.f32 %v3945_v15, %v1497_v41  ;;  %v2997_v51 = vpop.f32.mrb[58].mxu1 }
 0x3db   : > { %v1586_v62 = vmul.f32 0.01, %v1506_v49  ;;  %v1509_v11 = vadd.f32 %v2997_v51, %v3945_v15  ;;  %v1500_v16 = vpop.f32.mrb[59].mxu1  ;;  %3038 = vmatprep.mubr.bf16.mxu0 %v1634_v48  ;;  %vm1554_vm9 = vcmp.gt.f32.partialorder %v1506_v49, 0.0 }
 0x3dc   : > { %v1584_v14 = vmul.f32 0.01, %v1498_v12  ;;  %v1501_v56 = vadd.f32 %v3945_v15, %v1500_v16  ;;  %3039 = vmatmul.mubr.bf16.gmra.mrb[84].mxu0 %v1635_v54  ;;  %vm1552_vm10 = vcmp.gt.f32.partialorder %v1498_v12, 0.0 }
 0x3dd   : > { %vm1555_vm11 = vcmp.gt.f32.partialorder %v1509_v11, 0.0  ;;  %v1587_v13 = vmul.f32 0.01, %v1509_v11  ;;  %v1618_v22 = vsel %vm1554_vm9, %v1506_v49, %v1586_v62  ;;  %v3223_v62 = vld [vmem:[#allocation2 + $0x30] sm:$0xff]  }
 0x3de   : > { %vm1553_vm12 = vcmp.gt.f32.partialorder %v1501_v56, 0.0  ;;  %v1585_v58 = vmul.f32 0.01, %v1501_v56  ;;  %v1616_v24 = vsel %vm1552_vm10, %v1498_v12, %v1584_v14  ;;  %3104 = vmatprep.subr.bf16.mxu1 %v3223_v62  ;;  %3062 = vmatprep.subr.bf16.mxu0 %v3223_v62 }
 0x3df   : > { %v1619_v55 = vsel %vm1555_vm11, %v1509_v11, %v1587_v13  ;;  %3112 = vmatpush3.bf16.msra.mxu1 %v3223_v62  ;;  %3063 = vmatpush3.bf16.msra.mxu0 %v3223_v62  ;;  %v3992_v11 = vld [vmem:[%s4172_s4 + $0x3] ss:$0 sm:$0xff] }
 0x3e0   : > { %v3000_v59 = vpop.f32.mrb[60].mxu1  ;;  %v1617_v25 = vsel %vm1553_vm12, %v1501_v56, %v1585_v58  ;;  %v1637_v17 = vpack.c.bf16 %v1619_v55, %v1618_v22 }
 0x3e1   : > { %v1522_v26 = vadd.f32 %v3000_v59, %v3945_v15  ;;  %v1513_v1 = vpop.f32.mrb[61].mxu1  ;;  %v1636_v38 = vpack.c.bf16 %v1617_v25, %v1616_v24 }
 0x3e2   : > { %v1514_v2 = vadd.f32 %v3945_v15, %v1513_v1  ;;  %v3001_v39 = vpop.f32.mrb[62].mxu1 }
 0x3e3   : > { %v1590_v4 = vmul.f32 0.01, %v1522_v26  ;;  %v1525_v53 = vadd.f32 %v3001_v39, %v3945_v15  ;;  %v1516_v32 = vpop.f32.mrb[63].mxu1  ;;  %3042 = vmatprep.mubr.bf16.mxu0 %v1636_v38  ;;  %vm1558_vm13 = vcmp.gt.f32.partialorder %v1522_v26, 0.0 }
 0x3e4   : > { %v1588_v5 = vmul.f32 0.01, %v1514_v2  ;;  %v1517_v35 = vadd.f32 %v3945_v15, %v1516_v32  ;;  %3043 = vmatmul.mubr.bf16.gmra.mrb[88].mxu0 %v1637_v17  ;;  %vm1556_vm14 = vcmp.gt.f32.partialorder %v1514_v2, 0.0  ;;  %v3224_v15 = vld [vmem:[#allocation2 + $0x38] sm:$0xff]  }
 0x3e5   : > { %vm1559_vm15 = vcmp.gt.f32.partialorder %v1525_v53, 0.0  ;;  %v1591_v37 = vmul.f32 0.01, %v1525_v53  ;;  %v1622_v54 = vsel %vm1558_vm13, %v1522_v26, %v1590_v4  ;;  %3064 = vmatprep.subr.bf16.mxu0 %v3224_v15  ;;  %3105 = vmatprep.subr.bf16.mxu1 %v3224_v15 }
 0x3e6   : > { %vm1557_vm0 = vcmp.gt.f32.partialorder %v1517_v35, 0.0  ;;  %v1589_v34 = vmul.f32 0.01, %v1517_v35  ;;  %v1620_v41 = vsel %vm1556_vm14, %v1514_v2, %v1588_v5  ;;  %3065 = vmatpush3.bf16.msra.mxu0 %v3224_v15  ;;  %3113 = vmatpush3.bf16.msra.mxu1 %v3224_v15 }
 0x3e7   : > { %v1623_v49 = vsel %vm1559_vm15, %v1525_v53, %v1591_v37 }
 0x3e8   : > { %v1621_v48 = vsel %vm1557_vm0, %v1517_v35, %v1589_v34  ;;  %v1639_v12 = vpack.c.bf16 %v1623_v49, %v1622_v54 }
 0x3e9   : > { %v1638_v51 = vpack.c.bf16 %v1621_v48, %v1620_v41 }
 0x3eb   : > { %3046 = vmatprep.mubr.bf16.mxu0 %v1638_v51 }
 0x3ec   : > { %3047 = vmatmul.mubr.bf16.gmra.mrb[92].mxu0 %v1639_v12 }
 0x487   : > { %v3020_v16 = vpop.f32.mrb[64].mxu0 }
 0x488   : > { %v1737_v14 = vadd.f32 %v3020_v16, %v3992_v11  ;;  %v1728_v56 = vpop.f32.mrb[65].mxu0 }
 0x489   : > { %v1729_v13 = vadd.f32 %v3992_v11, %v1728_v56  ;;  %v3021_v58 = vpop.f32.mrb[66].mxu0 }
 0x48a   : > { %v1740_v22 = vadd.f32 %v3021_v58, %v3992_v11  ;;  %v1731_v55 = vpop.f32.mrb[67].mxu0  ;;  %v1857_v24 = vadd.f32 %v1737_v14, %v3773_v23 }
 0x48b   : > { %v1732_v59 = vadd.f32 %v3992_v11, %v1731_v55  ;;  %v1855_v17 = vadd.f32 %v1729_v13, %v3767_v20 }
 0x48c   : > { %v1858_v25 = vadd.f32 %v1740_v22, %v3764_v19 }
 0x48d   : > { %v1856_v26 = vadd.f32 %v1732_v59, %v3770_v21 }
 0x48e   : > { %v1888_v1 = vpack.c.bf16 %v1858_v25, %v1857_v24 }
 0x48f   : > { %v3024_v38 = vpop.f32.mrb[68].mxu0  ;;  %v1887_v2 = vpack.c.bf16 %v1856_v26, %v1855_v17 }
 0x490   : > { %v1753_v39 = vadd.f32 %v3024_v38, %v3992_v11  ;;  %v1744_v4 = vpop.f32.mrb[69].mxu0 }
 0x491   : > { %v1745_v53 = vadd.f32 %v3992_v11, %v1744_v4  ;;  %v3025_v32 = vpop.f32.mrb[70].mxu0  ;;  %3066 = vmatprep.mubr.bf16.mxu0 %v1887_v2 }
 0x492   : > { %v1756_v5 = vadd.f32 %v3025_v32, %v3992_v11  ;;  %v1747_v35 = vpop.f32.mrb[71].mxu0  ;;  %3067 = vmatmul.mubr.bf16.vlgmr.msra.gmra.mrb[96].mxu0 %v1888_v1  ;;  %v1861_v20 = vadd.f32 %v1753_v39, %v3793_v45 }
 0x493   : > { %v1748_v19 = vadd.f32 %v3992_v11, %v1747_v35  ;;  %v1859_v23 = vadd.f32 %v1745_v53, %v3787_v43 }
 0x494   : > { %v1862_v21 = vadd.f32 %v1756_v5, %v3784_v42 }
 0x495   : > { %v1860_v37 = vadd.f32 %v1748_v19, %v3790_v44 }
 0x496   : > { %v1890_v34 = vpack.c.bf16 %v1862_v21, %v1861_v20 }
 0x497   : > { %v3028_v54 = vpop.f32.mrb[72].mxu0  ;;  %v1889_v49 = vpack.c.bf16 %v1860_v37, %v1859_v23 }
 0x498   : > { %v1769_v41 = vadd.f32 %v3028_v54, %v3992_v11  ;;  %v1760_v48 = vpop.f32.mrb[73].mxu0 }
 0x499   : > { %v1761_v12 = vadd.f32 %v3992_v11, %v1760_v48  ;;  %v3029_v51 = vpop.f32.mrb[74].mxu0  ;;  %3070 = vmatprep.mubr.bf16.mxu1 %v1889_v49 }
 0x49a   : > { %v1772_v62 = vadd.f32 %v3029_v51, %v3992_v11  ;;  %v1763_v15 = vpop.f32.mrb[75].mxu0  ;;  %3071 = vmatmul.mubr.bf16.vlgmr.msra.gmra.mrb[64].mxu1 %v1890_v34  ;;  %v1865_v43 = vadd.f32 %v1769_v41, %v3813_v3 }
 0x49b   : > { %v1764_v42 = vadd.f32 %v3992_v11, %v1763_v15  ;;  %v1863_v45 = vadd.f32 %v1761_v12, %v3807_v33 }
 0x49c   : > { %v1866_v44 = vadd.f32 %v1772_v62, %v3804_v63 }
 0x49d   : > { %v1864_v16 = vadd.f32 %v1764_v42, %v3810_v0 }
 0x49e   : > { %v1892_v14 = vpack.c.bf16 %v1866_v44, %v1865_v43 }
 0x49f   : > { %v3032_v56 = vpop.f32.mrb[76].mxu0  ;;  %v1891_v13 = vpack.c.bf16 %v1864_v16, %v1863_v45 }
 0x4a0   : > { %v1785_v58 = vadd.f32 %v3032_v56, %v3992_v11  ;;  %v1776_v22 = vpop.f32.mrb[77].mxu0 }
 0x4a1   : > { %v1777_v55 = vadd.f32 %v3992_v11, %v1776_v22  ;;  %v3033_v59 = vpop.f32.mrb[78].mxu0  ;;  %3074 = vmatprep.mubr.bf16.mxu1 %v1891_v13 }
 0x4a2   : > { %v1788_v24 = vadd.f32 %v3033_v59, %v3992_v11  ;;  %v1779_v25 = vpop.f32.mrb[79].mxu0  ;;  %3075 = vmatmul.mubr.bf16.gmra.mrb[68].mxu1 %v1892_v14  ;;  %v1869_v33 = vadd.f32 %v1785_v58, %v3833_v29 }
 0x4a3   : > { %v1780_v63 = vadd.f32 %v3992_v11, %v1779_v25  ;;  %v1867_v3 = vadd.f32 %v1777_v55, %v3827_v27 }
 0x4a4   : > { %v1870_v0 = vadd.f32 %v1788_v24, %v3824_v18 }
 0x4a5   : > { %v1868_v17 = vadd.f32 %v1780_v63, %v3830_v28 }
 0x4a6   : > { %v1894_v26 = vpack.c.bf16 %v1870_v0, %v1869_v33 }
 0x4a7   : > { %v3036_v1 = vpop.f32.mrb[80].mxu0  ;;  %v1893_v38 = vpack.c.bf16 %v1868_v17, %v1867_v3 }
 0x4a8   : > { %v1801_v2 = vadd.f32 %v3036_v1, %v3992_v11  ;;  %v1792_v39 = vpop.f32.mrb[81].mxu0 }
 0x4a9   : > { %v1793_v4 = vadd.f32 %v3992_v11, %v1792_v39  ;;  %v3037_v53 = vpop.f32.mrb[82].mxu0  ;;  %3078 = vmatprep.mubr.bf16.mxu1 %v1893_v38 }
 0x4aa   : > { %v1804_v32 = vadd.f32 %v3037_v53, %v3992_v11  ;;  %v1795_v5 = vpop.f32.mrb[83].mxu0  ;;  %3079 = vmatmul.mubr.bf16.gmra.mrb[72].mxu1 %v1894_v26  ;;  %v1873_v27 = vadd.f32 %v1801_v2, %v3853_v9  ;;  %v4062_v26 = vld [vmem:[%s4174_s6] ss:$0 sm:$0xff] }
 0x4ab   : > { %v1796_v18 = vadd.f32 %v3992_v11, %v1795_v5  ;;  %v1871_v29 = vadd.f32 %v1793_v4, %v3847_v47 }
 0x4ac   : > { %v1874_v28 = vadd.f32 %v1804_v32, %v3844_v40 }
 0x4ad   : > { %v1872_v35 = vadd.f32 %v1796_v18, %v3850_v52 }
 0x4ae   : > { %v1896_v19 = vpack.c.bf16 %v1874_v28, %v1873_v27 }
 0x4af   : > { %v3040_v20 = vpop.f32.mrb[84].mxu0  ;;  %v1895_v21 = vpack.c.bf16 %v1872_v35, %v1871_v29 }
 0x4b0   : > { %v1817_v23 = vadd.f32 %v3040_v20, %v3992_v11  ;;  %v1808_v37 = vpop.f32.mrb[85].mxu0 }
 0x4b1   : > { %v1809_v34 = vadd.f32 %v3992_v11, %v1808_v37  ;;  %v3041_v54 = vpop.f32.mrb[86].mxu0  ;;  %3082 = vmatprep.mubr.bf16.mxu1 %v1895_v21 }
 0x4b2   : > { %v1820_v49 = vadd.f32 %v3041_v54, %v3992_v11  ;;  %v1811_v41 = vpop.f32.mrb[87].mxu0  ;;  %3083 = vmatmul.mubr.bf16.gmra.mrb[76].mxu1 %v1896_v19  ;;  %v1877_v47 = vadd.f32 %v1817_v23, %v3873_v10 }
 0x4b3   : > { %v1812_v40 = vadd.f32 %v3992_v11, %v1811_v41  ;;  %v1875_v9 = vadd.f32 %v1809_v34, %v3867_v7 }
 0x4b4   : > { %v1878_v52 = vadd.f32 %v1820_v49, %v3864_v50 }
 0x4b5   : > { %v1876_v48 = vadd.f32 %v1812_v40, %v3870_v8 }
 0x4b6   : > { %v1898_v12 = vpack.c.bf16 %v1878_v52, %v1877_v47 }
 0x4b7   : > { %v3044_v51 = vpop.f32.mrb[88].mxu0  ;;  %v1897_v62 = vpack.c.bf16 %v1876_v48, %v1875_v9 }
 0x4b8   : > { %v1833_v15 = vadd.f32 %v3044_v51, %v3992_v11  ;;  %v1824_v42 = vpop.f32.mrb[89].mxu0 }
 0x4b9   : > { %v1825_v43 = vadd.f32 %v3992_v11, %v1824_v42  ;;  %v3045_v44 = vpop.f32.mrb[90].mxu0  ;;  %3086 = vmatprep.mubr.bf16.mxu1 %v1897_v62 }
 0x4ba   : > { %v1836_v45 = vadd.f32 %v3045_v44, %v3992_v11  ;;  %v1827_v16 = vpop.f32.mrb[91].mxu0  ;;  %3087 = vmatmul.mubr.bf16.gmra.mrb[80].mxu1 %v1898_v12  ;;  %v1881_v7 = vadd.f32 %v1833_v15, %v3893_v31 }
 0x4bb   : > { %v1828_v50 = vadd.f32 %v3992_v11, %v1827_v16  ;;  %v1879_v10 = vadd.f32 %v1825_v43, %v3887_v30 }
 0x4bc   : > { %v1882_v8 = vadd.f32 %v1836_v45, %v3884_v60 }
 0x4bd   : > { %v1880_v14 = vadd.f32 %v1828_v50, %v3890_v36 }
 0x4be   : > { %v1900_v56 = vpack.c.bf16 %v1882_v8, %v1881_v7 }
 0x4bf   : > { %v3048_v13 = vpop.f32.mrb[92].mxu0  ;;  %v1899_v58 = vpack.c.bf16 %v1880_v14, %v1879_v10 }
 0x4c0   : > { %v1849_v22 = vadd.f32 %v3048_v13, %v3992_v11  ;;  %v1840_v55 = vpop.f32.mrb[93].mxu0 }
 0x4c1   : > { %v1841_v59 = vadd.f32 %v3992_v11, %v1840_v55  ;;  %v3049_v24 = vpop.f32.mrb[94].mxu0  ;;  %3090 = vmatprep.mubr.bf16.mxu1 %v1899_v58 }
 0x4c2   : > { %v1852_v25 = vadd.f32 %v3049_v24, %v3992_v11  ;;  %v1843_v31 = vpop.f32.mrb[95].mxu0  ;;  %3091 = vmatmul.mubr.bf16.gmra.mrb[84].mxu1 %v1900_v56  ;;  %v1885_v30 = vadd.f32 %v1849_v22, %v3913_v61 }
 0x4c3   : > { %v1844_v60 = vadd.f32 %v3992_v11, %v1843_v31  ;;  %v1883_v63 = vadd.f32 %v1841_v59, %v3907_v57 }
 0x4c4   : > { %v1886_v36 = vadd.f32 %v1852_v25, %v3904_v6 }
 0x4c5   : > { %v1884_v33 = vadd.f32 %v1844_v60, %v3910_v46 }
 0x4c6   : > { %v1902_v0 = vpack.c.bf16 %v1886_v36, %v1885_v30 }
 0x4c7   : > { %v1901_v3 = vpack.c.bf16 %v1884_v33, %v1883_v63 }
 0x4c9   : > { %3094 = vmatprep.mubr.bf16.mxu1 %v1901_v3 }
 0x4ca   : > { %3095 = vmatmul.mubr.bf16.gmra.mrb[88].mxu1 %v1902_v0 }
 0x565   : > { %v3068_v17 = vpop.f32.mrb[96].mxu0 }
 0x566   : > { %v2008_v11 = vpop.f32.mrb[97].mxu0  ;;  %v2017_v6 = vadd.f32 %v3068_v17, %v4062_v26 }
 0x567   : > { %v3069_v61 = vpop.f32.mrb[98].mxu0  ;;  %v2009_v1 = vadd.f32 %v4062_v26, %v2008_v11 }
 0x568   : > { %v2020_v57 = vadd.f32 %v3069_v61, %v4062_v26  ;;  %v2011_v46 = vpop.f32.mrb[99].mxu0 }
 0x569   : > { %v2012_v38 = vadd.f32 %v4062_v26, %v2011_v46 }
 0x56a   : > { %v2600_v2 = vpack.c.bf16 %v2020_v57, %v2017_v6 }
 0x56b   : > { %v2595_v39 = vpack.c.bf16 %v2012_v38, %v2009_v1 }
 0x56c   : > { %2672 = vst [vmem:[%s4070_s19 + $0x8] sm:$0xff] %v2600_v2  }
 0x56d   : > { %2596 = vst [vmem:[%s4070_s19] sm:$0xff] %v2595_v39   ;;  %v3072_v4 = vpop.f32.mrb[64].mxu1 }
 0x56e   : > { %v2024_v53 = vpop.f32.mrb[65].mxu1  ;;  %v2033_v5 = vadd.f32 %v3072_v4, %v4062_v26 }
 0x56f   : > { %v3073_v32 = vpop.f32.mrb[66].mxu1  ;;  %v2025_v28 = vadd.f32 %v4062_v26, %v2024_v53 }
 0x570   : > { %v2036_v18 = vadd.f32 %v3073_v32, %v4062_v26  ;;  %v2027_v27 = vpop.f32.mrb[67].mxu1 }
 0x571   : > { %v2028_v29 = vadd.f32 %v4062_v26, %v2027_v27 }
 0x572   : > { %v2610_v35 = vpack.c.bf16 %v2036_v18, %v2033_v5 }
 0x573   : > { %v2605_v19 = vpack.c.bf16 %v2028_v29, %v2025_v28 }
 0x574   : > { %2674 = vst [vmem:[%s4070_s19 + $0x18] sm:$0xff] %v2610_v35  }
 0x575   : > { %2673 = vst [vmem:[%s4070_s19 + $0x10] sm:$0xff] %v2605_v19   ;;  %v3076_v20 = vpop.f32.mrb[68].mxu1 }
 0x576   : > { %v2040_v21 = vpop.f32.mrb[69].mxu1  ;;  %v2049_v37 = vadd.f32 %v3076_v20, %v4062_v26 }
 0x577   : > { %v3077_v23 = vpop.f32.mrb[70].mxu1  ;;  %v2041_v49 = vadd.f32 %v4062_v26, %v2040_v21 }
 0x578   : > { %v2052_v34 = vadd.f32 %v3077_v23, %v4062_v26  ;;  %v2043_v54 = vpop.f32.mrb[71].mxu1 }
 0x579   : > { %v2044_v41 = vadd.f32 %v4062_v26, %v2043_v54 }
 0x57a   : > { %v2620_v40 = vpack.c.bf16 %v2052_v34, %v2049_v37 }
 0x57b   : > { %v2615_v47 = vpack.c.bf16 %v2044_v41, %v2041_v49 }
 0x57c   : > { %2676 = vst [vmem:[%s4070_s19 + $0x28] sm:$0xff] %v2620_v40  }
 0x57d   : > { %2675 = vst [vmem:[%s4070_s19 + $0x20] sm:$0xff] %v2615_v47   ;;  %v3080_v52 = vpop.f32.mrb[72].mxu1 }
 0x57e   : > { %v2056_v9 = vpop.f32.mrb[73].mxu1  ;;  %v2065_v12 = vadd.f32 %v3080_v52, %v4062_v26 }
 0x57f   : > { %v3081_v48 = vpop.f32.mrb[74].mxu1  ;;  %v2057_v15 = vadd.f32 %v4062_v26, %v2056_v9 }
 0x580   : > { %v2068_v51 = vadd.f32 %v3081_v48, %v4062_v26  ;;  %v2059_v62 = vpop.f32.mrb[75].mxu1 }
 0x581   : > { %v2060_v42 = vadd.f32 %v4062_v26, %v2059_v62 }
 0x582   : > { %v2630_v43 = vpack.c.bf16 %v2068_v51, %v2065_v12 }
 0x583   : > { %v2625_v44 = vpack.c.bf16 %v2060_v42, %v2057_v15 }
 0x584   : > { %2678 = vst [vmem:[%s4070_s19 + $0x38] sm:$0xff] %v2630_v43  }
 0x585   : > { %2677 = vst [vmem:[%s4070_s19 + $0x30] sm:$0xff] %v2625_v44   ;;  %v3084_v45 = vpop.f32.mrb[76].mxu1 }
 0x586   : > { %v2072_v16 = vpop.f32.mrb[77].mxu1  ;;  %v2081_v7 = vadd.f32 %v3084_v45, %v4062_v26 }
 0x587   : > { %v3085_v50 = vpop.f32.mrb[78].mxu1  ;;  %v2073_v14 = vadd.f32 %v4062_v26, %v2072_v16 }
 0x588   : > { %v2084_v8 = vadd.f32 %v3085_v50, %v4062_v26  ;;  %v2075_v10 = vpop.f32.mrb[79].mxu1 }
 0x589   : > { %v2076_v56 = vadd.f32 %v4062_v26, %v2075_v10 }
 0x58a   : > { %v2640_v13 = vpack.c.bf16 %v2084_v8, %v2081_v7 }
 0x58b   : > { %v2635_v58 = vpack.c.bf16 %v2076_v56, %v2073_v14 }
 0x58c   : > { %2680 = vst [vmem:[%s4070_s19 + $0x48] sm:$0xff] %v2640_v13  }
 0x58d   : > { %2679 = vst [vmem:[%s4070_s19 + $0x40] sm:$0xff] %v2635_v58   ;;  %v3088_v22 = vpop.f32.mrb[80].mxu1 }
 0x58e   : > { %v2088_v55 = vpop.f32.mrb[81].mxu1  ;;  %v2097_v24 = vadd.f32 %v3088_v22, %v4062_v26 }
 0x58f   : > { %v3089_v59 = vpop.f32.mrb[82].mxu1  ;;  %v2089_v60 = vadd.f32 %v4062_v26, %v2088_v55 }
 0x590   : > { %v2100_v25 = vadd.f32 %v3089_v59, %v4062_v26  ;;  %v2091_v31 = vpop.f32.mrb[83].mxu1 }
 0x591   : > { %v2092_v30 = vadd.f32 %v4062_v26, %v2091_v31 }
 0x592   : > { %v2650_v36 = vpack.c.bf16 %v2100_v25, %v2097_v24 }
 0x593   : > { %v2645_v63 = vpack.c.bf16 %v2092_v30, %v2089_v60 }
 0x594   : > { %2682 = vst [vmem:[%s4070_s19 + $0x58] sm:$0xff] %v2650_v36  }
 0x595   : > { %2681 = vst [vmem:[%s4070_s19 + $0x50] sm:$0xff] %v2645_v63   ;;  %v3092_v33 = vpop.f32.mrb[84].mxu1 }
 0x596   : > { %v2104_v0 = vpop.f32.mrb[85].mxu1  ;;  %v2113_v17 = vadd.f32 %v3092_v33, %v4062_v26 }
 0x597   : > { %v3093_v3 = vpop.f32.mrb[86].mxu1  ;;  %v2105_v6 = vadd.f32 %v4062_v26, %v2104_v0 }
 0x598   : > { %v2116_v11 = vadd.f32 %v3093_v3, %v4062_v26  ;;  %v2107_v61 = vpop.f32.mrb[87].mxu1 }
 0x599   : > { %v2108_v57 = vadd.f32 %v4062_v26, %v2107_v61 }
 0x59a   : > { %v2660_v46 = vpack.c.bf16 %v2116_v11, %v2113_v17 }
 0x59b   : > { %v2655_v1 = vpack.c.bf16 %v2108_v57, %v2105_v6 }
 0x59c   : > { %2684 = vst [vmem:[%s4070_s19 + $0x68] sm:$0xff] %v2660_v46  }
 0x59d   : > { %2683 = vst [vmem:[%s4070_s19 + $0x60] sm:$0xff] %v2655_v1   ;;  %v3096_v38 = vpop.f32.mrb[88].mxu1 }
 0x59e   : > { %v2120_v2 = vpop.f32.mrb[89].mxu1  ;;  %v2129_v4 = vadd.f32 %v3096_v38, %v4062_v26 }
 0x59f   : > { %v3097_v39 = vpop.f32.mrb[90].mxu1  ;;  %v2121_v5 = vadd.f32 %v4062_v26, %v2120_v2 }
 0x5a0   : > { %v2132_v53 = vadd.f32 %v3097_v39, %v4062_v26  ;;  %v2123_v32 = vpop.f32.mrb[91].mxu1 }
 0x5a1   : > { %v2124_v18 = vadd.f32 %v4062_v26, %v2123_v32 }
 0x5a2   : > { %v2670_v27 = vpack.c.bf16 %v2132_v53, %v2129_v4 }
 0x5a3   : > { %v2665_v28 = vpack.c.bf16 %v2124_v18, %v2121_v5 }
 0x5a4   : > { %2686 = vst [vmem:[%s4070_s19 + $0x78] sm:$0xff] %v2670_v27  }
 0x5a5   : > { %2685 = vst [vmem:[%s4070_s19 + $0x70] sm:$0xff] %v2665_v28  }
 0x5a6   : > { %3266 = shalt.err (!%p3263_p7)
}
 0x5a7   : > { %s3267_s14 = scalar_lea.hbm %s4119_s13, 2048  ;;  %s3271_s18 = scalar_lea.hbm %s4175_s7, 4096 }
 0x5a8   : > { %p3268_p8 = scmp.ne.s32.totalorder %s4119_s13, %s3267_s14  ;;  %p3272_p1 = scmp.lt.u32.totalorder %s4119_s13, %s4175_s7 }
 0x5a9   : > { %p3273_p0 = scmp.lt.u32.totalorder %s3271_s18, %s3267_s14  ;;  %p3275_p6 = scmp.lt.u32.totalorder %s3267_s14, %s4119_s13 }
 0x5aa   : > { %p3269_p11 = pnand %p3268_p8, %p4186_p9 }
 0x5ab   : > { %p3274_p5 = por %p3273_p0, %p3272_p1 }
 0x5ac   : > { %p3270_p13 = pneg %p3269_p11 }
 0x5ad   : > { %p3276_p10 = por %p3275_p6, %p3274_p5 }
 0x5af   : > { %p3277_p12 = pnand %p3276_p10, %p3270_p13 }
 0x5b1   : > { %3280 = shalt.err (!%p3277_p12)
}
 0x5b2   : > { %s3325_s15 = smov 64   ;;  %s3326_s22 = smov 4  }
 0x5b3   : > { %3118 = dma.vmem_to_hbm [thread:$0]  (%p4186_p9), %s4121_s16, 2048, %s4119_s13, %s4127_s28, %s3325_s15, %s3325_s15, %s3326_s22  }
 0x5b4 PF: > { %p3130_p2 = scmp.ge.s32.totalorder %s3319_s27, 2  ;;  %s2324_s23 = sand.u32 1, %s3307_s24  }
 0x5b5   : > { %p4187_p3 = scmp.ne.s32.totalorder %s4180_s12, 0  ;;  %s2325_s29 = scalar_lea.sflag [#allocation4], %s2324_s23 }
 0x5b7   : > { %p3125_p4 = pnand %p3130_p2, %p4187_p3 }
 0x5b9   : > { %3302 = dma.done.wait (!%p3125_p4), %s2325_s29, 2048  }
 0x5ba   : > { %3304 = vsyncadd (!%p3125_p4), %s2325_s29, 4294965248  ;;  %p18_p7 = scmp.ge.s32.totalorder %s3392_s30, 4   ;;  %s4188_s24 = smov %s3311_s25 }
 0x5bb   : > { %s4189_s25 = smov %s3315_s26  ;;  %s4190_s26 = smov %s3403_s10 }
 0x5bc   : > { %s4191_s27 = smov %s3392_s30  ;;  %20 = sbr.rel (!%p18_p7) target bundleno = 4 (0x4), region = 94 }
 0x5c3   :  { %2330 = vsyncpa [#allocation3], 1 }
 0x5c4   :  { %2332 = vsyncpa [#allocation3 + $0x1], 1 }
 0x5c5   :  { %2333 = vsyncpa [#allocation4], 1 }
 0x5c6   :  { %2335 = vsyncpa [#allocation4 + $0x1], 1 }

</bundles_post_ra>
